<compile_context>
chip_gen: v5e
topology: v5e:2x2
jax: 0.10.0
libtpu: 0.0.40
codegen_flags: <defaults>
</compile_context>

<pallas_src>
import numpy as np
import jax
import jax.numpy as jnp
from jax.experimental import pallas as pl
from jax.experimental.pallas import tpu as pltpu

HIDDEN = 256
OUTPUT = 256

_VMEM_BUDGET = 36 * 1024 * 1024     # target working set (fits v7x 64 MiB)
_VMEM_LIMIT_CAP = 48 * 1024 * 1024  # never request more scoped VMEM than this


def _round_up(n, m):
    return ((n + m - 1) // m) * m


def _cdiv(a, b):
    return (a + b - 1) // b


# ----------------------------------------------------------------------------
# Kernel: fused 3-layer MLP for one (batch-tile, k-tile) grid step.
#   grid = (batch tiles ["parallel"], layer-1 K tiles ["arbitrary" reduction])
#   Layer 1 accumulates x_tile @ w1_tile into an f32 VMEM scratch; bias+ReLU,
#   layers 2/3 and the output store run only on the last k step.  All matmuls
#   feed the MXU in bf16 with f32 accumulation.
# ----------------------------------------------------------------------------
def _mlp_kernel(x_ref, w1_ref, b1_ref, w2_ref, b2_ref, w3_ref, b3_ref,
                o_ref, acc_ref):
    k = pl.program_id(1)

    @pl.when(k == 0)
    def _():
        acc_ref[...] = jnp.zeros_like(acc_ref)

    # Layer 1 partial product: cast the f32 x tile to bf16 in-register (cheap
    # VPU op, hidden under MXU work), accumulate in f32.
    acc_ref[...] += jnp.dot(x_ref[...].astype(jnp.bfloat16), w1_ref[...],
                            preferred_element_type=jnp.float32)

    @pl.when(k == pl.num_programs(1) - 1)
    def _():
        h = jnp.maximum(acc_ref[...] + b1_ref[...], 0.0)
        h = jnp.dot(h.astype(jnp.bfloat16), w2_ref[...],
                    preferred_element_type=jnp.float32)
        h = jnp.maximum(h + b2_ref[...], 0.0)
        h = jnp.dot(h.astype(jnp.bfloat16), w3_ref[...],
                    preferred_element_type=jnp.float32)
        h = jnp.maximum(h + b3_ref[...], 0.0)      # final_activation=True
        o_ref[...] = h.astype(o_ref.dtype)


# ----------------------------------------------------------------------------
# Tiling heuristics
# ----------------------------------------------------------------------------
def _pick_batch_tile(B):
    """MXU / sublane friendly batch tile and padded batch size."""
    if B < 256:
        # One tile covering the batch; multiple of 16 so bf16 vregs pack fully.
        Bp = _round_up(B, 8 if B <= 8 else 16)
        return Bp, Bp
    best = None
    for tm in (512, 256, 128):                 # MXU-height tiles
        Bp = _round_up(B, tm)
        if Bp // tm < 2:                       # keep grid >= 2 (v7x: 2 TCs)
            continue
        if best is None or (Bp - B) < (best[1] - B):
            best = (tm, Bp)
    return best                                # tm=128 always qualifies


def _pick_k_tile(K, tm, h1, h2, out_size, out_bytes, budget):
    """Split the layer-1 reduction so the VMEM working set stays under budget.

    Estimate is conservative (assumes double-buffered blocks everywhere) so it
    also holds if single-buffered resident weights are unavailable.
    """
    fixed = (2 * (h1 * h2 + h2 * out_size) * 2          # w2, w3 (bf16)
             + 2 * (h1 + h2 + out_size) * 4             # biases (f32)
             + 2 * tm * out_size * out_bytes            # output tile
             + tm * h1 * 4)                             # f32 accumulator

    def est(tk):
        return fixed + 2 * tm * tk * 4 + 2 * tk * h1 * 2   # x tile + w1 tile

    kt = 1
    while True:
        tk = K if kt == 1 else _round_up(_cdiv(K, kt), 128)
        if est(tk) <= budget or tk <= 128:
            return kt, tk, est(tk)
        kt += 1


def _build_call(tm, Bp, tk, kt, h1, h2, out_size, out_dtype,
                flops, bytes_accessed, vmem_limit, single_buffer_residents):
    def spec(shape, index_map, resident):
        if resident and single_buffer_residents:
            # Constant block across the whole grid -> one VMEM buffer suffices.
            return pl.BlockSpec(shape, index_map, pipeline_mode=pl.Buffered(1))
        return pl.BlockSpec(shape, index_map)

    w1_resident = (kt == 1)   # w1 only stays put when K is untiled

    return pl.pallas_call(
        _mlp_kernel,
        out_shape=jax.ShapeDtypeStruct((Bp, out_size), out_dtype),
        grid_spec=pltpu.PrefetchScalarGridSpec(
            num_scalar_prefetch=0,
            grid=(Bp // tm, kt),
            in_specs=[
                pl.BlockSpec((tm, tk), lambda i, k: (i, k)),          # x tile
                spec((tk, h1), lambda i, k: (k, 0), w1_resident),     # w1
                spec((1, h1), lambda i, k: (0, 0), True),             # b1
                spec((h1, h2), lambda i, k: (0, 0), True),            # w2
                spec((1, h2), lambda i, k: (0, 0), True),             # b2
                spec((h2, out_size), lambda i, k: (0, 0), True),      # w3
                spec((1, out_size), lambda i, k: (0, 0), True),       # b3
            ],
            out_specs=pl.BlockSpec((tm, out_size), lambda i, k: (i, 0)),
            scratch_shapes=[pltpu.VMEM((tm, h1), jnp.float32)],
        ),
        compiler_params=pltpu.CompilerParams(
            dimension_semantics=("parallel", "arbitrary"),
            vmem_limit_bytes=vmem_limit,
        ),
        cost_estimate=pl.CostEstimate(
            flops=flops, transcendentals=0, bytes_accessed=bytes_accessed),
    )


def mlp_forward(x, params, out_dtype=jnp.float32, vmem_budget=_VMEM_BUDGET):
    """x: [B, ...] (e.g. [B, C, H, W]); params: list of (W [in,out] bf16, b [1,out] f32).

    out_dtype=jnp.bfloat16 halves the output HBM store on v6e/v7x if the
    consumer accepts it; the default f32 matches the PyTorch module.
    """
    B = x.shape[0]
    x2d = x.reshape(B, -1)
    K = x2d.shape[1]
    if x2d.dtype != jnp.float32 and x2d.dtype != jnp.bfloat16:
        x2d = x2d.astype(jnp.float32)

    (w1, b1), (w2, b2), (w3, b3) = params
    h1, h2, out_size = w1.shape[1], w2.shape[1], w3.shape[1]
    out_bytes = jnp.dtype(out_dtype).itemsize

    tm, Bp = _pick_batch_tile(B)
    kt, tk, est_bytes = _pick_k_tile(K, tm, h1, h2, out_size, out_bytes,
                                     vmem_budget)
    Kp = tk * kt

    # Pad only when the natural shapes are not tile aligned (no-op otherwise).
    if Bp != B or Kp != K:
        x2d = jnp.pad(x2d, ((0, Bp - B), (0, Kp - K)))
    if Kp != K:
        # Zero rows contribute nothing to the layer-1 accumulation.
        w1 = jnp.pad(w1, ((0, Kp - K), (0, 0)))

    vmem_limit = min(_VMEM_LIMIT_CAP,
                     max(32 * 1024 * 1024, int(est_bytes * 1.25)))

    flops = 2 * Bp * (Kp * h1 + h1 * h2 + h2 * out_size)
    bytes_accessed = (
        Bp * Kp * x2d.dtype.itemsize                     # activations in
        + (Kp * h1 + h1 * h2 + h2 * out_size) * 2        # bf16 weights
        + (h1 + h2 + out_size) * 4                       # f32 biases
        + Bp * out_size * out_bytes)                     # output

    args = (x2d, w1, b1, w2, b2, w3, b3)

    def build(single_buffer):
        return _build_call(tm, Bp, tk, kt, h1, h2, out_size, out_dtype,
                           flops, bytes_accessed, vmem_limit, single_buffer)

    try:
        out = build(True)(*args)     # single-buffered resident weights/biases
    except Exception:                # Buffered(1) unsupported -> default buffering
        out = build(False)(*args)

    return out[:B]


# ----------------------------------------------------------------------------
# Deterministic parameter init (mirrors nn.init.orthogonal_(gain=sqrt(2)) for
# ReLU, bias zero).  Weights stored in bf16 once here (no per-call converts).
# ----------------------------------------------------------------------------
def _orthogonal(key, out_features, in_features, gain):
    rows, cols = out_features, in_features
    flat = jax.random.normal(key, (max(rows, cols), min(rows, cols)),
                             dtype=jnp.float32)
    q, r = jnp.linalg.qr(flat)
    q = q * jnp.sign(jnp.diagonal(r))[None, :]   # sign correction
    if rows < cols:
        q = q.T
    w_torch = gain * q[:rows, :cols]             # PyTorch layout: [out, in]
    return w_torch.T                             # kernel layout:  [in, out]


def make_mlp_params(key, input_shape, hidden_sizes=(HIDDEN, HIDDEN),
                    output_size=OUTPUT):
    sizes = [int(np.prod(input_shape))] + list(hidden_sizes) + [output_size]
    gain = float(np.sqrt(2.0))  # get_gain(nn.ReLU) == calculate_gain('relu')
    params = []
    for j in range(len(sizes) - 1):
        key, sub = jax.random.split(key)
        w = _orthogonal(sub, sizes[j + 1], sizes[j], gain).astype(jnp.bfloat16)
        b = jnp.zeros((1, sizes[j + 1]), dtype=jnp.float32)
        params.append((w, b))
    return params


if __name__ == "__main__":
    key = jax.random.PRNGKey(0)
    k_x1, k_p1, k_x2, k_p2 = jax.random.split(key, 4)

    def reference(x, params):
        ref = x.reshape(x.shape[0], -1)
        for (wm, bm) in params:
            ref = jnp.maximum(ref @ wm.astype(jnp.float32) + bm, 0.0)
        return ref

    # --- Case 1: small shapes from the module (obs (4,16,16), batch=2) ------
    B, C, H, W = 2, 4, 16, 16
    x = jax.random.normal(k_x1, (B, C, H, W), dtype=jnp.float32)
    params = make_mlp_params(k_p1, (C, H, W))
    out = jax.block_until_ready(mlp_forward(x, params))

    assert out.shape == (B, OUTPUT), out.shape
    assert out.dtype == jnp.float32
    assert bool(jnp.all(jnp.isfinite(out)))
    assert bool(jnp.all(out >= 0.0))          # final ReLU applied
    ref = reference(x, params)
    err = float(jnp.max(jnp.abs(out - ref)) / (jnp.max(jnp.abs(ref)) + 1e-6))
    assert err < 2e-2, err                    # bf16 MXU inputs, f32 accumulation

    # --- Case 2: exercise batch padding + K-tiled layer-1 reduction path ----
    B2, shape2 = 50, (6, 20, 20)              # K = 2400 (not a tile multiple)
    x2 = jax.random.normal(k_x2, (B2,) + shape2, dtype=jnp.float32)
    params2 = make_mlp_params(k_p2, shape2)
    out2 = jax.block_until_ready(
        mlp_forward(x2, params2, vmem_budget=2 * 1024 * 1024))  # force K tiling
    assert out2.shape == (B2, OUTPUT)
    assert bool(jnp.all(jnp.isfinite(out2)))
    ref2 = reference(x2, params2)
    err2 = float(jnp.max(jnp.abs(out2 - ref2)) / (jnp.max(jnp.abs(ref2)) + 1e-6))
    assert err2 < 2e-2, err2

    print("KERNEL_OK")
</pallas_src>

<mosaic_0001>
module attributes {stable_mosaic.version = 11 : i64} {
  func.func @_mlp_kernel(%arg0: i32, %arg1: i32, %arg2: memref<8x1024xf32, #tpu.memory_space<vmem>>, %arg3: memref<1024x256xbf16, #tpu.memory_space<vmem>>, %arg4: memref<1x256xf32, #tpu.memory_space<vmem>>, %arg5: memref<256x256xbf16, #tpu.memory_space<vmem>>, %arg6: memref<1x256xf32, #tpu.memory_space<vmem>>, %arg7: memref<256x256xbf16, #tpu.memory_space<vmem>>, %arg8: memref<1x256xf32, #tpu.memory_space<vmem>>, %arg9: memref<8x256xf32, #tpu.memory_space<vmem>>, %arg10: memref<8x256xf32, #tpu.memory_space<vmem>>) attributes {dimension_semantics = [#tpu.dimension_semantics<parallel>, #tpu.dimension_semantics<arbitrary>], iteration_bounds = array<i64: 1, 1>, scalar_prefetch = 0 : i64, scratch_operands = 1 : i64, tpu.core_type = #tpu.core_type<tc>, window_params = [{transform_indices = @transform_0, window_bounds = array<i64: 8, 1024>}, {pipeline_mode = #tpu.pipeline_mode<synchronous>, transform_indices = @transform_1, window_bounds = array<i64: 1024, 256>}, {pipeline_mode = #tpu.pipeline_mode<synchronous>, transform_indices = @transform_2, window_bounds = array<i64: 1, 256>}, {pipeline_mode = #tpu.pipeline_mode<synchronous>, transform_indices = @transform_3, window_bounds = array<i64: 256, 256>}, {pipeline_mode = #tpu.pipeline_mode<synchronous>, transform_indices = @transform_4, window_bounds = array<i64: 1, 256>}, {pipeline_mode = #tpu.pipeline_mode<synchronous>, transform_indices = @transform_5, window_bounds = array<i64: 256, 256>}, {pipeline_mode = #tpu.pipeline_mode<synchronous>, transform_indices = @transform_6, window_bounds = array<i64: 1, 256>}, {transform_indices = @transform_7, window_bounds = array<i64: 8, 256>}]} {
    %c0_i32 = arith.constant 0 : i32
    %0 = arith.cmpi eq, %arg1, %c0_i32 : i32
    %1 = arith.extui %0 : i1 to i32
    %c0_i32_0 = arith.constant 0 : i32
    %2 = arith.cmpi ne, %1, %c0_i32_0 : i32
    scf.if %2 {
      %cst_10 = arith.constant 0.000000e+00 : f32
      %13 = vector.broadcast %cst_10 : f32 to vector<8x256xf32>
      %c0_11 = arith.constant 0 : index
      %c0_12 = arith.constant 0 : index
      %14 = vector.load %arg10[%c0_11, %c0_12] : memref<8x256xf32, #tpu.memory_space<vmem>>, vector<8x256xf32>
      tpu.vector_store %arg10[%c0_11, %c0_12], %13 {strides = array<i32>} : memref<8x256xf32, #tpu.memory_space<vmem>>, vector<8x256xf32>,
    } else {
    }
    %c0 = arith.constant 0 : index
    %c0_1 = arith.constant 0 : index
    %3 = vector.load %arg10[%c0, %c0_1] : memref<8x256xf32, #tpu.memory_space<vmem>>, vector<8x256xf32>
    %c0_2 = arith.constant 0 : index
    %c0_3 = arith.constant 0 : index
    %4 = vector.load %arg2[%c0_2, %c0_3] : memref<8x1024xf32, #tpu.memory_space<vmem>>, vector<8x1024xf32>
    %5 = arith.truncf %4 : vector<8x1024xf32> to vector<8x1024xbf16>
    %c0_4 = arith.constant 0 : index
    %c0_5 = arith.constant 0 : index
    %6 = vector.load %arg3[%c0_4, %c0_5] : memref<1024x256xbf16, #tpu.memory_space<vmem>>, vector<1024x256xbf16>
    %cst = arith.constant dense<0.000000e+00> : vector<8x256xf32>
    %7 = tpu.matmul %5, %6, %cst {dimension_numbers = #tpu.dot_dimension_numbers<[1], [0], [0], [1], [0, 0, 1, 1], [], []>} : vector<8x1024xbf16>, vector<1024x256xbf16>, vector<8x256xf32> -> vector<8x256xf32>
    %8 = arith.addf %3, %7 : vector<8x256xf32>
    %c0_6 = arith.constant 0 : index
    %c0_7 = arith.constant 0 : index
    %9 = vector.load %arg10[%c0_6, %c0_7] : memref<8x256xf32, #tpu.memory_space<vmem>>, vector<8x256xf32>
    tpu.vector_store %arg10[%c0_6, %c0_7], %8 {strides = array<i32>} : memref<8x256xf32, #tpu.memory_space<vmem>>, vector<8x256xf32>,
    %c0_i32_8 = arith.constant 0 : i32
    %10 = arith.cmpi eq, %arg1, %c0_i32_8 : i32
    %11 = arith.extui %10 : i1 to i32
    %c0_i32_9 = arith.constant 0 : i32
    %12 = arith.cmpi ne, %11, %c0_i32_9 : i32
    scf.if %12 {
      %c0_10 = arith.constant 0 : index
      %c0_11 = arith.constant 0 : index
      %13 = vector.load %arg10[%c0_10, %c0_11] : memref<8x256xf32, #tpu.memory_space<vmem>>, vector<8x256xf32>
      %c0_12 = arith.constant 0 : index
      %c0_13 = arith.constant 0 : index
      %14 = vector.load %arg4[%c0_12, %c0_13] : memref<1x256xf32, #tpu.memory_space<vmem>>, vector<1x256xf32>
      %15 = vector.broadcast %14 : vector<1x256xf32> to vector<8x256xf32>
      %16 = arith.addf %13, %15 : vector<8x256xf32>
      %cst_14 = arith.constant 0.000000e+00 : f32
      %17 = vector.broadcast %cst_14 : f32 to vector<8x256xf32>
      %18 = arith.maximumf %16, %17 : vector<8x256xf32>
      %19 = arith.truncf %18 : vector<8x256xf32> to vector<8x256xbf16>
      %c0_15 = arith.constant 0 : index
      %c0_16 = arith.constant 0 : index
      %20 = vector.load %arg5[%c0_15, %c0_16] : memref<256x256xbf16, #tpu.memory_space<vmem>>, vector<256x256xbf16>
      %cst_17 = arith.constant dense<0.000000e+00> : vector<8x256xf32>
      %21 = tpu.matmul %19, %20, %cst_17 {dimension_numbers = #tpu.dot_dimension_numbers<[1], [0], [0], [1], [0, 0, 1, 1], [], []>} : vector<8x256xbf16>, vector<256x256xbf16>, vector<8x256xf32> -> vector<8x256xf32>
      %c0_18 = arith.constant 0 : index
      %c0_19 = arith.constant 0 : index
      %22 = vector.load %arg6[%c0_18, %c0_19] : memref<1x256xf32, #tpu.memory_space<vmem>>, vector<1x256xf32>
      %23 = vector.broadcast %22 : vector<1x256xf32> to vector<8x256xf32>
      %24 = arith.addf %21, %23 : vector<8x256xf32>
      %cst_20 = arith.constant 0.000000e+00 : f32
      %25 = vector.broadcast %cst_20 : f32 to vector<8x256xf32>
      %26 = arith.maximumf %24, %25 : vector<8x256xf32>
      %27 = arith.truncf %26 : vector<8x256xf32> to vector<8x256xbf16>
      %c0_21 = arith.constant 0 : index
      %c0_22 = arith.constant 0 : index
      %28 = vector.load %arg7[%c0_21, %c0_22] : memref<256x256xbf16, #tpu.memory_space<vmem>>, vector<256x256xbf16>
      %cst_23 = arith.constant dense<0.000000e+00> : vector<8x256xf32>
      %29 = tpu.matmul %27, %28, %cst_23 {dimension_numbers = #tpu.dot_dimension_numbers<[1], [0], [0], [1], [0, 0, 1, 1], [], []>} : vector<8x256xbf16>, vector<256x256xbf16>, vector<8x256xf32> -> vector<8x256xf32>
      %c0_24 = arith.constant 0 : index
      %c0_25 = arith.constant 0 : index
      %30 = vector.load %arg8[%c0_24, %c0_25] : memref<1x256xf32, #tpu.memory_space<vmem>>, vector<1x256xf32>
      %31 = vector.broadcast %30 : vector<1x256xf32> to vector<8x256xf32>
      %32 = arith.addf %29, %31 : vector<8x256xf32>
      %cst_26 = arith.constant 0.000000e+00 : f32
      %33 = vector.broadcast %cst_26 : f32 to vector<8x256xf32>
      %34 = arith.maximumf %32, %33 : vector<8x256xf32>
      %c0_27 = arith.constant 0 : index
      %c0_28 = arith.constant 0 : index
      %35 = vector.load %arg9[%c0_27, %c0_28] : memref<8x256xf32, #tpu.memory_space<vmem>>, vector<8x256xf32>
      tpu.vector_store %arg9[%c0_27, %c0_28], %34 {strides = array<i32>} : memref<8x256xf32, #tpu.memory_space<vmem>>, vector<8x256xf32>,
    } else {
    }
    return
  }
  func.func @transform_0(%arg0: i32, %arg1: i32) -> (i32, i32) {
    %c0_i32 = arith.constant 0 : i32
    return %arg0, %arg1 : i32, i32
  }
  func.func @transform_1(%arg0: i32, %arg1: i32) -> (i32, i32) {
    %c0_i32 = arith.constant 0 : i32
    %c0_i32_0 = arith.constant 0 : i32
    return %arg1, %c0_i32 : i32, i32
  }
  func.func @transform_2(%arg0: i32, %arg1: i32) -> (i32, i32) {
    %c0_i32 = arith.constant 0 : i32
    %c0_i32_0 = arith.constant 0 : i32
    %c0_i32_1 = arith.constant 0 : i32
    return %c0_i32, %c0_i32_0 : i32, i32
  }
  func.func @transform_3(%arg0: i32, %arg1: i32) -> (i32, i32) {
    %c0_i32 = arith.constant 0 : i32
    %c0_i32_0 = arith.constant 0 : i32
    %c0_i32_1 = arith.constant 0 : i32
    return %c0_i32, %c0_i32_0 : i32, i32
  }
  func.func @transform_4(%arg0: i32, %arg1: i32) -> (i32, i32) {
    %c0_i32 = arith.constant 0 : i32
    %c0_i32_0 = arith.constant 0 : i32
    %c0_i32_1 = arith.constant 0 : i32
    return %c0_i32, %c0_i32_0 : i32, i32
  }
  func.func @transform_5(%arg0: i32, %arg1: i32) -> (i32, i32) {
    %c0_i32 = arith.constant 0 : i32
    %c0_i32_0 = arith.constant 0 : i32
    %c0_i32_1 = arith.constant 0 : i32
    return %c0_i32, %c0_i32_0 : i32, i32
  }
  func.func @transform_6(%arg0: i32, %arg1: i32) -> (i32, i32) {
    %c0_i32 = arith.constant 0 : i32
    %c0_i32_0 = arith.constant 0 : i32
    %c0_i32_1 = arith.constant 0 : i32
    return %c0_i32, %c0_i32_0 : i32, i32
  }
  func.func @transform_7(%arg0: i32, %arg1: i32) -> (i32, i32) {
    %c0_i32 = arith.constant 0 : i32
    %c0_i32_0 = arith.constant 0 : i32
    return %arg0, %c0_i32 : i32, i32
  }
}

module attributes {stable_mosaic.version = 11 : i64} {
  func.func @_mlp_kernel(%arg0: i32, %arg1: i32, %arg2: memref<8x1024xf32, #tpu.memory_space<vmem>>, %arg3: memref<1024x256xbf16, #tpu.memory_space<vmem>>, %arg4: memref<1x256xf32, #tpu.memory_space<vmem>>, %arg5: memref<256x256xbf16, #tpu.memory_space<vmem>>, %arg6: memref<1x256xf32, #tpu.memory_space<vmem>>, %arg7: memref<256x256xbf16, #tpu.memory_space<vmem>>, %arg8: memref<1x256xf32, #tpu.memory_space<vmem>>, %arg9: memref<8x256xf32, #tpu.memory_space<vmem>>, %arg10: memref<8x256xf32, #tpu.memory_space<vmem>>) attributes {dimension_semantics = [#tpu.dimension_semantics<parallel>, #tpu.dimension_semantics<arbitrary>], iteration_bounds = array<i64: 1, 1>, scalar_prefetch = 0 : i64, scratch_operands = 1 : i64, tpu.core_type = #tpu.core_type<tc>, window_params = [{transform_indices = @transform_0, window_bounds = array<i64: 8, 1024>}, {transform_indices = @transform_1, window_bounds = array<i64: 1024, 256>}, {pipeline_mode = #tpu.pipeline_mode<synchronous>, transform_indices = @transform_2, window_bounds = array<i64: 1, 256>}, {pipeline_mode = #tpu.pipeline_mode<synchronous>, transform_indices = @transform_3, window_bounds = array<i64: 256, 256>}, {pipeline_mode = #tpu.pipeline_mode<synchronous>, transform_indices = @transform_4, window_bounds = array<i64: 1, 256>}, {pipeline_mode = #tpu.pipeline_mode<synchronous>, transform_indices = @transform_5, window_bounds = array<i64: 256, 256>}, {pipeline_mode = #tpu.pipeline_mode<synchronous>, transform_indices = @transform_6, window_bounds = array<i64: 1, 256>}, {transform_indices = @transform_7, window_bounds = array<i64: 8, 256>}]} {
    %c0_i32 = arith.constant 0 : i32
    %0 = arith.cmpi eq, %arg1, %c0_i32 : i32
    %1 = arith.extui %0 : i1 to i32
    %c0_i32_0 = arith.constant 0 : i32
    %2 = arith.cmpi ne, %1, %c0_i32_0 : i32
    scf.if %2 {
      %cst_10 = arith.constant 0.000000e+00 : f32
      %13 = vector.broadcast %cst_10 : f32 to vector<8x256xf32>
      %c0_11 = arith.constant 0 : index
      %c0_12 = arith.constant 0 : index
      %14 = vector.load %arg10[%c0_11, %c0_12] : memref<8x256xf32, #tpu.memory_space<vmem>>, vector<8x256xf32>
      tpu.vector_store %arg10[%c0_11, %c0_12], %13 {strides = array<i32>} : memref<8x256xf32, #tpu.memory_space<vmem>>, vector<8x256xf32>,
    } else {
    }
    %c0 = arith.constant 0 : index
    %c0_1 = arith.constant 0 : index
    %3 = vector.load %arg10[%c0, %c0_1] : memref<8x256xf32, #tpu.memory_space<vmem>>, vector<8x256xf32>
    %c0_2 = arith.constant 0 : index
    %c0_3 = arith.constant 0 : index
    %4 = vector.load %arg2[%c0_2, %c0_3] : memref<8x1024xf32, #tpu.memory_space<vmem>>, vector<8x1024xf32>
    %5 = arith.truncf %4 : vector<8x1024xf32> to vector<8x1024xbf16>
    %c0_4 = arith.constant 0 : index
    %c0_5 = arith.constant 0 : index
    %6 = vector.load %arg3[%c0_4, %c0_5] : memref<1024x256xbf16, #tpu.memory_space<vmem>>, vector<1024x256xbf16>
    %cst = arith.constant dense<0.000000e+00> : vector<8x256xf32>
    %7 = tpu.matmul %5, %6, %cst {dimension_numbers = #tpu.dot_dimension_numbers<[1], [0], [0], [1], [0, 0, 1, 1], [], []>} : vector<8x1024xbf16>, vector<1024x256xbf16>, vector<8x256xf32> -> vector<8x256xf32>
    %8 = arith.addf %3, %7 : vector<8x256xf32>
    %c0_6 = arith.constant 0 : index
    %c0_7 = arith.constant 0 : index
    %9 = vector.load %arg10[%c0_6, %c0_7] : memref<8x256xf32, #tpu.memory_space<vmem>>, vector<8x256xf32>
    tpu.vector_store %arg10[%c0_6, %c0_7], %8 {strides = array<i32>} : memref<8x256xf32, #tpu.memory_space<vmem>>, vector<8x256xf32>,
    %c0_i32_8 = arith.constant 0 : i32
    %10 = arith.cmpi eq, %arg1, %c0_i32_8 : i32
    %11 = arith.extui %10 : i1 to i32
    %c0_i32_9 = arith.constant 0 : i32
    %12 = arith.cmpi ne, %11, %c0_i32_9 : i32
    scf.if %12 {
      %c0_10 = arith.constant 0 : index
      %c0_11 = arith.constant 0 : index
      %13 = vector.load %arg10[%c0_10, %c0_11] : memref<8x256xf32, #tpu.memory_space<vmem>>, vector<8x256xf32>
      %c0_12 = arith.constant 0 : index
      %c0_13 = arith.constant 0 : index
      %14 = vector.load %arg4[%c0_12, %c0_13] : memref<1x256xf32, #tpu.memory_space<vmem>>, vector<1x256xf32>
      %15 = vector.broadcast %14 : vector<1x256xf32> to vector<8x256xf32>
      %16 = arith.addf %13, %15 : vector<8x256xf32>
      %cst_14 = arith.constant 0.000000e+00 : f32
      %17 = vector.broadcast %cst_14 : f32 to vector<8x256xf32>
      %18 = arith.maximumf %16, %17 : vector<8x256xf32>
      %19 = arith.truncf %18 : vector<8x256xf32> to vector<8x256xbf16>
      %c0_15 = arith.constant 0 : index
      %c0_16 = arith.constant 0 : index
      %20 = vector.load %arg5[%c0_15, %c0_16] : memref<256x256xbf16, #tpu.memory_space<vmem>>, vector<256x256xbf16>
      %cst_17 = arith.constant dense<0.000000e+00> : vector<8x256xf32>
      %21 = tpu.matmul %19, %20, %cst_17 {dimension_numbers = #tpu.dot_dimension_numbers<[1], [0], [0], [1], [0, 0, 1, 1], [], []>} : vector<8x256xbf16>, vector<256x256xbf16>, vector<8x256xf32> -> vector<8x256xf32>
      %c0_18 = arith.constant 0 : index
      %c0_19 = arith.constant 0 : index
      %22 = vector.load %arg6[%c0_18, %c0_19] : memref<1x256xf32, #tpu.memory_space<vmem>>, vector<1x256xf32>
      %23 = vector.broadcast %22 : vector<1x256xf32> to vector<8x256xf32>
      %24 = arith.addf %21, %23 : vector<8x256xf32>
      %cst_20 = arith.constant 0.000000e+00 : f32
      %25 = vector.broadcast %cst_20 : f32 to vector<8x256xf32>
      %26 = arith.maximumf %24, %25 : vector<8x256xf32>
      %27 = arith.truncf %26 : vector<8x256xf32> to vector<8x256xbf16>
      %c0_21 = arith.constant 0 : index
      %c0_22 = arith.constant 0 : index
      %28 = vector.load %arg7[%c0_21, %c0_22] : memref<256x256xbf16, #tpu.memory_space<vmem>>, vector<256x256xbf16>
      %cst_23 = arith.constant dense<0.000000e+00> : vector<8x256xf32>
      %29 = tpu.matmul %27, %28, %cst_23 {dimension_numbers = #tpu.dot_dimension_numbers<[1], [0], [0], [1], [0, 0, 1, 1], [], []>} : vector<8x256xbf16>, vector<256x256xbf16>, vector<8x256xf32> -> vector<8x256xf32>
      %c0_24 = arith.constant 0 : index
      %c0_25 = arith.constant 0 : index
      %30 = vector.load %arg8[%c0_24, %c0_25] : memref<1x256xf32, #tpu.memory_space<vmem>>, vector<1x256xf32>
      %31 = vector.broadcast %30 : vector<1x256xf32> to vector<8x256xf32>
      %32 = arith.addf %29, %31 : vector<8x256xf32>
      %cst_26 = arith.constant 0.000000e+00 : f32
      %33 = vector.broadcast %cst_26 : f32 to vector<8x256xf32>
      %34 = arith.maximumf %32, %33 : vector<8x256xf32>
      %c0_27 = arith.constant 0 : index
      %c0_28 = arith.constant 0 : index
      %35 = vector.load %arg9[%c0_27, %c0_28] : memref<8x256xf32, #tpu.memory_space<vmem>>, vector<8x256xf32>
      tpu.vector_store %arg9[%c0_27, %c0_28], %34 {strides = array<i32>} : memref<8x256xf32, #tpu.memory_space<vmem>>, vector<8x256xf32>,
    } else {
    }
    return
  }
  func.func @transform_0(%arg0: i32, %arg1: i32) -> (i32, i32) {
    %c0_i32 = arith.constant 0 : i32
    return %arg0, %arg1 : i32, i32
  }
  func.func @transform_1(%arg0: i32, %arg1: i32) -> (i32, i32) {
    %c0_i32 = arith.constant 0 : i32
    %c0_i32_0 = arith.constant 0 : i32
    return %arg1, %c0_i32 : i32, i32
  }
  func.func @transform_2(%arg0: i32, %arg1: i32) -> (i32, i32) {
    %c0_i32 = arith.constant 0 : i32
    %c0_i32_0 = arith.constant 0 : i32
    %c0_i32_1 = arith.constant 0 : i32
    return %c0_i32, %c0_i32_0 : i32, i32
  }
  func.func @transform_3(%arg0: i32, %arg1: i32) -> (i32, i32) {
    %c0_i32 = arith.constant 0 : i32
    %c0_i32_0 = arith.constant 0 : i32
    %c0_i32_1 = arith.constant 0 : i32
    return %c0_i32, %c0_i32_0 : i32, i32
  }
  func.func @transform_4(%arg0: i32, %arg1: i32) -> (i32, i32) {
    %c0_i32 = arith.constant 0 : i32
    %c0_i32_0 = arith.constant 0 : i32
    %c0_i32_1 = arith.constant 0 : i32
    return %c0_i32, %c0_i32_0 : i32, i32
  }
  func.func @transform_5(%arg0: i32, %arg1: i32) -> (i32, i32) {
    %c0_i32 = arith.constant 0 : i32
    %c0_i32_0 = arith.constant 0 : i32
    %c0_i32_1 = arith.constant 0 : i32
    return %c0_i32, %c0_i32_0 : i32, i32
  }
  func.func @transform_6(%arg0: i32, %arg1: i32) -> (i32, i32) {
    %c0_i32 = arith.constant 0 : i32
    %c0_i32_0 = arith.constant 0 : i32
    %c0_i32_1 = arith.constant 0 : i32
    return %c0_i32, %c0_i32_0 : i32, i32
  }
  func.func @transform_7(%arg0: i32, %arg1: i32) -> (i32, i32) {
    %c0_i32 = arith.constant 0 : i32
    %c0_i32_0 = arith.constant 0 : i32
    return %arg0, %c0_i32 : i32, i32
  }
}

</mosaic_0001>

<bundles_post_ra>
// kernel: tpu_custom_call.1
= control target key start
LH: loop header
LB: loop body
LE: loop exit
PB: predicated region body
PF: predicated region fallthrough
CT: control target
= control target key end

     0   :  { %12 = vsyncpa [#allocation4], 0  ;;  %s2877_s0 = inlined_call_operand.hbm [shape: f32[8,1024], index: 0, kind: input, shape index: {}]   ;;  %s2878_s1 = inlined_call_operand.hbm [shape: bf16[1024,256], index: 1, kind: input, shape index: {}]   ;;  %s2879_s2 = inlined_call_operand.hbm [shape: f32[1,256], index: 2, kind: input, shape index: {}]   ;;  %s2880_s3 = inlined_call_operand.hbm [shape: bf16[256,256], index: 3, kind: input, shape index: {}]   ;;  %s2881_s4 = inlined_call_operand.vmem [shape: f32[1,256], index: 4, kind: input, shape index: {}]   ;;  %s2882_s5 = inlined_call_operand.hbm [shape: bf16[256,256], index: 5, kind: input, shape index: {}]   ;;  %s2883_s6 = inlined_call_operand.vmem [shape: f32[1,256], index: 6, kind: input, shape index: {}]   ;;  %s2884_s7 = inlined_call_operand.hbm [shape: f32[8,256], index: 7, kind: output, shape index: {}]  }
   0x1   :  { %13 = vsyncpa [#allocation7], 0 }
   0x2   :  { %14 = vsyncpa [#allocation10], 0  ;;  %s31_s26 = sshll.u32 %s2878_s1, 4  ;;  %s32_s26 = int_to_ptr.hbm [resolvable:$true] %s31_s26 }
   0x3   :  { %15 = vsyncpa [#allocation5], 0  ;;  %s2769_s27 = smov [#allocation6]   ;;  %s55_s8 = sshll.u32 %s2880_s3, 4  ;;  %s56_s8 = int_to_ptr.hbm [resolvable:$true] %s55_s8 }
   0x4   :  { %s33_s28 = sshll.u32 %s2769_s27, 4  ;;  %s2770_s9 = smov 128   ;;  %s34_s28 = int_to_ptr.vmem [resolvable:$true] %s33_s28 }
   0x5   :  { %s2771_s10 = smov 8   ;;  %s2772_s11 = smov [#allocation9]  }
   0x6   :  { %39 = dma.hbm_to_vmem [thread:$0]  %s32_s26, 16384, %s34_s28, [#allocation7], %s2770_s9, %s2770_s9, %s2771_s10  }
   0x7   :  { %s57_s12 = sshll.u32 %s2772_s11, 4  ;;  %s21_s15 = sshll.u32 %s2877_s0, 4  ;;  %s58_s12 = int_to_ptr.vmem [resolvable:$true] %s57_s12  ;;  %s22_s15 = int_to_ptr.hbm [resolvable:$true] %s21_s15 }
   0x8   :  { %63 = dma.hbm_to_vmem [thread:$0]  %s56_s8, 4096, %s58_s12, [#allocation10], %s2770_s9, %s2770_s9, %s2771_s10  }
   0x9   :  { %s45_s17 = sshll.u32 %s2879_s2, 4  ;;  %s2773_s18 = smov [#allocation3]   ;;  %s46_s17 = int_to_ptr.hbm [resolvable:$true] %s45_s17 }
   0xa   :  { %s23_s19 = sshll.u32 %s2773_s18, 4  ;;  %s2774_s3 = smov [#allocation8]   ;;  %s24_s19 = int_to_ptr.vmem [resolvable:$true] %s23_s19 }
   0xb   :  { %26 = dma.hbm_to_vmem [thread:$0]  %s22_s15, 1024, %s24_s19, [#allocation4]  }
   0xc   :  { %s47_s20 = sshll.u32 %s2774_s3, 4  ;;  %s70_s23 = sshll.u32 %s2882_s5, 4  ;;  %s48_s20 = int_to_ptr.vmem [resolvable:$true] %s47_s20  ;;  %s71_s23 = int_to_ptr.hbm [resolvable:$true] %s70_s23 }
   0xd   :  { %50 = dma.hbm_to_vmem [thread:$0]  %s46_s17, 32, %s48_s20, [#allocation7]  }
   0xe   :  { %s2775_s0 = smov [#allocation11]  }
   0xf   :  { %s72_s24 = sshll.u32 %s2775_s0, 4  ;;  %s73_s24 = int_to_ptr.vmem [resolvable:$true] %s72_s24 }
  0x10   :  { %78 = dma.hbm_to_vmem [thread:$0]  %s71_s23, 4096, %s73_s24, [#allocation10], %s2770_s9, %s2770_s9, %s2771_s10  }
  0x11   :  { %2761 = dma.done.wait [#allocation4], 1024  }
  0x12   :  { %2762 = vsyncadd [#allocation4], 4294966272 }
  0x13   :  { %2763 = dma.done.wait [#allocation7], 16416  }
  0x14   :  { %2764 = vsyncadd [#allocation7], 4294950880 }
  0x15   :  { %2765 = dma.done.wait [#allocation10], 8192  }
  0x16   :  { %2766 = vsyncadd [#allocation10], 4294959104  ;;  %v1707_v0 = vld [vmem:[#allocation6 + $0x70] sm:$0xf]  ;;  %v2432_v1 = vld [vmem:[#allocation6 + $0x74] sm:$0xf0] }
  0x17   :  { %v1771_v2 = vld [vmem:[#allocation6 + $0xf0] sm:$0xf]  ;;  %v1708_v3 = vor.u32 %v2432_v1, %v1707_v0  ;;  %v2448_v4 = vld [vmem:[#allocation6 + $0xf4] sm:$0xf0]  ;;  %v1699_v11 = vld [vmem:[#allocation6 + $0x60] sm:$0xf] }
  0x18   :  { %v1835_v5 = vld [vmem:[#allocation6 + $0x170] sm:$0xf]  ;;  %v2464_v6 = vld [vmem:[#allocation6 + $0x174] sm:$0xf0]  ;;  %v1772_v7 = vor.u32 %v2448_v4, %v1771_v2  ;;  %v2430_v13 = vld [vmem:[#allocation6 + $0x64] sm:$0xf0] }
  0x19   :  { %v1836_v8 = vor.u32 %v2464_v6, %v1835_v5  ;;  %v1899_v9 = vld [vmem:[#allocation6 + $0x1f0] sm:$0xf]  ;;  %v2480_v10 = vld [vmem:[#allocation6 + $0x1f4] sm:$0xf0]  ;;  %893 = vmatpush.bf16.msra.mxu0 %v1708_v3  ;;  %v1763_v14 = vld [vmem:[#allocation6 + $0xe0] sm:$0xf]  ;;  %v1700_v16 = vor.u32 %v2430_v13, %v1699_v11 }
  0x1a   :  { %v1900_v12 = vor.u32 %v2480_v10, %v1899_v9  ;;  %v2446_v15 = vld [vmem:[#allocation6 + $0xe4] sm:$0xf0]  ;;  %906 = vmatpush.bf16.msra.mxu1 %v1772_v7  ;;  %v1827_v18 = vld [vmem:[#allocation6 + $0x160] sm:$0xf]  ;;  %v1691_v23 = vld [vmem:[#allocation6 + $0x50] sm:$0xf] }
  0x1b   :  { %919 = vmatpush.bf16.msra.mxu2 %v1836_v8  ;;  %v1764_v17 = vor.u32 %v2446_v15, %v1763_v14  ;;  %v2462_v19 = vld [vmem:[#allocation6 + $0x164] sm:$0xf0]  ;;  %v1891_v20 = vld [vmem:[#allocation6 + $0x1e0] sm:$0xf]  ;;  %v2428_v24 = vld [vmem:[#allocation6 + $0x54] sm:$0xf0] }
  0x1c   :  { %932 = vmatpush.bf16.msra.mxu3 %v1900_v12  ;;  %v1828_v21 = vor.u32 %v2462_v19, %v1827_v18  ;;  %v2478_v22 = vld [vmem:[#allocation6 + $0x1e4] sm:$0xf0]  ;;  %v1755_v26 = vld [vmem:[#allocation6 + $0xd0] sm:$0xf]  ;;  %v2444_v27 = vld [vmem:[#allocation6 + $0xd4] sm:$0xf0]  ;;  %v1692_v29 = vor.u32 %v2428_v24, %v1691_v23 }
  0x1d   :  { %v1892_v25 = vor.u32 %v2478_v22, %v1891_v20  ;;  %v1819_v28 = vld [vmem:[#allocation6 + $0x150] sm:$0xf]  ;;  %894 = vmatpush.bf16.msra.mxu0 %v1700_v16  ;;  %v2460_v30 = vld [vmem:[#allocation6 + $0x154] sm:$0xf0]  ;;  %v1756_v33 = vor.u32 %v2444_v27, %v1755_v26  ;;  %v1683_v35 = vld [vmem:[#allocation6 + $0x40] sm:$0xf] }
  0x1e   :  { %v1883_v31 = vld [vmem:[#allocation6 + $0x1d0] sm:$0xf]  ;;  %v2476_v32 = vld [vmem:[#allocation6 + $0x1d4] sm:$0xf0]  ;;  %907 = vmatpush.bf16.msra.mxu1 %v1764_v17  ;;  %v1820_v34 = vor.u32 %v2460_v30, %v1819_v28  ;;  %v2426_v36 = vld [vmem:[#allocation6 + $0x44] sm:$0xf0] }
  0x1f   :  { %920 = vmatpush.bf16.msra.mxu2 %v1828_v21  ;;  %v1747_v37 = vld [vmem:[#allocation6 + $0xc0] sm:$0xf]  ;;  %v1884_v38 = vor.u32 %v2476_v32, %v1883_v31  ;;  %v2442_v39 = vld [vmem:[#allocation6 + $0xc4] sm:$0xf0]  ;;  %v1684_v44 = vor.u32 %v2426_v36, %v1683_v35  ;;  %v1675_v47 = vld [vmem:[#allocation6 + $0x30] sm:$0xf] }
  0x20   :  { %933 = vmatpush.bf16.msra.mxu3 %v1892_v25  ;;  %v1811_v40 = vld [vmem:[#allocation6 + $0x140] sm:$0xf]  ;;  %v2458_v41 = vld [vmem:[#allocation6 + $0x144] sm:$0xf0]  ;;  %v1748_v45 = vor.u32 %v2442_v39, %v1747_v37  ;;  %v2424_v48 = vld [vmem:[#allocation6 + $0x34] sm:$0xf0] }
  0x21   :  { %v1875_v42 = vld [vmem:[#allocation6 + $0x1c0] sm:$0xf]  ;;  %v2474_v43 = vld [vmem:[#allocation6 + $0x1c4] sm:$0xf0]  ;;  %895 = vmatpush.bf16.msra.mxu0 %v1692_v29  ;;  %v1812_v46 = vor.u32 %v2458_v41, %v1811_v40  ;;  %v1739_v49 = vld [vmem:[#allocation6 + $0xb0] sm:$0xf]  ;;  %v1676_v56 = vor.u32 %v2424_v48, %v1675_v47 }
  0x22   :  { %908 = vmatpush.bf16.msra.mxu1 %v1756_v33  ;;  %v1876_v50 = vor.u32 %v2474_v43, %v1875_v42  ;;  %v2440_v51 = vld [vmem:[#allocation6 + $0xb4] sm:$0xf0]  ;;  %v1803_v52 = vld [vmem:[#allocation6 + $0x130] sm:$0xf]  ;;  %v1667_v59 = vld [vmem:[#allocation6 + $0x20] sm:$0xf] }
  0x23   :  { %921 = vmatpush.bf16.msra.mxu2 %v1820_v34  ;;  %v2456_v53 = vld [vmem:[#allocation6 + $0x134] sm:$0xf0]  ;;  %v1867_v54 = vld [vmem:[#allocation6 + $0x1b0] sm:$0xf]  ;;  %v1740_v57 = vor.u32 %v2440_v51, %v1739_v49  ;;  %v2422_v60 = vld [vmem:[#allocation6 + $0x24] sm:$0xf0] }
  0x24   :  { %934 = vmatpush.bf16.msra.mxu3 %v1884_v38  ;;  %v2472_v55 = vld [vmem:[#allocation6 + $0x1b4] sm:$0xf0]  ;;  %v1804_v58 = vor.u32 %v2456_v53, %v1803_v52  ;;  %v1731_v61 = vld [vmem:[#allocation6 + $0xa0] sm:$0xf]  ;;  %v2438_v63 = vld [vmem:[#allocation6 + $0xa4] sm:$0xf0]  ;;  %v1668_v4 = vor.u32 %v2422_v60, %v1667_v59 }
  0x25   :  { %896 = vmatpush.bf16.msra.mxu0 %v1684_v44  ;;  %v1868_v62 = vor.u32 %v2472_v55, %v1867_v54  ;;  %v1795_v0 = vld [vmem:[#allocation6 + $0x120] sm:$0xf]  ;;  %v2454_v1 = vld [vmem:[#allocation6 + $0x124] sm:$0xf0]  ;;  %v1732_v5 = vor.u32 %v2438_v63, %v1731_v61  ;;  %v1659_v7 = vld [vmem:[#allocation6 + $0x10] sm:$0xf] }
  0x26   :  { %909 = vmatpush.bf16.msra.mxu1 %v1748_v45  ;;  %v1859_v2 = vld [vmem:[#allocation6 + $0x1a0] sm:$0xf]  ;;  %v2470_v3 = vld [vmem:[#allocation6 + $0x1a4] sm:$0xf0]  ;;  %v1796_v6 = vor.u32 %v2454_v1, %v1795_v0  ;;  %v2420_v8 = vld [vmem:[#allocation6 + $0x14] sm:$0xf0] }
  0x27   :  { %922 = vmatpush.bf16.msra.mxu2 %v1812_v46  ;;  %v1723_v9 = vld [vmem:[#allocation6 + $0x90] sm:$0xf]  ;;  %v1860_v10 = vor.u32 %v2470_v3, %v1859_v2  ;;  %v2436_v11 = vld [vmem:[#allocation6 + $0x94] sm:$0xf0]  ;;  %v1660_v16 = vor.u32 %v2420_v8, %v1659_v7  ;;  %v1651_v17 = vld [vmem:[#allocation6] sm:$0xf] }
  0x28   :  { %935 = vmatpush.bf16.msra.mxu3 %v1876_v50  ;;  %v1787_v12 = vld [vmem:[#allocation6 + $0x110] sm:$0xf]  ;;  %v2452_v13 = vld [vmem:[#allocation6 + $0x114] sm:$0xf0]  ;;  %v2418_v18 = vld [vmem:[#allocation6 + $0x4] sm:$0xf0]  ;;  %v1724_v19 = vor.u32 %v2436_v11, %v1723_v9 }
  0x29   :  { %897 = vmatpush.bf16.msra.mxu0 %v1676_v56  ;;  %v1851_v14 = vld [vmem:[#allocation6 + $0x190] sm:$0xf]  ;;  %v2468_v15 = vld [vmem:[#allocation6 + $0x194] sm:$0xf0]  ;;  %v1788_v20 = vor.u32 %v2452_v13, %v1787_v12  ;;  %v1715_v21 = vld [vmem:[#allocation6 + $0x80] sm:$0xf]  ;;  %v1652_v31 = vor.u32 %v2418_v18, %v1651_v17 }
  0x2a   :  { %910 = vmatpush.bf16.msra.mxu1 %v1740_v57  ;;  %v2434_v22 = vld [vmem:[#allocation6 + $0x84] sm:$0xf0]  ;;  %v1779_v23 = vld [vmem:[#allocation6 + $0x100] sm:$0xf]  ;;  %v1852_v24 = vor.u32 %v2468_v15, %v1851_v14  ;;  %v1963_v28 = vld [vmem:[#allocation6 + $0x270] sm:$0xf] }
  0x2b   :  { %923 = vmatpush.bf16.msra.mxu2 %v1804_v58  ;;  %v2450_v25 = vld [vmem:[#allocation6 + $0x104] sm:$0xf0]  ;;  %v1843_v26 = vld [vmem:[#allocation6 + $0x180] sm:$0xf]  ;;  %v2496_v29 = vld [vmem:[#allocation6 + $0x274] sm:$0xf0]  ;;  %v1716_v35 = vor.u32 %v2434_v22, %v1715_v21 }
  0x2c   :  { %936 = vmatpush.bf16.msra.mxu3 %v1868_v62  ;;  %v2466_v27 = vld [vmem:[#allocation6 + $0x184] sm:$0xf0]  ;;  %v2027_v30 = vld [vmem:[#allocation6 + $0x2f0] sm:$0xf]  ;;  %v2512_v32 = vld [vmem:[#allocation6 + $0x2f4] sm:$0xf0]  ;;  %v1780_v36 = vor.u32 %v2450_v25, %v1779_v23  ;;  %v1964_v40 = vor.u32 %v2496_v29, %v1963_v28 }
  0x2d   :  { %898 = vmatpush.bf16.msra.mxu0 %v1668_v4  ;;  %v2091_v33 = vld [vmem:[#allocation6 + $0x370] sm:$0xf]  ;;  %v2528_v34 = vld [vmem:[#allocation6 + $0x374] sm:$0xf0]  ;;  %v1844_v39 = vor.u32 %v2466_v27, %v1843_v26  ;;  %v2028_v41 = vor.u32 %v2512_v32, %v2027_v30  ;;  %v1955_v43 = vld [vmem:[#allocation6 + $0x260] sm:$0xf] }
  0x2e   :  { %911 = vmatpush.bf16.msra.mxu1 %v1732_v5  ;;  %v2155_v37 = vld [vmem:[#allocation6 + $0x3f0] sm:$0xf]  ;;  %v2544_v38 = vld [vmem:[#allocation6 + $0x3f4] sm:$0xf0]  ;;  %v2092_v42 = vor.u32 %v2528_v34, %v2091_v33  ;;  %v2494_v44 = vld [vmem:[#allocation6 + $0x264] sm:$0xf0] }
  0x2f   :  { %924 = vmatpush.bf16.msra.mxu2 %v1796_v6  ;;  %v2019_v45 = vld [vmem:[#allocation6 + $0x2e0] sm:$0xf]  ;;  %v2156_v46 = vor.u32 %v2544_v38, %v2155_v37  ;;  %v2510_v47 = vld [vmem:[#allocation6 + $0x2e4] sm:$0xf0]  ;;  %v111_v52 = vld [vmem:[#allocation3 + $0x10] sm:$0xff]  ;;  %v1956_v53 = vor.u32 %v2494_v44, %v1955_v43  ;;  %s2776_s26 = smov [#allocation12]  }
  0x30   :  { %937 = vmatpush.bf16.msra.mxu3 %v1860_v10  ;;  %v2083_v48 = vld [vmem:[#allocation6 + $0x360] sm:$0xf]  ;;  %v2526_v49 = vld [vmem:[#allocation6 + $0x364] sm:$0xf0]  ;;  %v1947_v54 = vld [vmem:[#allocation6 + $0x250] sm:$0xf]  ;;  %v2832_v57 = vpack.c.bf16 %v111_v52, %v111_v52  ;;  %v2020_v58 = vor.u32 %v2510_v47, %v2019_v45 }
  0x31   :  { %899 = vmatpush.bf16.msra.mxu0 %v1660_v16  ;;  %v2147_v50 = vld [vmem:[#allocation6 + $0x3e0] sm:$0xf]  ;;  %v2542_v51 = vld [vmem:[#allocation6 + $0x3e4] sm:$0xf0]  ;;  %v2492_v55 = vld [vmem:[#allocation6 + $0x254] sm:$0xf0]  ;;  %v2084_v59 = vor.u32 %v2526_v49, %v2083_v48 }
  0x32   :  { %912 = vmatpush.bf16.msra.mxu1 %v1724_v19  ;;  %v2011_v56 = vld [vmem:[#allocation6 + $0x2d0] sm:$0xf]  ;;  %v2508_v60 = vld [vmem:[#allocation6 + $0x2d4] sm:$0xf0]  ;;  %v2148_v63 = vor.u32 %v2542_v51, %v2147_v50  ;;  %v109_v0 = vld [vmem:[#allocation3] sm:$0xff]  ;;  %v1948_v8 = vor.u32 %v2492_v55, %v1947_v54  ;;  %s1635_s27 = sshll.u32 %s2776_s26, 4  ;;  %s1636_s27 = int_to_ptr.vmem [resolvable:$true] %s1635_s27 }
  0x33   :  { %925 = vmatpush.bf16.msra.mxu2 %v1788_v20  ;;  %v2075_v61 = vld [vmem:[#allocation6 + $0x350] sm:$0xf]  ;;  %v2524_v62 = vld [vmem:[#allocation6 + $0x354] sm:$0xf0]  ;;  %v110_v2 = vld [vmem:[#allocation3 + $0x8] sm:$0xff]  ;;  %v2835_v5 = vpack.c.bf16 %v109_v0, %v109_v0  ;;  %v2012_v9 = vor.u32 %v2508_v60, %v2011_v56  ;;  %s1637_s30 = sshll.u32 %s2884_s7, 4  ;;  %s1638_s30 = int_to_ptr.hbm [resolvable:$true] %s1637_s30 }
  0x34   :  { %938 = vmatpush.bf16.msra.mxu3 %v1852_v24  ;;  %v112_v1 = vld [vmem:[#allocation3 + $0x18] sm:$0xff]  ;;  %v2139_v3 = vld [vmem:[#allocation6 + $0x3d0] sm:$0xf]  ;;  %v2839_v7 = vpack.c.bf16 %v110_v2, %v110_v2  ;;  %v2076_v10 = vor.u32 %v2524_v62, %v2075_v61  ;;  %v1939_v11 = vld [vmem:[#allocation6 + $0x240] sm:$0xf] }
  0x35   :  { %900 = vmatpush.bf16.msra.mxu0 %v1652_v31  ;;  %v2540_v4 = vld [vmem:[#allocation6 + $0x3d4] sm:$0xf0]  ;;  %v2837_v6 = vpack.c.bf16 %v112_v1, %v112_v1  ;;  %v2490_v12 = vld [vmem:[#allocation6 + $0x244] sm:$0xf0]  ;;  %v2003_v13 = vld [vmem:[#allocation6 + $0x2c0] sm:$0xf] }
  0x36   :  { %913 = vmatpush.bf16.msra.mxu1 %v1716_v35  ;;  %v2140_v14 = vor.u32 %v2540_v4, %v2139_v3  ;;  %v2506_v15 = vld [vmem:[#allocation6 + $0x2c4] sm:$0xf0]  ;;  %v2067_v16 = vld [vmem:[#allocation6 + $0x340] sm:$0xf]  ;;  %v1940_v20 = vor.u32 %v2490_v12, %v1939_v11  ;;  %v1931_v23 = vld [vmem:[#allocation6 + $0x230] sm:$0xf] }
  0x37   :  { %926 = vmatpush.bf16.msra.mxu2 %v1780_v36  ;;  %v2522_v17 = vld [vmem:[#allocation6 + $0x344] sm:$0xf0]  ;;  %v2131_v18 = vld [vmem:[#allocation6 + $0x3c0] sm:$0xf]  ;;  %v2004_v21 = vor.u32 %v2506_v15, %v2003_v13  ;;  %v2488_v24 = vld [vmem:[#allocation6 + $0x234] sm:$0xf0] }
  0x38   :  { %939 = vmatpush.bf16.msra.mxu3 %v1844_v39  ;;  %901 = vmatmul.bf16.vlgmr.msra.gmra.mxu0 %v2835_v5  ;;  %v2538_v19 = vld [vmem:[#allocation6 + $0x3c4] sm:$0xf0]  ;;  %v2068_v22 = vor.u32 %v2522_v17, %v2067_v16  ;;  %v1995_v25 = vld [vmem:[#allocation6 + $0x2b0] sm:$0xf]  ;;  %v2504_v27 = vld [vmem:[#allocation6 + $0x2b4] sm:$0xf0]  ;;  %v1932_v32 = vor.u32 %v2488_v24, %v1931_v23 }
  0x39   :  { %945 = vmatpush.bf16.msrb.mxu0 %v1964_v40  ;;  %914 = vmatmul.bf16.vlgmr.msra.gmra.mxu1 %v2839_v7  ;;  %v2132_v26 = vor.u32 %v2538_v19, %v2131_v18  ;;  %v2059_v28 = vld [vmem:[#allocation6 + $0x330] sm:$0xf]  ;;  %v2520_v29 = vld [vmem:[#allocation6 + $0x334] sm:$0xf0]  ;;  %v1996_v33 = vor.u32 %v2504_v27, %v1995_v25  ;;  %v1923_v35 = vld [vmem:[#allocation6 + $0x220] sm:$0xf] }
  0x3a   :  { %958 = vmatpush.bf16.msrb.mxu1 %v2028_v41  ;;  %927 = vmatmul.bf16.vlgmr.msra.gmra.mxu2 %v2832_v57  ;;  %v2123_v30 = vld [vmem:[#allocation6 + $0x3b0] sm:$0xf]  ;;  %v2536_v31 = vld [vmem:[#allocation6 + $0x3b4] sm:$0xf0]  ;;  %v2060_v34 = vor.u32 %v2520_v29, %v2059_v28  ;;  %v2486_v36 = vld [vmem:[#allocation6 + $0x224] sm:$0xf0] }
  0x3b   :  { %971 = vmatpush.bf16.msrb.mxu2 %v2092_v42  ;;  %940 = vmatmul.bf16.vlgmr.msra.gmra.mxu3 %v2837_v6  ;;  %v1987_v37 = vld [vmem:[#allocation6 + $0x2a0] sm:$0xf]  ;;  %v2124_v38 = vor.u32 %v2536_v31, %v2123_v30  ;;  %v2502_v39 = vld [vmem:[#allocation6 + $0x2a4] sm:$0xf0]  ;;  %v1924_v44 = vor.u32 %v2486_v36, %v1923_v35  ;;  %v1915_v47 = vld [vmem:[#allocation6 + $0x210] sm:$0xf] }
  0x3c   :  { %984 = vmatpush.bf16.msrb.mxu3 %v2156_v46  ;;  %v2051_v40 = vld [vmem:[#allocation6 + $0x320] sm:$0xf]  ;;  %v2518_v41 = vld [vmem:[#allocation6 + $0x324] sm:$0xf0]  ;;  %v1988_v45 = vor.u32 %v2502_v39, %v1987_v37  ;;  %v2484_v48 = vld [vmem:[#allocation6 + $0x214] sm:$0xf0] }
  0x3d   :  { %946 = vmatpush.bf16.msrb.mxu0 %v1956_v53  ;;  %v2115_v42 = vld [vmem:[#allocation6 + $0x3a0] sm:$0xf]  ;;  %v2534_v43 = vld [vmem:[#allocation6 + $0x3a4] sm:$0xf0]  ;;  %v2052_v46 = vor.u32 %v2518_v41, %v2051_v40  ;;  %v1979_v49 = vld [vmem:[#allocation6 + $0x290] sm:$0xf]  ;;  %v1916_v56 = vor.u32 %v2484_v48, %v1915_v47 }
  0x3e   :  { %959 = vmatpush.bf16.msrb.mxu1 %v2020_v58  ;;  %v2116_v50 = vor.u32 %v2534_v43, %v2115_v42  ;;  %v2500_v51 = vld [vmem:[#allocation6 + $0x294] sm:$0xf0]  ;;  %v2043_v52 = vld [vmem:[#allocation6 + $0x310] sm:$0xf]  ;;  %v1907_v58 = vld [vmem:[#allocation6 + $0x200] sm:$0xf] }
  0x3f   :  { %972 = vmatpush.bf16.msrb.mxu2 %v2084_v59  ;;  %v2516_v53 = vld [vmem:[#allocation6 + $0x314] sm:$0xf0]  ;;  %v2107_v54 = vld [vmem:[#allocation6 + $0x390] sm:$0xf]  ;;  %v2482_v59 = vld [vmem:[#allocation6 + $0x204] sm:$0xf0]  ;;  %v1980_v60 = vor.u32 %v2500_v51, %v1979_v49 }
  0x40   :  { %985 = vmatpush.bf16.msrb.mxu3 %v2148_v63  ;;  %v2532_v55 = vld [vmem:[#allocation6 + $0x394] sm:$0xf0]  ;;  %v2044_v61 = vor.u32 %v2516_v53, %v2043_v52  ;;  %v1971_v62 = vld [vmem:[#allocation6 + $0x280] sm:$0xf]  ;;  %v2498_v63 = vld [vmem:[#allocation6 + $0x284] sm:$0xf0]  ;;  %v1908_v11 = vor.u32 %v2482_v59, %v1907_v58 }
  0x41   :  { %947 = vmatpush.bf16.msrb.mxu0 %v1948_v8  ;;  %v2035_v0 = vld [vmem:[#allocation6 + $0x300] sm:$0xf]  ;;  %v2108_v1 = vor.u32 %v2532_v55, %v2107_v54  ;;  %v2514_v2 = vld [vmem:[#allocation6 + $0x304] sm:$0xf0]  ;;  %v2431_v8 = vld [vmem:[#allocation6 + $0x74] sm:$0xf]  ;;  %v1972_v15 = vor.u32 %v2498_v63, %v1971_v62 }
  0x42   :  { %960 = vmatpush.bf16.msrb.mxu1 %v2012_v9  ;;  %v2099_v3 = vld [vmem:[#allocation6 + $0x380] sm:$0xf]  ;;  %v2530_v4 = vld [vmem:[#allocation6 + $0x384] sm:$0xf0]  ;;  %v1709_v9 = vld [vmem:[#allocation6 + $0x78] sm:$0xf0]  ;;  %v2036_v16 = vor.u32 %v2514_v2, %v2035_v0 }
  0x43   :  { %973 = vmatpush.bf16.msrb.mxu2 %v2076_v10  ;;  %v2447_v10 = vld [vmem:[#allocation6 + $0xf4] sm:$0xf]  ;;  %v1773_v12 = vld [vmem:[#allocation6 + $0xf8] sm:$0xf0]  ;;  %v2429_v24 = vld [vmem:[#allocation6 + $0x64] sm:$0xf] }
  0x44   :  { %986 = vmatpush.bf16.msrb.mxu3 %v2140_v14  ;;  %v2463_v13 = vld [vmem:[#allocation6 + $0x174] sm:$0xf]  ;;  %v1837_v14 = vld [vmem:[#allocation6 + $0x178] sm:$0xf0]  ;;  %v1776_v25 = vor.u32 %v2447_v10, %v1773_v12  ;;  %v1701_v27 = vld [vmem:[#allocation6 + $0x68] sm:$0xf0] }
  0x45   :  { %948 = vmatpush.bf16.msrb.mxu0 %v1940_v20  ;;  %v2479_v17 = vld [vmem:[#allocation6 + $0x1f4] sm:$0xf]  ;;  %v1901_v18 = vld [vmem:[#allocation6 + $0x1f8] sm:$0xf0]  ;;  %v2100_v20 = vor.u32 %v2530_v4, %v2099_v3  ;;  %v2445_v28 = vld [vmem:[#allocation6 + $0xe4] sm:$0xf]  ;;  %v1704_v39 = vor.u32 %v2429_v24, %v1701_v27 }
  0x46   :  { %961 = vmatpush.bf16.msrb.mxu1 %v2004_v21  ;;  %v115_v19 = vld [vmem:[#allocation3 + $0x30] sm:$0xff]  ;;  %v1712_v21 = vor.u32 %v2431_v8, %v1709_v9  ;;  %v116_v23 = vld [vmem:[#allocation3 + $0x38] sm:$0xff]  ;;  %v114_v29 = vld [vmem:[#allocation3 + $0x28] sm:$0xff]  ;;  %v1904_v30 = vor.u32 %v2479_v17, %v1901_v18 }
  0x47   :  { %974 = vmatpush.bf16.msrb.mxu2 %v2068_v22  ;;  %v113_v22 = vld [vmem:[#allocation3 + $0x20] sm:$0xff]  ;;  %v2844_v31 = vpack.c.bf16 %v115_v19, %v115_v19  ;;  %v2848_v36 = vpack.c.bf16 %v116_v23, %v116_v23  ;;  %v2850_v40 = vpack.c.bf16 %v114_v29, %v114_v29  ;;  %v2427_v43 = vld [vmem:[#allocation6 + $0x54] sm:$0xf]  ;;  %v1757_v47 = vld [vmem:[#allocation6 + $0xd8] sm:$0xf0] }
  0x48   :  { %987 = vmatpush.bf16.msrb.mxu3 %v2132_v26  ;;  %v1840_v26 = vor.u32 %v2463_v13, %v1837_v14  ;;  %v2846_v35 = vpack.c.bf16 %v113_v22, %v113_v22  ;;  %v2477_v37 = vld [vmem:[#allocation6 + $0x1e4] sm:$0xf]  ;;  %v2459_v48 = vld [vmem:[#allocation6 + $0x154] sm:$0xf]  ;;  %v1821_v49 = vld [vmem:[#allocation6 + $0x158] sm:$0xf0] }
  0x49   :  { %949 = vmatpush.bf16.msrb.mxu0 %v1932_v32  ;;  %v1765_v32 = vld [vmem:[#allocation6 + $0xe8] sm:$0xf0]  ;;  %v1885_v51 = vld [vmem:[#allocation6 + $0x1d8] sm:$0xf0]  ;;  %v1824_v54 = vor.u32 %v2459_v48, %v1821_v49  ;;  %v2425_v55 = vld [vmem:[#allocation6 + $0x44] sm:$0xf] }
  0x4a   :  { %962 = vmatpush.bf16.msrb.mxu1 %v1996_v33  ;;  %v2461_v33 = vld [vmem:[#allocation6 + $0x164] sm:$0xf]  ;;  %v1768_v41 = vor.u32 %v2445_v28, %v1765_v32  ;;  %v1813_v62 = vld [vmem:[#allocation6 + $0x148] sm:$0xf0]  ;;  %v2423_v4 = vld [vmem:[#allocation6 + $0x34] sm:$0xf] }
  0x4b   :  { %975 = vmatpush.bf16.msrb.mxu2 %v2060_v34  ;;  %v1829_v34 = vld [vmem:[#allocation6 + $0x168] sm:$0xf0]  ;;  %v2441_v58 = vld [vmem:[#allocation6 + $0xc4] sm:$0xf]  ;;  %v1677_v8 = vld [vmem:[#allocation6 + $0x38] sm:$0xf0] }
  0x4c   :  { %988 = vmatpush.bf16.msrb.mxu3 %v2124_v38  ;;  %v1893_v38 = vld [vmem:[#allocation6 + $0x1e8] sm:$0xf0]  ;;  %v1832_v42 = vor.u32 %v2461_v33, %v1829_v34  ;;  %v2473_v63 = vld [vmem:[#allocation6 + $0x1c4] sm:$0xf]  ;;  %v2439_v9 = vld [vmem:[#allocation6 + $0xb4] sm:$0xf] }
  0x4d   :  { %950 = vmatpush.bf16.msrb.mxu0 %v1924_v44  ;;  %v1693_v44 = vld [vmem:[#allocation6 + $0x58] sm:$0xf0]  ;;  %v1877_v0 = vld [vmem:[#allocation6 + $0x1c8] sm:$0xf0]  ;;  %v2455_v12 = vld [vmem:[#allocation6 + $0x134] sm:$0xf] }
  0x4e   :  { %963 = vmatpush.bf16.msrb.mxu1 %v1988_v45  ;;  %v2443_v45 = vld [vmem:[#allocation6 + $0xd4] sm:$0xf]  ;;  %v1696_v52 = vor.u32 %v2427_v43, %v1693_v44  ;;  %v1880_v10 = vor.u32 %v2473_v63, %v1877_v0  ;;  %v1805_v13 = vld [vmem:[#allocation6 + $0x138] sm:$0xf0]  ;;  %v2421_v19 = vld [vmem:[#allocation6 + $0x24] sm:$0xf] }
  0x4f   :  { %976 = vmatpush.bf16.msrb.mxu2 %v2052_v46  ;;  %v1896_v46 = vor.u32 %v2477_v37, %v1893_v38  ;;  %v1760_v53 = vor.u32 %v2443_v45, %v1757_v47  ;;  %v2471_v14 = vld [vmem:[#allocation6 + $0x1b4] sm:$0xf]  ;;  %v1808_v18 = vor.u32 %v2455_v12, %v1805_v13  ;;  %v1733_v23 = vld [vmem:[#allocation6 + $0xa8] sm:$0xf0]  ;;  %v2453_v24 = vld [vmem:[#allocation6 + $0x124] sm:$0xf] }
  0x50   :  { %989 = vmatpush.bf16.msrb.mxu3 %v2116_v50  ;;  %v2475_v50 = vld [vmem:[#allocation6 + $0x1d4] sm:$0xf]  ;;  %v1861_v27 = vld [vmem:[#allocation6 + $0x1a8] sm:$0xf0]  ;;  %v1661_v33 = vld [vmem:[#allocation6 + $0x18] sm:$0xf0] }
  0x51   :  { %951 = vmatpush.bf16.msrb.mxu0 %v1916_v56  ;;  %v1685_v56 = vld [vmem:[#allocation6 + $0x48] sm:$0xf0]  ;;  %v1888_v59 = vor.u32 %v2475_v50, %v1885_v51  ;;  %v2419_v32 = vld [vmem:[#allocation6 + $0x14] sm:$0xf]  ;;  %v1725_v38 = vld [vmem:[#allocation6 + $0x98] sm:$0xf0] }
  0x52   :  { %964 = vmatpush.bf16.msrb.mxu1 %v1980_v60  ;;  %v1749_v60 = vld [vmem:[#allocation6 + $0xc8] sm:$0xf0]  ;;  %v2435_v34 = vld [vmem:[#allocation6 + $0x94] sm:$0xf]  ;;  %v1853_v43 = vld [vmem:[#allocation6 + $0x198] sm:$0xf0]  ;;  %v1664_v44 = vor.u32 %v2419_v32, %v1661_v33 }
  0x53   :  { %977 = vmatpush.bf16.msrb.mxu2 %v2044_v61  ;;  %v2457_v61 = vld [vmem:[#allocation6 + $0x144] sm:$0xf]  ;;  %v1752_v2 = vor.u32 %v2441_v58, %v1749_v60  ;;  %v1728_v47 = vor.u32 %v2435_v34, %v1725_v38  ;;  %v1717_v50 = vld [vmem:[#allocation6 + $0x88] sm:$0xf0]  ;;  %v1965_v58 = vld [vmem:[#allocation6 + $0x278] sm:$0xf0] }
  0x54   :  { %990 = vmatpush.bf16.msrb.mxu3 %v2108_v1  ;;  %v1688_v1 = vor.u32 %v2425_v55, %v1685_v56  ;;  %v1816_v3 = vor.u32 %v2457_v61, %v1813_v62  ;;  %v2417_v45 = vld [vmem:[#allocation6 + $0x4] sm:$0xf]  ;;  %v1845_v55 = vld [vmem:[#allocation6 + $0x188] sm:$0xf0]  ;;  %v2495_v56 = vld [vmem:[#allocation6 + $0x274] sm:$0xf] }
  0x55   :  { %952 = vmatpush.bf16.msrb.mxu0 %v1908_v11  ;;  %v1741_v11 = vld [vmem:[#allocation6 + $0xb8] sm:$0xf0]  ;;  %v2433_v49 = vld [vmem:[#allocation6 + $0x84] sm:$0xf]  ;;  %v2527_v62 = vld [vmem:[#allocation6 + $0x374] sm:$0xf] }
  0x56   :  { %965 = vmatpush.bf16.msrb.mxu1 %v1972_v15  ;;  %v1869_v15 = vld [vmem:[#allocation6 + $0x1b8] sm:$0xf0]  ;;  %v1744_v17 = vor.u32 %v2439_v9, %v1741_v11  ;;  %v2449_v51 = vld [vmem:[#allocation6 + $0x104] sm:$0xf]  ;;  %v1720_v0 = vor.u32 %v2433_v49, %v1717_v50  ;;  %v1957_v12 = vld [vmem:[#allocation6 + $0x268] sm:$0xf0] }
  0x57   :  { %978 = vmatpush.bf16.msrb.mxu2 %v2036_v16  ;;  %v1680_v16 = vor.u32 %v2423_v4, %v1677_v8  ;;  %v1872_v22 = vor.u32 %v2471_v14, %v1869_v15  ;;  %v2029_v61 = vld [vmem:[#allocation6 + $0x2f8] sm:$0xf0]  ;;  %v1968_v8 = vor.u32 %v2495_v56, %v1965_v58  ;;  %v2493_v11 = vld [vmem:[#allocation6 + $0x264] sm:$0xf]  ;;  %v2021_v15 = vld [vmem:[#allocation6 + $0x2e8] sm:$0xf0] }
  0x58   :  { %991 = vmatpush.bf16.msrb.mxu3 %v2100_v20  ;;  %953 = vmatmul.bf16.vlgmr.msrb.gmra.mxu0 %v2846_v35  ;;  %v1669_v20 = vld [vmem:[#allocation6 + $0x28] sm:$0xf0]  ;;  %v2093_v63 = vld [vmem:[#allocation6 + $0x378] sm:$0xf0]  ;;  %v2509_v13 = vld [vmem:[#allocation6 + $0x2e4] sm:$0xf] }
  0x59   :  { %997 = vmatpush.bf16.msra.mxu0 %v1712_v21  ;;  %966 = vmatmul.bf16.vlgmr.msrb.gmra.mxu1 %v2850_v40  ;;  %v2437_v21 = vld [vmem:[#allocation6 + $0xa4] sm:$0xf]  ;;  %v1672_v28 = vor.u32 %v2421_v19, %v1669_v20  ;;  %v2149_v19 = vld [vmem:[#allocation6 + $0x3e8] sm:$0xf0]  ;;  %v1960_v20 = vor.u32 %v2493_v11, %v1957_v12  ;;  %v2141_v32 = vld [vmem:[#allocation6 + $0x3d8] sm:$0xf0] }
  0x5a   :  { %1010 = vmatpush.bf16.msra.mxu1 %v1776_v25  ;;  %979 = vmatmul.bf16.vlgmr.msrb.gmra.mxu2 %v2844_v31  ;;  %v1797_v25 = vld [vmem:[#allocation6 + $0x128] sm:$0xf0]  ;;  %v1736_v29 = vor.u32 %v2437_v21, %v1733_v23  ;;  %v2024_v21 = vor.u32 %v2509_v13, %v2021_v15  ;;  %v2491_v23 = vld [vmem:[#allocation6 + $0x254] sm:$0xf]  ;;  %v2489_v38 = vld [vmem:[#allocation6 + $0x244] sm:$0xf] }
  0x5b   :  { %1023 = vmatpush.bf16.msra.mxu2 %v1840_v26  ;;  %992 = vmatmul.bf16.vlgmr.msrb.gmra.mxu3 %v2848_v36  ;;  %v2469_v26 = vld [vmem:[#allocation6 + $0x1a4] sm:$0xf]  ;;  %v2503_v49 = vld [vmem:[#allocation6 + $0x2b4] sm:$0xf]  ;;  %v1917_v12 = vld [vmem:[#allocation6 + $0x218] sm:$0xf0] }
  0x5c   :  { %1036 = vmatpush.bf16.msra.mxu3 %v1904_v30  ;;  %v1800_v30 = vor.u32 %v2453_v24, %v1797_v25  ;;  %v1864_v37 = vor.u32 %v2469_v26, %v1861_v27  ;;  %v1949_v24 = vld [vmem:[#allocation6 + $0x258] sm:$0xf0]  ;;  %v2507_v25 = vld [vmem:[#allocation6 + $0x2d4] sm:$0xf] }
  0x5d   :  { %998 = vmatpush.bf16.msra.mxu0 %v1704_v39  ;;  %v2451_v39 = vld [vmem:[#allocation6 + $0x114] sm:$0xf]  ;;  %v2013_v27 = vld [vmem:[#allocation6 + $0x2d8] sm:$0xf0]  ;;  %v1952_v33 = vor.u32 %v2491_v23, %v1949_v24  ;;  %v2481_v23 = vld [vmem:[#allocation6 + $0x204] sm:$0xf] }
  0x5e   :  { %1011 = vmatpush.bf16.msra.mxu1 %v1768_v41  ;;  %v1789_v41 = vld [vmem:[#allocation6 + $0x118] sm:$0xf0]  ;;  %v2016_v34 = vor.u32 %v2507_v25, %v2013_v27  ;;  %v2483_v11 = vld [vmem:[#allocation6 + $0x214] sm:$0xf]  ;;  %v1909_v24 = vld [vmem:[#allocation6 + $0x208] sm:$0xf0] }
  0x5f   :  { %1024 = vmatpush.bf16.msra.mxu2 %v1832_v42  ;;  %v2467_v42 = vld [vmem:[#allocation6 + $0x194] sm:$0xf]  ;;  %v1792_v48 = vor.u32 %v2451_v39, %v1789_v41  ;;  %v1941_v39 = vld [vmem:[#allocation6 + $0x248] sm:$0xf0]  ;;  %v1981_v15 = vld [vmem:[#allocation6 + $0x298] sm:$0xf0] }
  0x60   :  { %1037 = vmatpush.bf16.msra.mxu3 %v1896_v46  ;;  %v1653_v46 = vld [vmem:[#allocation6 + $0x8] sm:$0xf0]  ;;  %v2499_v13 = vld [vmem:[#allocation6 + $0x294] sm:$0xf]  ;;  %v2497_v25 = vld [vmem:[#allocation6 + $0x284] sm:$0xf] }
  0x61   :  { %999 = vmatpush.bf16.msra.mxu0 %v1696_v52  ;;  %v1856_v52 = vor.u32 %v2467_v42, %v1853_v43  ;;  %v1656_v60 = vor.u32 %v2417_v45, %v1653_v46  ;;  %v2005_v42 = vld [vmem:[#allocation6 + $0x2c8] sm:$0xf0]  ;;  %v2521_v43 = vld [vmem:[#allocation6 + $0x344] sm:$0xf] }
  0x62   :  { %1012 = vmatpush.bf16.msra.mxu1 %v1760_v53  ;;  %v1781_v53 = vld [vmem:[#allocation6 + $0x108] sm:$0xf0]  ;;  %v2537_v45 = vld [vmem:[#allocation6 + $0x3c4] sm:$0xf] }
  0x63   :  { %1025 = vmatpush.bf16.msra.mxu2 %v1824_v54  ;;  %v2465_v54 = vld [vmem:[#allocation6 + $0x184] sm:$0xf]  ;;  %v1973_v27 = vld [vmem:[#allocation6 + $0x288] sm:$0xf0] }
  0x64   :  { %1038 = vmatpush.bf16.msra.mxu3 %v1888_v59  ;;  %v2511_v59 = vld [vmem:[#allocation6 + $0x2f4] sm:$0xf]  ;;  %v1848_v4 = vor.u32 %v2465_v54, %v1845_v55  ;;  %v2125_v55 = vld [vmem:[#allocation6 + $0x3b8] sm:$0xf0] }
  0x65   :  { %1000 = vmatpush.bf16.msra.mxu0 %v1688_v1  ;;  %v1784_v1 = vor.u32 %v2449_v51, %v1781_v53  ;;  %v2032_v9 = vor.u32 %v2511_v59, %v2029_v61  ;;  %v1997_v51 = vld [vmem:[#allocation6 + $0x2b8] sm:$0xf0]  ;;  %v2535_v54 = vld [vmem:[#allocation6 + $0x3b4] sm:$0xf]  ;;  %v1925_v61 = vld [vmem:[#allocation6 + $0x228] sm:$0xf0] }
  0x66   :  { %1013 = vmatpush.bf16.msra.mxu1 %v1752_v2  ;;  %v2543_v2 = vld [vmem:[#allocation6 + $0x3f4] sm:$0xf]  ;;  %v2061_v53 = vld [vmem:[#allocation6 + $0x338] sm:$0xf0]  ;;  %v2000_v58 = vor.u32 %v2503_v49, %v1997_v51  ;;  %v2554_v51 = vld [vmem:[#allocation9 + $0x44] sm:$0xf0] }
  0x67   :  { %1026 = vmatpush.bf16.msra.mxu2 %v1816_v3  ;;  %v2157_v3 = vld [vmem:[#allocation6 + $0x3f8] sm:$0xf0] }
  0x68   :  { %1039 = vmatpush.bf16.msra.mxu3 %v1880_v10  ;;  %v2096_v10 = vor.u32 %v2527_v62, %v2093_v63  ;;  %v2160_v14 = vor.u32 %v2543_v2, %v2157_v3  ;;  %v2501_v62 = vld [vmem:[#allocation6 + $0x2a4] sm:$0xf]  ;;  %v2128_v63 = vor.u32 %v2535_v54, %v2125_v55  ;;  %v2053_v2 = vld [vmem:[#allocation6 + $0x328] sm:$0xf0] }
  0x69   :  { %1001 = vmatpush.bf16.msra.mxu0 %v1680_v16  ;;  %v2525_v16 = vld [vmem:[#allocation6 + $0x364] sm:$0xf]  ;;  %v2197_v54 = vld [vmem:[#allocation9 + $0x48] sm:$0xf0] }
  0x6a   :  { %1014 = vmatpush.bf16.msra.mxu1 %v1744_v17  ;;  %v2085_v17 = vld [vmem:[#allocation6 + $0x368] sm:$0xf0]  ;;  %v2533_v3 = vld [vmem:[#allocation6 + $0x3a4] sm:$0xf] }
  0x6b   :  { %1027 = vmatpush.bf16.msra.mxu2 %v1808_v18  ;;  %v2541_v18 = vld [vmem:[#allocation6 + $0x3e4] sm:$0xf] }
  0x6c   :  { %1040 = vmatpush.bf16.msra.mxu3 %v1872_v22  ;;  %v2088_v22 = vor.u32 %v2525_v16, %v2085_v17  ;;  %v2152_v26 = vor.u32 %v2541_v18, %v2149_v19  ;;  %v2515_v16 = vld [vmem:[#allocation6 + $0x314] sm:$0xf]  ;;  %v2045_v17 = vld [vmem:[#allocation6 + $0x318] sm:$0xf0] }
  0x6d   :  { %1002 = vmatpush.bf16.msra.mxu0 %v1672_v28  ;;  %v2523_v28 = vld [vmem:[#allocation6 + $0x354] sm:$0xf]  ;;  %v2109_v19 = vld [vmem:[#allocation6 + $0x398] sm:$0xf0] }
  0x6e   :  { %1015 = vmatpush.bf16.msra.mxu1 %v1736_v29  ;;  %v2077_v29 = vld [vmem:[#allocation6 + $0x358] sm:$0xf0]  ;;  %v2531_v18 = vld [vmem:[#allocation6 + $0x394] sm:$0xf] }
  0x6f   :  { %1028 = vmatpush.bf16.msra.mxu2 %v1800_v30  ;;  %v2539_v30 = vld [vmem:[#allocation6 + $0x3d4] sm:$0xf] }
  0x70   :  { %1041 = vmatpush.bf16.msra.mxu3 %v1864_v37  ;;  %v2080_v37 = vor.u32 %v2523_v28, %v2077_v29  ;;  %v2144_v41 = vor.u32 %v2539_v30, %v2141_v32  ;;  %v2513_v28 = vld [vmem:[#allocation6 + $0x304] sm:$0xf]  ;;  %v2037_v29 = vld [vmem:[#allocation6 + $0x308] sm:$0xf0] }
  0x71   :  { %1003 = vmatpush.bf16.msra.mxu0 %v1664_v44  ;;  %v2069_v44 = vld [vmem:[#allocation6 + $0x348] sm:$0xf0]  ;;  %v2529_v30 = vld [vmem:[#allocation6 + $0x384] sm:$0xf] }
  0x72   :  { %1016 = vmatpush.bf16.msra.mxu1 %v1728_v47  ;;  %v2487_v47 = vld [vmem:[#allocation6 + $0x234] sm:$0xf]  ;;  %v2101_v32 = vld [vmem:[#allocation6 + $0x388] sm:$0xf0] }
  0x73   :  { %1029 = vmatpush.bf16.msra.mxu2 %v1792_v48  ;;  %v1933_v48 = vld [vmem:[#allocation6 + $0x238] sm:$0xf0] }
  0x74   :  { %1042 = vmatpush.bf16.msra.mxu3 %v1856_v52  ;;  %v2519_v52 = vld [vmem:[#allocation6 + $0x334] sm:$0xf]  ;;  %v1936_v56 = vor.u32 %v2487_v47, %v1933_v48  ;;  %v2205_v48 = vld [vmem:[#allocation9 + $0x58] sm:$0xf0] }
  0x75   :  { %1004 = vmatpush.bf16.msra.mxu0 %v1656_v60  ;;  %v2064_v59 = vor.u32 %v2519_v52, %v2061_v53  ;;  %v2485_v60 = vld [vmem:[#allocation6 + $0x224] sm:$0xf]  ;;  %v2555_v47 = vld [vmem:[#allocation9 + $0x54] sm:$0xf] }
  0x76   :  { %1017 = vmatpush.bf16.msra.mxu1 %v1720_v0  ;;  %v1989_v0 = vld [vmem:[#allocation6 + $0x2a8] sm:$0xf0]  ;;  %v2208_v49 = vor.u32 %v2555_v47, %v2205_v48  ;;  %v2553_v52 = vld [vmem:[#allocation9 + $0x44] sm:$0xf]  ;;  %v2275_v47 = vld [vmem:[#allocation9 + $0xe0] sm:$0xf] }
  0x77   :  { %1030 = vmatpush.bf16.msra.mxu2 %v1784_v1  ;;  %v2517_v1 = vld [vmem:[#allocation6 + $0x324] sm:$0xf]  ;;  %v2200_v55 = vor.u32 %v2553_v52, %v2197_v54  ;;  %v2267_v52 = vld [vmem:[#allocation9 + $0xd0] sm:$0xf] }
  0x78   :  { %1043 = vmatpush.bf16.msra.mxu3 %v1848_v4  ;;  %1005 = vmatmul.bf16.vlgmr.msra.gmra.mxu0 %v2835_v5  ;;  %v2133_v5 = vld [vmem:[#allocation6 + $0x3c8] sm:$0xf0]  ;;  %v2573_v48 = vld [vmem:[#allocation9 + $0xe4] sm:$0xf] }
  0x79   :  { %1049 = vmatpush.bf16.msrb.mxu0 %v1968_v8  ;;  %1018 = vmatmul.bf16.vlgmr.msra.gmra.mxu1 %v2839_v7  ;;  %v2072_v7 = vor.u32 %v2521_v43, %v2069_v44  ;;  %v2136_v50 = vor.u32 %v2537_v45, %v2133_v5  ;;  %v2117_v4 = vld [vmem:[#allocation6 + $0x3a8] sm:$0xf0]  ;;  %v1928_v8 = vor.u32 %v2485_v60, %v1925_v61  ;;  %v2221_v43 = vld [vmem:[#allocation9 + $0x78] sm:$0xf0]  ;;  %v2211_v45 = vld [vmem:[#allocation9 + $0x60] sm:$0xf] }
  0x7a   :  { %1062 = vmatpush.bf16.msrb.mxu1 %v2032_v9  ;;  %1031 = vmatmul.bf16.vlgmr.msra.gmra.mxu2 %v2832_v57  ;;  %v2505_v57 = vld [vmem:[#allocation6 + $0x2c4] sm:$0xf]  ;;  %v1992_v9 = vor.u32 %v2501_v62, %v1989_v0  ;;  %v2558_v5 = vld [vmem:[#allocation9 + $0x64] sm:$0xf0]  ;;  %v2189_v61 = vld [vmem:[#allocation9 + $0x38] sm:$0xf0] }
  0x7b   :  { %1075 = vmatpush.bf16.msrb.mxu2 %v2096_v10  ;;  %1044 = vmatmul.bf16.vlgmr.msra.gmra.mxu3 %v2837_v6  ;;  %v1944_v6 = vor.u32 %v2489_v38, %v1941_v39  ;;  %v2008_v46 = vor.u32 %v2505_v57, %v2005_v42  ;;  %v2056_v10 = vor.u32 %v2517_v1, %v2053_v2  ;;  %v2219_v39 = vld [vmem:[#allocation9 + $0x70] sm:$0xf]  ;;  %v2560_v57 = vld [vmem:[#allocation9 + $0x74] sm:$0xf0]  ;;  %v2179_v0 = vld [vmem:[#allocation9 + $0x20] sm:$0xf] }
  0x7c   :  { %1088 = vmatpush.bf16.msrb.mxu3 %v2160_v14  ;;  %v2120_v14 = vor.u32 %v2533_v3, %v2117_v4  ;;  %v2104_v38 = vor.u32 %v2529_v30, %v2101_v32  ;;  %v2220_v42 = vor.u32 %v2560_v57, %v2219_v39  ;;  %v2550_v1 = vld [vmem:[#allocation9 + $0x24] sm:$0xf0]  ;;  %v2549_v2 = vld [vmem:[#allocation9 + $0x24] sm:$0xf] }
  0x7d   :  { %1050 = vmatpush.bf16.msrb.mxu0 %v1960_v20  ;;  %v1920_v20 = vor.u32 %v2483_v11, %v1917_v12  ;;  %v2180_v4 = vor.u32 %v2550_v1, %v2179_v0  ;;  %v2171_v11 = vld [vmem:[#allocation9 + $0x10] sm:$0xf]  ;;  %v2548_v12 = vld [vmem:[#allocation9 + $0x14] sm:$0xf0]  ;;  %v2570_v0 = vld [vmem:[#allocation9 + $0xc4] sm:$0xf0] }
  0x7e   :  { %1063 = vmatpush.bf16.msrb.mxu1 %v2024_v21  ;;  %v1984_v21 = vor.u32 %v2499_v13, %v1981_v15  ;;  %v2172_v13 = vor.u32 %v2548_v12, %v2171_v11  ;;  %v2173_v15 = vld [vmem:[#allocation9 + $0x18] sm:$0xf0]  ;;  %v2569_v1 = vld [vmem:[#allocation9 + $0xc4] sm:$0xf] }
  0x7f   :  { %1076 = vmatpush.bf16.msrb.mxu2 %v2088_v22  ;;  %v2048_v22 = vor.u32 %v2515_v16, %v2045_v17  ;;  %v2253_v12 = vld [vmem:[#allocation9 + $0xb8] sm:$0xf0] }
  0x80   :  { %1089 = vmatpush.bf16.msrb.mxu3 %v2152_v26  ;;  %v2112_v26 = vor.u32 %v2531_v18, %v2109_v19  ;;  %v2163_v19 = vld [vmem:[#allocation9] sm:$0xf] }
  0x81   :  { %1051 = vmatpush.bf16.msrb.mxu0 %v1952_v33  ;;  %v1912_v33 = vor.u32 %v2481_v23, %v1909_v24  ;;  %v2165_v24 = vld [vmem:[#allocation9 + $0x8] sm:$0xf0] }
  0x82   :  { %1064 = vmatpush.bf16.msrb.mxu1 %v2016_v34  ;;  %v1976_v34 = vor.u32 %v2497_v25, %v1973_v27 }
  0x83   :  { %1077 = vmatpush.bf16.msrb.mxu2 %v2080_v37  ;;  %v2040_v37 = vor.u32 %v2513_v28, %v2037_v29 }
  0x84   :  { %1090 = vmatpush.bf16.msrb.mxu3 %v2144_v41  ;;  %v2559_v41 = vld [vmem:[#allocation9 + $0x74] sm:$0xf] }
  0x85   :  { %1052 = vmatpush.bf16.msrb.mxu0 %v1944_v6  ;;  %v2224_v44 = vor.u32 %v2559_v41, %v2221_v43  ;;  %v2557_v6 = vld [vmem:[#allocation9 + $0x64] sm:$0xf]  ;;  %v2283_v43 = vld [vmem:[#allocation9 + $0xf0] sm:$0xf] }
  0x86   :  { %1065 = vmatpush.bf16.msrb.mxu1 %v2008_v46  ;;  %v2212_v46 = vor.u32 %v2558_v5, %v2211_v45  ;;  %v2575_v45 = vld [vmem:[#allocation9 + $0xf4] sm:$0xf] }
  0x87   :  { %1078 = vmatpush.bf16.msrb.mxu2 %v2072_v7  ;;  %v2213_v7 = vld [vmem:[#allocation9 + $0x68] sm:$0xf0] }
  0x88   :  { %1091 = vmatpush.bf16.msrb.mxu3 %v2136_v50  ;;  %v2195_v50 = vld [vmem:[#allocation9 + $0x40] sm:$0xf] }
  0x89   :  { %1053 = vmatpush.bf16.msrb.mxu0 %v1936_v56  ;;  %v2196_v53 = vor.u32 %v2554_v51, %v2195_v50  ;;  %v2187_v56 = vld [vmem:[#allocation9 + $0x30] sm:$0xf]  ;;  %v2277_v51 = vld [vmem:[#allocation9 + $0xe8] sm:$0xf0] }
  0x8a   :  { %1066 = vmatpush.bf16.msrb.mxu1 %v2000_v58  ;;  %v2552_v58 = vld [vmem:[#allocation9 + $0x34] sm:$0xf0]  ;;  %v2280_v54 = vor.u32 %v2573_v48, %v2277_v51 }
  0x8b   :  { %1079 = vmatpush.bf16.msrb.mxu2 %v2064_v59  ;;  %v2551_v59 = vld [vmem:[#allocation9 + $0x34] sm:$0xf]  ;;  %v2188_v60 = vor.u32 %v2552_v58, %v2187_v56  ;;  %v2269_v58 = vld [vmem:[#allocation9 + $0xd8] sm:$0xf0] }
  0x8c   :  { %1092 = vmatpush.bf16.msrb.mxu3 %v2128_v63  ;;  %v2192_v62 = vor.u32 %v2551_v59, %v2189_v61  ;;  %v2571_v56 = vld [vmem:[#allocation9 + $0xd4] sm:$0xf] }
  0x8d   :  { %1054 = vmatpush.bf16.msrb.mxu0 %v1928_v8  ;;  %v2181_v8 = vld [vmem:[#allocation9 + $0x28] sm:$0xf0] }
  0x8e   :  { %1067 = vmatpush.bf16.msrb.mxu1 %v1992_v9 }
  0x8f   :  { %1080 = vmatpush.bf16.msrb.mxu2 %v2056_v10  ;;  %v2184_v10 = vor.u32 %v2549_v2, %v2181_v8  ;;  %v2261_v2 = vld [vmem:[#allocation9 + $0xc8] sm:$0xf0]  ;;  %v2251_v8 = vld [vmem:[#allocation9 + $0xb0] sm:$0xf] }
  0x90   :  { %1093 = vmatpush.bf16.msrb.mxu3 %v2120_v14  ;;  %v2547_v14 = vld [vmem:[#allocation9 + $0x14] sm:$0xf] }
  0x91   :  { %1055 = vmatpush.bf16.msrb.mxu0 %v1920_v20  ;;  %v2176_v16 = vor.u32 %v2547_v14, %v2173_v15  ;;  %v2546_v20 = vld [vmem:[#allocation9 + $0x4] sm:$0xf0] }
  0x92   :  { %1068 = vmatpush.bf16.msrb.mxu1 %v1984_v21  ;;  %v2545_v21 = vld [vmem:[#allocation9 + $0x4] sm:$0xf]  ;;  %v2164_v23 = vor.u32 %v2546_v20, %v2163_v19  ;;  %v2245_v20 = vld [vmem:[#allocation9 + $0xa8] sm:$0xf0] }
  0x93   :  { %1081 = vmatpush.bf16.msrb.mxu2 %v2048_v22 }
  0x94   :  { %1094 = vmatpush.bf16.msrb.mxu3 %v2112_v26  ;;  %v2168_v26 = vor.u32 %v2545_v21, %v2165_v24  ;;  %v2564_v24 = vld [vmem:[#allocation9 + $0x94] sm:$0xf0] }
  0x95   :  { %1056 = vmatpush.bf16.msrb.mxu0 %v1912_v33 }
  0x96   :  { %1069 = vmatpush.bf16.msrb.mxu1 %v1976_v34 }
  0x97   :  { %1082 = vmatpush.bf16.msrb.mxu2 %v2040_v37  ;;  %v2864_v37 = vld [vmem:[#allocation8] sm:$0x3] }
  0x98   :  { %1095 = vmatpush.bf16.msrb.mxu3 %v2104_v38  ;;  %1057 = vmatmul.bf16.vlgmr.msrb.gmra.mxu0 %v2846_v35  ;;  %v2216_v35 = vor.u32 %v2557_v6, %v2213_v7  ;;  %v1112_v57 = vperm.slane %v2864_v37, 0  ;;  %v2285_v6 = vld [vmem:[#allocation9 + $0xf8] sm:$0xf0] }
  0x99   :  { %1070 = vmatmul.bf16.vlgmr.msrb.gmra.mxu1 %v2850_v40  ;;  %1320 = vmatpush.bf16.msra.mxu0 %v2220_v42  ;;  %v2203_v40 = vld [vmem:[#allocation9 + $0x50] sm:$0xf] }
  0x9a   :  { %1083 = vmatmul.bf16.vlgmr.msrb.gmra.mxu2 %v2844_v31  ;;  %v2556_v31 = vld [vmem:[#allocation9 + $0x54] sm:$0xf0] }
  0x9b   :  { %1096 = vmatmul.bf16.vlgmr.msrb.gmra.mxu3 %v2848_v36  ;;  %1346 = vmatpush.bf16.msra.mxu2 %v2224_v44  ;;  %v2204_v36 = vor.u32 %v2556_v31, %v2203_v40  ;;  %v2576_v44 = vld [vmem:[#allocation9 + $0xf4] sm:$0xf0] }
  0x9c   :  { %v2284_v5 = vor.u32 %v2576_v44, %v2283_v43 }
  0x9d   :  { %1321 = vmatpush.bf16.msra.mxu0 %v2212_v46 }
  0x9e   :  { %1333 = vmatpush.bf16.msra.mxu1 %v2284_v5 }
  0x9f   :  { %1347 = vmatpush.bf16.msra.mxu2 %v2216_v35  ;;  %v2288_v35 = vor.u32 %v2575_v45, %v2285_v6 }
  0xa1   :  { %1322 = vmatpush.bf16.msra.mxu0 %v2204_v36  ;;  %1359 = vmatpush.bf16.msra.mxu3 %v2288_v35  ;;  %v2574_v36 = vld [vmem:[#allocation9 + $0xe4] sm:$0xf0] }
  0xa2   :  { %v2276_v50 = vor.u32 %v2574_v36, %v2275_v47  ;;  %v1113_v36 = vperm.slane %v2864_v37, 1  ;;  %v2341_v37 = vld [vmem:[#allocation11 + $0x68] sm:$0xf0] }
  0xa3   :  { %1348 = vmatpush.bf16.msra.mxu2 %v2208_v49 }
  0xa4   :  { %1334 = vmatpush.bf16.msra.mxu1 %v2276_v50 }
  0xa5   :  { %1323 = vmatpush.bf16.msra.mxu0 %v2196_v53  ;;  %1360 = vmatpush.bf16.msra.mxu3 %v2280_v54 }
  0xa7   :  { %1349 = vmatpush.bf16.msra.mxu2 %v2200_v55  ;;  %v2572_v55 = vld [vmem:[#allocation9 + $0xd4] sm:$0xf0] }
  0xa8   :  { %v2268_v61 = vor.u32 %v2572_v55, %v2267_v52 }
  0xa9   :  { %1324 = vmatpush.bf16.msra.mxu0 %v2188_v60 }
  0xaa   :  { %1335 = vmatpush.bf16.msra.mxu1 %v2268_v61  ;;  %v2349_v61 = vld [vmem:[#allocation11 + $0x78] sm:$0xf0] }
  0xab   :  { %1350 = vmatpush.bf16.msra.mxu2 %v2192_v62  ;;  %v2272_v62 = vor.u32 %v2571_v56, %v2269_v58  ;;  %v2347_v56 = vld [vmem:[#allocation11 + $0x70] sm:$0xf]  ;;  %v2592_v58 = vld [vmem:[#allocation11 + $0x74] sm:$0xf0] }
  0xad   :  { %1325 = vmatpush.bf16.msra.mxu0 %v2180_v4  ;;  %1361 = vmatpush.bf16.msra.mxu3 %v2272_v62  ;;  %v2264_v4 = vor.u32 %v2569_v1, %v2261_v2  ;;  %v2339_v62 = vld [vmem:[#allocation11 + $0x60] sm:$0xf]  ;;  %v2589_v1 = vld [vmem:[#allocation11 + $0x64] sm:$0xf]  ;;  %v2411_v2 = vld [vmem:[#allocation11 + $0xf0] sm:$0xf] }
  0xaf   :  { %1351 = vmatpush.bf16.msra.mxu2 %v2184_v10  ;;  %v2567_v10 = vld [vmem:[#allocation9 + $0xb4] sm:$0xf] }
  0xb1   :  { %1326 = vmatpush.bf16.msra.mxu0 %v2172_v13  ;;  %1362 = vmatpush.bf16.msra.mxu3 %v2264_v4  ;;  %v2256_v13 = vor.u32 %v2567_v10, %v2253_v12  ;;  %v2608_v4 = vld [vmem:[#allocation11 + $0xf4] sm:$0xf0]  ;;  %v2344_v10 = vor.u32 %v2589_v1, %v2341_v37  ;;  %v2579_v1 = vld [vmem:[#allocation11 + $0x14] sm:$0xf] }
  0xb3   :  { %1352 = vmatpush.bf16.msra.mxu2 %v2176_v16  ;;  %v2243_v16 = vld [vmem:[#allocation9 + $0xa0] sm:$0xf] }
  0xb5   :  { %v902_v63 = vpop.f32.mrf.mxu0  ;;  %1327 = vmatpush.bf16.msra.mxu0 %v2164_v23  ;;  %1363 = vmatpush.bf16.msra.mxu3 %v2256_v13  ;;  %v2235_v23 = vld [vmem:[#allocation9 + $0x90] sm:$0xf] }
  0xb6   :  { %v915_v3 = vpop.f32.mrf.mxu1  ;;  %v2331_v13 = vld [vmem:[#allocation11 + $0x50] sm:$0xf] }
  0xb7   :  { %1353 = vmatpush.bf16.msra.mxu2 %v2168_v26  ;;  %v916_v28 = vadd.f32 %v915_v3, %v902_v63  ;;  %v2259_v63 = vld [vmem:[#allocation9 + $0xc0] sm:$0xf] }
  0xb8   :  { %v2260_v3 = vor.u32 %v2570_v0, %v2259_v63  ;;  %v2590_v63 = vld [vmem:[#allocation11 + $0x64] sm:$0xf0] }
  0xba   :  { %1336 = vmatpush.bf16.msra.mxu1 %v2260_v3  ;;  %v2340_v3 = vor.u32 %v2590_v63, %v2339_v62  ;;  %v2299_v63 = vld [vmem:[#allocation11 + $0x10] sm:$0xf] }
  0xbd   :  { %v928_v9 = vpop.f32.mrf.mxu2  ;;  %v904_v18 = vpop.f32.mrf.mxu0 }
  0xbe   :  { %v941_v17 = vpop.f32.mrf.mxu3  ;;  %v917_v22 = vpop.f32.mrf.mxu1  ;;  %v929_v29 = vadd.f32 %v928_v9, %v916_v28  ;;  %v2568_v9 = vld [vmem:[#allocation9 + $0xb4] sm:$0xf0]  ;;  %v2565_v18 = vld [vmem:[#allocation9 + $0xa4] sm:$0xf]  ;;  %v2237_v28 = vld [vmem:[#allocation9 + $0x98] sm:$0xf0] }
  0xbf   :  { %v2252_v11 = vor.u32 %v2568_v9, %v2251_v8  ;;  %v2248_v21 = vor.u32 %v2565_v18, %v2245_v20  ;;  %v2607_v8 = vld [vmem:[#allocation11 + $0xf4] sm:$0xf]  ;;  %v2413_v9 = vld [vmem:[#allocation11 + $0xf8] sm:$0xf0]  ;;  %v2606_v18 = vld [vmem:[#allocation11 + $0xe4] sm:$0xf0] }
  0xc0   :  { %v942_v30 = vadd.f32 %v941_v17, %v929_v29  ;;  %v2566_v17 = vld [vmem:[#allocation9 + $0xa4] sm:$0xf0]  ;;  %v2416_v12 = vor.u32 %v2607_v8, %v2413_v9  ;;  %v2605_v20 = vld [vmem:[#allocation11 + $0xe4] sm:$0xf] }
  0xc1   :  { %1337 = vmatpush.bf16.msra.mxu1 %v2252_v11  ;;  %v2244_v19 = vor.u32 %v2566_v17, %v2243_v16  ;;  %1364 = vmatpush.bf16.msra.mxu3 %v2248_v21  ;;  %v2412_v11 = vor.u32 %v2608_v4, %v2411_v2  ;;  %v2333_v16 = vld [vmem:[#allocation11 + $0x58] sm:$0xf0]  ;;  %v2403_v17 = vld [vmem:[#allocation11 + $0xe0] sm:$0xf]  ;;  %v2405_v21 = vld [vmem:[#allocation11 + $0xe8] sm:$0xf0] }
  0xc2   :  { %v2301_v2 = vld [vmem:[#allocation11 + $0x18] sm:$0xf0]  ;;  %v2371_v4 = vld [vmem:[#allocation11 + $0xa0] sm:$0xf]  ;;  %v2598_v8 = vld [vmem:[#allocation11 + $0xa4] sm:$0xf0] }
  0xc3   :  { %v2597_v9 = vld [vmem:[#allocation11 + $0xa4] sm:$0xf] }
  0xc5   :  { %v930_v25 = vpop.f32.mrf.mxu2  ;;  %1338 = vmatpush.bf16.msra.mxu1 %v2244_v19  ;;  %v2404_v19 = vor.u32 %v2606_v18, %v2403_v17  ;;  %v2293_v17 = vld [vmem:[#allocation11 + $0x8] sm:$0xf0] }
  0xc6   :  { %v943_v27 = vpop.f32.mrf.mxu3  ;;  %v2563_v25 = vld [vmem:[#allocation9 + $0x94] sm:$0xf] }
  0xc7   :  { %v2236_v27 = vor.u32 %v2564_v24, %v2235_v23  ;;  %v2240_v29 = vor.u32 %v2563_v25, %v2237_v28  ;;  %v2408_v23 = vor.u32 %v2605_v20, %v2405_v21  ;;  %v2323_v24 = vld [vmem:[#allocation11 + $0x40] sm:$0xf]  ;;  %v2586_v25 = vld [vmem:[#allocation11 + $0x44] sm:$0xf0]  ;;  %v2604_v28 = vld [vmem:[#allocation11 + $0xd4] sm:$0xf0] }
  0xc8   :  { %v2596_v20 = vld [vmem:[#allocation11 + $0x94] sm:$0xf0]  ;;  %v2595_v21 = vld [vmem:[#allocation11 + $0x94] sm:$0xf] }
  0xc9   :  { %1339 = vmatpush.bf16.msra.mxu1 %v2236_v27  ;;  %1365 = vmatpush.bf16.msra.mxu3 %v2240_v29  ;;  %v2395_v27 = vld [vmem:[#allocation11 + $0xd0] sm:$0xf]  ;;  %v2603_v29 = vld [vmem:[#allocation11 + $0xd4] sm:$0xf] }
  0xd5   :  { %v954_v32 = vpop.f32.mrf.mxu0 }
  0xd6   :  { %v955_v33 = vadd.f32 %v954_v32, %v942_v30  ;;  %v967_v34 = vpop.f32.mrf.mxu1 }
  0xd8   :  { %v968_v38 = vadd.f32 %v967_v34, %v955_v33  ;;  %v2227_v33 = vld [vmem:[#allocation9 + $0x80] sm:$0xf]  ;;  %v2562_v34 = vld [vmem:[#allocation9 + $0x84] sm:$0xf0] }
  0xdd   :  { %v980_v39 = vpop.f32.mrf.mxu2  ;;  %v956_v7 = vpop.f32.mrf.mxu0 }
  0xde   :  { %v981_v41 = vadd.f32 %v980_v39, %v968_v38  ;;  %v993_v42 = vpop.f32.mrf.mxu3  ;;  %v969_v40 = vpop.f32.mrf.mxu1  ;;  %v2561_v38 = vld [vmem:[#allocation9 + $0x84] sm:$0xf]  ;;  %v2228_v39 = vor.u32 %v2562_v34, %v2227_v33  ;;  %v2397_v33 = vld [vmem:[#allocation11 + $0xd8] sm:$0xf0]  ;;  %v2396_v34 = vor.u32 %v2604_v28, %v2395_v27 }
  0xdf   :  { %v2593_v27 = vld [vmem:[#allocation11 + $0x84] sm:$0xf] }
  0xe0   :  { %v994_v46 = vadd.f32 %v993_v42, %v981_v41  ;;  %1340 = vmatpush.bf16.msra.mxu1 %v2228_v39  ;;  %v2387_v39 = vld [vmem:[#allocation11 + $0xc0] sm:$0xf] }
  0xe2   :  { %v1116_v31 = vadd.f32 %v1112_v57, %v994_v46  ;;  %v2229_v57 = vld [vmem:[#allocation9 + $0x88] sm:$0xf0] }
  0xe3   :  { %v2232_v41 = vor.u32 %v2561_v38, %v2229_v57  ;;  %v2400_v38 = vor.u32 %v2603_v29, %v2397_v33  ;;  %v2324_v57 = vor.u32 %v2586_v25, %v2323_v24  ;;  %v2355_v25 = vld [vmem:[#allocation11 + $0x80] sm:$0xf]  ;;  %v2357_v29 = vld [vmem:[#allocation11 + $0x88] sm:$0xf0] }
  0xe4   :  { %v1118_v49 = vmax.f32 %v1116_v31, 0.0  ;;  %1587 = vmatpush.bf16.msrb.mxu1 %v2412_v11  ;;  %v2373_v11 = vld [vmem:[#allocation11 + $0xa8] sm:$0xf0] }
  0xe5   :  { %v982_v53 = vpop.f32.mrf.mxu2  ;;  %1366 = vmatpush.bf16.msra.mxu3 %v2232_v41  ;;  %v2602_v41 = vld [vmem:[#allocation11 + $0xc4] sm:$0xf0] }
  0xe6   :  { %v1120_v59 = vpack.c.bf16 %v1118_v49, %v1118_v49  ;;  %v995_v60 = vpop.f32.mrf.mxu3 }
  0xe7   :  { %v2348_v60 = vor.u32 %v2592_v58, %v2347_v56 }
  0xe8   :  { %1328 = vmatmul.bf16.vlgmr.msra.gmra.mxu0 %v1120_v59  ;;  %1354 = vmatmul.bf16.vlgmr.msra.gmra.mxu2 %v1120_v59  ;;  %v2591_v59 = vld [vmem:[#allocation11 + $0x74] sm:$0xf] }
  0xe9   :  { %v2352_v0 = vor.u32 %v2591_v59, %v2349_v61  ;;  %1574 = vmatpush.bf16.msrb.mxu0 %v2348_v60  ;;  %1613 = vmatpush.bf16.msrb.mxu3 %v2416_v12  ;;  %v2376_v12 = vor.u32 %v2597_v9, %v2373_v11 }
  0xea   :  { %1588 = vmatpush.bf16.msrb.mxu1 %v2404_v19  ;;  %v2363_v19 = vld [vmem:[#allocation11 + $0x90] sm:$0xf] }
  0xeb   :  { %1600 = vmatpush.bf16.msrb.mxu2 %v2352_v0  ;;  %v2580_v0 = vld [vmem:[#allocation11 + $0x14] sm:$0xf0] }
  0xec   :  { %v2300_v37 = vor.u32 %v2580_v0, %v2299_v63 }
  0xed   :  { %1575 = vmatpush.bf16.msrb.mxu0 %v2340_v3  ;;  %1614 = vmatpush.bf16.msrb.mxu3 %v2408_v23  ;;  %v2304_v3 = vor.u32 %v2579_v1, %v2301_v2  ;;  %v2365_v23 = vld [vmem:[#allocation11 + $0x98] sm:$0xf0] }
  0xee   :  { %1589 = vmatpush.bf16.msrb.mxu1 %v2396_v34  ;;  %v2368_v24 = vor.u32 %v2595_v21, %v2365_v23 }
  0xef   :  { %1601 = vmatpush.bf16.msrb.mxu2 %v2344_v10  ;;  %v2372_v10 = vor.u32 %v2598_v8, %v2371_v4 }
  0xf1   :  { %1615 = vmatpush.bf16.msrb.mxu3 %v2400_v38 }
  0xf5   :  { %v1006_v14 = vpop.f32.mrf.mxu0 }
  0xf6   :  { %v1019_v15 = vpop.f32.mrf.mxu1 }
  0xf7   :  { %v1020_v44 = vadd.f32 %v1019_v15, %v1006_v14  ;;  %v2588_v14 = vld [vmem:[#allocation11 + $0x54] sm:$0xf0]  ;;  %v2587_v15 = vld [vmem:[#allocation11 + $0x54] sm:$0xf] }
  0xfd   :  { %v1032_v22 = vpop.f32.mrf.mxu2  ;;  %v1008_v30 = vpop.f32.mrf.mxu0 }
  0xfe   :  { %v1045_v26 = vpop.f32.mrf.mxu3  ;;  %v1021_v32 = vpop.f32.mrf.mxu1  ;;  %v1033_v45 = vadd.f32 %v1032_v22, %v1020_v44  ;;  %v2332_v22 = vor.u32 %v2588_v14, %v2331_v13  ;;  %v2585_v30 = vld [vmem:[#allocation11 + $0x44] sm:$0xf]  ;;  %v2291_v13 = vld [vmem:[#allocation11] sm:$0xf]  ;;  %v2578_v14 = vld [vmem:[#allocation11 + $0x4] sm:$0xf0] }
  0xff   :  { %v2325_v32 = vld [vmem:[#allocation11 + $0x48] sm:$0xf0] }
 0x100   :  { %v1046_v5 = vadd.f32 %v1045_v26, %v1033_v45  ;;  %v2336_v26 = vor.u32 %v2587_v15, %v2333_v16  ;;  %1576 = vmatpush.bf16.msrb.mxu0 %v2332_v22  ;;  %v2328_v44 = vor.u32 %v2585_v30, %v2325_v32  ;;  %v2315_v45 = vld [vmem:[#allocation11 + $0x30] sm:$0xf]  ;;  %v2577_v15 = vld [vmem:[#allocation11 + $0x4] sm:$0xf]  ;;  %v2292_v16 = vor.u32 %v2578_v14, %v2291_v13  ;;  %v1154_v32 = vld [vmem:[%s2881_s4] sm:$0x3] }
 0x101   :  { %v2296_v18 = vor.u32 %v2577_v15, %v2293_v17  ;;  %v2364_v22 = vor.u32 %v2596_v20, %v2363_v19  ;;  %v2360_v30 = vor.u32 %v2593_v27, %v2357_v29  ;;  %v1156_v33 = vperm.slane %v1154_v32, 0 }
 0x102   :  { %1602 = vmatpush.bf16.msrb.mxu2 %v2336_v26  ;;  %v2594_v26 = vld [vmem:[#allocation11 + $0x84] sm:$0xf0] }
 0x103   :  { %v2356_v28 = vor.u32 %v2594_v26, %v2355_v25 }
 0x104   :  { %1577 = vmatpush.bf16.msrb.mxu0 %v2324_v57 }
 0x105   :  { %v1034_v42 = vpop.f32.mrf.mxu2 }
 0x106   :  { %v1047_v43 = vpop.f32.mrf.mxu3  ;;  %v2601_v42 = vld [vmem:[#allocation11 + $0xc4] sm:$0xf]  ;;  %1603 = vmatpush.bf16.msrb.mxu2 %v2328_v44 }
 0x107   :  { %v2389_v43 = vld [vmem:[#allocation11 + $0xc8] sm:$0xf0] }
 0x115   :  { %v1058_v6 = vpop.f32.mrf.mxu0 }
 0x116   :  { %v1071_v46 = vpop.f32.mrf.mxu1  ;;  %v1059_v7 = vadd.f32 %v1058_v6, %v1046_v5  ;;  %v2584_v5 = vld [vmem:[#allocation11 + $0x34] sm:$0xf0]  ;;  %v2583_v6 = vld [vmem:[#allocation11 + $0x34] sm:$0xf] }
 0x118   :  { %v1072_v35 = vadd.f32 %v1071_v46, %v1059_v7  ;;  %v2317_v46 = vld [vmem:[#allocation11 + $0x38] sm:$0xf0]  ;;  %v2388_v7 = vor.u32 %v2602_v41, %v2387_v39  ;;  %v1157_v39 = vperm.slane %v1154_v32, 1 }
 0x11a   :  { %1590 = vmatpush.bf16.msrb.mxu1 %v2388_v7 }
 0x11d   :  { %v1084_v40 = vpop.f32.mrf.mxu2  ;;  %v1060_v48 = vpop.f32.mrf.mxu0 }
 0x11e   :  { %v1085_v31 = vadd.f32 %v1084_v40, %v1072_v35  ;;  %v1097_v47 = vpop.f32.mrf.mxu3  ;;  %v1073_v49 = vpop.f32.mrf.mxu1  ;;  %v2392_v35 = vor.u32 %v2601_v42, %v2389_v43  ;;  %v2379_v40 = vld [vmem:[#allocation11 + $0xb0] sm:$0xf]  ;;  %v2381_v48 = vld [vmem:[#allocation11 + $0xb8] sm:$0xf0] }
 0x11f   :  { %v2320_v49 = vor.u32 %v2583_v6, %v2317_v46 }
 0x120   :  { %v1098_v50 = vadd.f32 %v1097_v47, %v1085_v31  ;;  %v2316_v31 = vor.u32 %v2584_v5, %v2315_v45  ;;  %v2600_v47 = vld [vmem:[#allocation11 + $0xb4] sm:$0xf0]  ;;  %1616 = vmatpush.bf16.msrb.mxu3 %v2392_v35  ;;  %v1408_v35 = vld [vmem:[%s2883_s6] sm:$0x3] }
 0x121   :  { %1604 = vmatpush.bf16.msrb.mxu2 %v2320_v49 }
 0x122   :  { %v1117_v51 = vadd.f32 %v1113_v36, %v1098_v50  ;;  %v2599_v36 = vld [vmem:[#allocation11 + $0xb4] sm:$0xf]  ;;  %v2307_v50 = vld [vmem:[#allocation11 + $0x20] sm:$0xf]  ;;  %1578 = vmatpush.bf16.msrb.mxu0 %v2316_v31  ;;  %v1410_v31 = vperm.slane %v1408_v35, 0 }
 0x123   :  { %v2384_v56 = vor.u32 %v2599_v36, %v2381_v48 }
 0x124   :  { %v1119_v52 = vmax.f32 %v1117_v51, 0.0  ;;  %v2582_v51 = vld [vmem:[#allocation11 + $0x24] sm:$0xf0] }
 0x125   :  { %v1086_v53 = vpop.f32.mrf.mxu2  ;;  %v2308_v58 = vor.u32 %v2582_v51, %v2307_v50  ;;  %1617 = vmatpush.bf16.msrb.mxu3 %v2384_v56  ;;  %v1411_v50 = vperm.slane %v1408_v35, 1 }
 0x126   :  { %v1121_v54 = vpack.c.bf16 %v1119_v52, %v1119_v52  ;;  %v1099_v55 = vpop.f32.mrf.mxu3  ;;  %v2581_v52 = vld [vmem:[#allocation11 + $0x24] sm:$0xf]  ;;  %v2309_v53 = vld [vmem:[#allocation11 + $0x28] sm:$0xf0] }
 0x127   :  { %v2380_v55 = vor.u32 %v2600_v47, %v2379_v40  ;;  %v2312_v59 = vor.u32 %v2581_v52, %v2309_v53  ;;  %1579 = vmatpush.bf16.msrb.mxu0 %v2308_v58 }
 0x128   :  { %1341 = vmatmul.bf16.vlgmr.msra.gmra.mxu1 %v1121_v54  ;;  %1367 = vmatmul.bf16.vlgmr.msra.gmra.mxu3 %v1121_v54 }
 0x129   :  { %1591 = vmatpush.bf16.msrb.mxu1 %v2380_v55  ;;  %1605 = vmatpush.bf16.msrb.mxu2 %v2312_v59 }
 0x12a   :  { %1618 = vmatpush.bf16.msrb.mxu3 %v2376_v12 }
 0x12b   :  { %1580 = vmatpush.bf16.msrb.mxu0 %v2300_v37 }
 0x12d   :  { %1606 = vmatpush.bf16.msrb.mxu2 %v2304_v3  ;;  %1592 = vmatpush.bf16.msrb.mxu1 %v2372_v10 }
 0x12e   :  { %1619 = vmatpush.bf16.msrb.mxu3 %v2368_v24 }
 0x12f   :  { %1581 = vmatpush.bf16.msrb.mxu0 %v2292_v16 }
 0x131   :  { %1607 = vmatpush.bf16.msrb.mxu2 %v2296_v18  ;;  %1593 = vmatpush.bf16.msrb.mxu1 %v2364_v22 }
 0x132   :  { %1620 = vmatpush.bf16.msrb.mxu3 %v2360_v30 }
 0x135   :  { %1594 = vmatpush.bf16.msrb.mxu1 %v2356_v28 }
 0x165   :  { %v1329_v54 = vpop.f32.mrf.mxu0 }
 0x166   :  { %v1330_v34 = vadd.f32 %v1329_v54, %v1156_v33 }
 0x16b   :  { %v1355_v60 = vpop.f32.mrf.mxu2 }
 0x16c   :  { %v1356_v42 = vadd.f32 %v1355_v60, %v1157_v39 }
 0x16d   :  { %v1331_v61 = vpop.f32.mrf.mxu0 }
 0x173   :  { %v1357_v62 = vpop.f32.mrf.mxu2 }
 0x1a5   :  { %v1342_v38 = vpop.f32.mrf.mxu1 }
 0x1a6   :  { %v1343_v57 = vadd.f32 %v1342_v38, %v1330_v34 }
 0x1a8   :  { %v1372_v41 = vmax.f32 %v1343_v57, 0.0 }
 0x1aa   :  { %v1374_v43 = vpack.c.bf16 %v1372_v41, %v1372_v41 }
 0x1ab   :  { %v1368_v44 = vpop.f32.mrf.mxu3 }
 0x1ac   :  { %v1369_v45 = vadd.f32 %v1368_v44, %v1356_v42  ;;  %1582 = vmatmul.bf16.vlgmr.msrb.gmra.mxu0 %v1374_v43  ;;  %1608 = vmatmul.bf16.vlgmr.msrb.gmra.mxu2 %v1374_v43 }
 0x1ad   :  { %v1344_v5 = vpop.f32.mrf.mxu1 }
 0x1ae   :  { %v1373_v6 = vmax.f32 %v1369_v45, 0.0 }
 0x1b0   :  { %v1375_v46 = vpack.c.bf16 %v1373_v6, %v1373_v6 }
 0x1b2   :  { %1595 = vmatmul.bf16.vlgmr.msrb.gmra.mxu1 %v1375_v46  ;;  %1621 = vmatmul.bf16.vlgmr.msrb.gmra.mxu3 %v1375_v46 }
 0x1b3   :  { %v1370_v7 = vpop.f32.mrf.mxu3 }
 0x229   :  { %v1583_v40 = vpop.f32.mrf.mxu0 }
 0x22a   :  { %v1584_v47 = vadd.f32 %v1583_v40, %v1410_v31 }
 0x22f   :  { %v1596_v36 = vpop.f32.mrf.mxu1  ;;  %v1609_v48 = vpop.f32.mrf.mxu2 }
 0x230   :  { %v1597_v49 = vadd.f32 %v1596_v36, %v1584_v47  ;;  %v1610_v53 = vadd.f32 %v1609_v48, %v1411_v50 }
 0x231   :  { %v1585_v51 = vpop.f32.mrf.mxu0 }
 0x232   :  { %v1626_v52 = vmax.f32 %v1597_v49, 0.0 }
 0x234   :  { %1628 = vst [vmem:[#allocation12] sm:$0xff] %v1626_v52 }
 0x235   :  { %v1622_v54 = vpop.f32.mrf.mxu3 }
 0x236   :  { %v1623_v55 = vadd.f32 %v1622_v54, %v1610_v53 }
 0x237   :  { %v1598_v56 = vpop.f32.mrf.mxu1  ;;  %v1611_v58 = vpop.f32.mrf.mxu2 }
 0x238   :  { %v1627_v59 = vmax.f32 %v1623_v55, 0.0 }
 0x23a   :  { %1629 = vst [vmem:[#allocation12 + $0x8] sm:$0xff] %v1627_v59 }
 0x23b   :  { %1640 = dma.vmem_to_hbm [thread:$0]  %s1636_s27, 256, %s1638_s30, [#allocation5]  }
 0x23d   :  { %v1624_v60 = vpop.f32.mrf.mxu3 }
 0x23e   :  { %2767 = dma.done.wait [#allocation5], 256  }
 0x23f   :  { %2768 = vsyncadd [#allocation5], 4294967040 }
 0x240   :  { %1645 = vsyncpa [#allocation4], 1 }
 0x241   :  { %1646 = vsyncpa [#allocation7], 1 }
 0x242   :  { %1647 = vsyncpa [#allocation10], 1 }
 0x243   :  { %1648 = vsyncpa [#allocation5], 1 }

// kernel: tpu_custom_call.1
= control target key start
LH: loop header
LB: loop body
LE: loop exit
PB: predicated region body
PF: predicated region fallthrough
CT: control target
= control target key end

     0   :  { %12 = vsyncpa [#allocation4], 0  ;;  %s2877_s0 = inlined_call_operand.hbm [shape: f32[8,1024], index: 0, kind: input, shape index: {}]   ;;  %s2878_s1 = inlined_call_operand.hbm [shape: bf16[1024,256], index: 1, kind: input, shape index: {}]   ;;  %s2879_s2 = inlined_call_operand.hbm [shape: f32[1,256], index: 2, kind: input, shape index: {}]   ;;  %s2880_s3 = inlined_call_operand.hbm [shape: bf16[256,256], index: 3, kind: input, shape index: {}]   ;;  %s2881_s4 = inlined_call_operand.vmem [shape: f32[1,256], index: 4, kind: input, shape index: {}]   ;;  %s2882_s5 = inlined_call_operand.hbm [shape: bf16[256,256], index: 5, kind: input, shape index: {}]   ;;  %s2883_s6 = inlined_call_operand.vmem [shape: f32[1,256], index: 6, kind: input, shape index: {}]   ;;  %s2884_s7 = inlined_call_operand.hbm [shape: f32[8,256], index: 7, kind: output, shape index: {}]  }
   0x1   :  { %13 = vsyncpa [#allocation7], 0 }
   0x2   :  { %14 = vsyncpa [#allocation10], 0  ;;  %s31_s26 = sshll.u32 %s2878_s1, 4  ;;  %s32_s26 = int_to_ptr.hbm [resolvable:$true] %s31_s26 }
   0x3   :  { %15 = vsyncpa [#allocation5], 0  ;;  %s2769_s27 = smov [#allocation6]   ;;  %s55_s8 = sshll.u32 %s2880_s3, 4  ;;  %s56_s8 = int_to_ptr.hbm [resolvable:$true] %s55_s8 }
   0x4   :  { %s33_s28 = sshll.u32 %s2769_s27, 4  ;;  %s2770_s9 = smov 128   ;;  %s34_s28 = int_to_ptr.vmem [resolvable:$true] %s33_s28 }
   0x5   :  { %s2771_s10 = smov 8   ;;  %s2772_s11 = smov [#allocation9]  }
   0x6   :  { %39 = dma.hbm_to_vmem [thread:$0]  %s32_s26, 16384, %s34_s28, [#allocation7], %s2770_s9, %s2770_s9, %s2771_s10  }
   0x7   :  { %s57_s12 = sshll.u32 %s2772_s11, 4  ;;  %s21_s15 = sshll.u32 %s2877_s0, 4  ;;  %s58_s12 = int_to_ptr.vmem [resolvable:$true] %s57_s12  ;;  %s22_s15 = int_to_ptr.hbm [resolvable:$true] %s21_s15 }
   0x8   :  { %63 = dma.hbm_to_vmem [thread:$0]  %s56_s8, 4096, %s58_s12, [#allocation10], %s2770_s9, %s2770_s9, %s2771_s10  }
   0x9   :  { %s45_s17 = sshll.u32 %s2879_s2, 4  ;;  %s2773_s18 = smov [#allocation3]   ;;  %s46_s17 = int_to_ptr.hbm [resolvable:$true] %s45_s17 }
   0xa   :  { %s23_s19 = sshll.u32 %s2773_s18, 4  ;;  %s2774_s3 = smov [#allocation8]   ;;  %s24_s19 = int_to_ptr.vmem [resolvable:$true] %s23_s19 }
   0xb   :  { %26 = dma.hbm_to_vmem [thread:$0]  %s22_s15, 1024, %s24_s19, [#allocation4]  }
   0xc   :  { %s47_s20 = sshll.u32 %s2774_s3, 4  ;;  %s70_s23 = sshll.u32 %s2882_s5, 4  ;;  %s48_s20 = int_to_ptr.vmem [resolvable:$true] %s47_s20  ;;  %s71_s23 = int_to_ptr.hbm [resolvable:$true] %s70_s23 }
   0xd   :  { %50 = dma.hbm_to_vmem [thread:$0]  %s46_s17, 32, %s48_s20, [#allocation7]  }
   0xe   :  { %s2775_s0 = smov [#allocation11]  }
   0xf   :  { %s72_s24 = sshll.u32 %s2775_s0, 4  ;;  %s73_s24 = int_to_ptr.vmem [resolvable:$true] %s72_s24 }
  0x10   :  { %78 = dma.hbm_to_vmem [thread:$0]  %s71_s23, 4096, %s73_s24, [#allocation10], %s2770_s9, %s2770_s9, %s2771_s10  }
  0x11   :  { %2761 = dma.done.wait [#allocation4], 1024  }
  0x12   :  { %2762 = vsyncadd [#allocation4], 4294966272 }
  0x13   :  { %2763 = dma.done.wait [#allocation7], 16416  }
  0x14   :  { %2764 = vsyncadd [#allocation7], 4294950880 }
  0x15   :  { %2765 = dma.done.wait [#allocation10], 8192  }
  0x16   :  { %2766 = vsyncadd [#allocation10], 4294959104  ;;  %v1707_v0 = vld [vmem:[#allocation6 + $0x70] sm:$0xf]  ;;  %v2432_v1 = vld [vmem:[#allocation6 + $0x74] sm:$0xf0] }
  0x17   :  { %v1771_v2 = vld [vmem:[#allocation6 + $0xf0] sm:$0xf]  ;;  %v1708_v3 = vor.u32 %v2432_v1, %v1707_v0  ;;  %v2448_v4 = vld [vmem:[#allocation6 + $0xf4] sm:$0xf0]  ;;  %v1699_v11 = vld [vmem:[#allocation6 + $0x60] sm:$0xf] }
  0x18   :  { %v1835_v5 = vld [vmem:[#allocation6 + $0x170] sm:$0xf]  ;;  %v2464_v6 = vld [vmem:[#allocation6 + $0x174] sm:$0xf0]  ;;  %v1772_v7 = vor.u32 %v2448_v4, %v1771_v2  ;;  %v2430_v13 = vld [vmem:[#allocation6 + $0x64] sm:$0xf0] }
  0x19   :  { %v1836_v8 = vor.u32 %v2464_v6, %v1835_v5  ;;  %v1899_v9 = vld [vmem:[#allocation6 + $0x1f0] sm:$0xf]  ;;  %v2480_v10 = vld [vmem:[#allocation6 + $0x1f4] sm:$0xf0]  ;;  %893 = vmatpush.bf16.msra.mxu0 %v1708_v3  ;;  %v1763_v14 = vld [vmem:[#allocation6 + $0xe0] sm:$0xf]  ;;  %v1700_v16 = vor.u32 %v2430_v13, %v1699_v11 }
  0x1a   :  { %v1900_v12 = vor.u32 %v2480_v10, %v1899_v9  ;;  %v2446_v15 = vld [vmem:[#allocation6 + $0xe4] sm:$0xf0]  ;;  %906 = vmatpush.bf16.msra.mxu1 %v1772_v7  ;;  %v1827_v18 = vld [vmem:[#allocation6 + $0x160] sm:$0xf]  ;;  %v1691_v23 = vld [vmem:[#allocation6 + $0x50] sm:$0xf] }
  0x1b   :  { %919 = vmatpush.bf16.msra.mxu2 %v1836_v8  ;;  %v1764_v17 = vor.u32 %v2446_v15, %v1763_v14  ;;  %v2462_v19 = vld [vmem:[#allocation6 + $0x164] sm:$0xf0]  ;;  %v1891_v20 = vld [vmem:[#allocation6 + $0x1e0] sm:$0xf]  ;;  %v2428_v24 = vld [vmem:[#allocation6 + $0x54] sm:$0xf0] }
  0x1c   :  { %932 = vmatpush.bf16.msra.mxu3 %v1900_v12  ;;  %v1828_v21 = vor.u32 %v2462_v19, %v1827_v18  ;;  %v2478_v22 = vld [vmem:[#allocation6 + $0x1e4] sm:$0xf0]  ;;  %v1755_v26 = vld [vmem:[#allocation6 + $0xd0] sm:$0xf]  ;;  %v2444_v27 = vld [vmem:[#allocation6 + $0xd4] sm:$0xf0]  ;;  %v1692_v29 = vor.u32 %v2428_v24, %v1691_v23 }
  0x1d   :  { %v1892_v25 = vor.u32 %v2478_v22, %v1891_v20  ;;  %v1819_v28 = vld [vmem:[#allocation6 + $0x150] sm:$0xf]  ;;  %894 = vmatpush.bf16.msra.mxu0 %v1700_v16  ;;  %v2460_v30 = vld [vmem:[#allocation6 + $0x154] sm:$0xf0]  ;;  %v1756_v33 = vor.u32 %v2444_v27, %v1755_v26  ;;  %v1683_v35 = vld [vmem:[#allocation6 + $0x40] sm:$0xf] }
  0x1e   :  { %v1883_v31 = vld [vmem:[#allocation6 + $0x1d0] sm:$0xf]  ;;  %v2476_v32 = vld [vmem:[#allocation6 + $0x1d4] sm:$0xf0]  ;;  %907 = vmatpush.bf16.msra.mxu1 %v1764_v17  ;;  %v1820_v34 = vor.u32 %v2460_v30, %v1819_v28  ;;  %v2426_v36 = vld [vmem:[#allocation6 + $0x44] sm:$0xf0] }
  0x1f   :  { %920 = vmatpush.bf16.msra.mxu2 %v1828_v21  ;;  %v1747_v37 = vld [vmem:[#allocation6 + $0xc0] sm:$0xf]  ;;  %v1884_v38 = vor.u32 %v2476_v32, %v1883_v31  ;;  %v2442_v39 = vld [vmem:[#allocation6 + $0xc4] sm:$0xf0]  ;;  %v1684_v44 = vor.u32 %v2426_v36, %v1683_v35  ;;  %v1675_v47 = vld [vmem:[#allocation6 + $0x30] sm:$0xf] }
  0x20   :  { %933 = vmatpush.bf16.msra.mxu3 %v1892_v25  ;;  %v1811_v40 = vld [vmem:[#allocation6 + $0x140] sm:$0xf]  ;;  %v2458_v41 = vld [vmem:[#allocation6 + $0x144] sm:$0xf0]  ;;  %v1748_v45 = vor.u32 %v2442_v39, %v1747_v37  ;;  %v2424_v48 = vld [vmem:[#allocation6 + $0x34] sm:$0xf0] }
  0x21   :  { %v1875_v42 = vld [vmem:[#allocation6 + $0x1c0] sm:$0xf]  ;;  %v2474_v43 = vld [vmem:[#allocation6 + $0x1c4] sm:$0xf0]  ;;  %895 = vmatpush.bf16.msra.mxu0 %v1692_v29  ;;  %v1812_v46 = vor.u32 %v2458_v41, %v1811_v40  ;;  %v1739_v49 = vld [vmem:[#allocation6 + $0xb0] sm:$0xf]  ;;  %v1676_v56 = vor.u32 %v2424_v48, %v1675_v47 }
  0x22   :  { %908 = vmatpush.bf16.msra.mxu1 %v1756_v33  ;;  %v1876_v50 = vor.u32 %v2474_v43, %v1875_v42  ;;  %v2440_v51 = vld [vmem:[#allocation6 + $0xb4] sm:$0xf0]  ;;  %v1803_v52 = vld [vmem:[#allocation6 + $0x130] sm:$0xf]  ;;  %v1667_v59 = vld [vmem:[#allocation6 + $0x20] sm:$0xf] }
  0x23   :  { %921 = vmatpush.bf16.msra.mxu2 %v1820_v34  ;;  %v2456_v53 = vld [vmem:[#allocation6 + $0x134] sm:$0xf0]  ;;  %v1867_v54 = vld [vmem:[#allocation6 + $0x1b0] sm:$0xf]  ;;  %v1740_v57 = vor.u32 %v2440_v51, %v1739_v49  ;;  %v2422_v60 = vld [vmem:[#allocation6 + $0x24] sm:$0xf0] }
  0x24   :  { %934 = vmatpush.bf16.msra.mxu3 %v1884_v38  ;;  %v2472_v55 = vld [vmem:[#allocation6 + $0x1b4] sm:$0xf0]  ;;  %v1804_v58 = vor.u32 %v2456_v53, %v1803_v52  ;;  %v1731_v61 = vld [vmem:[#allocation6 + $0xa0] sm:$0xf]  ;;  %v2438_v63 = vld [vmem:[#allocation6 + $0xa4] sm:$0xf0]  ;;  %v1668_v4 = vor.u32 %v2422_v60, %v1667_v59 }
  0x25   :  { %896 = vmatpush.bf16.msra.mxu0 %v1684_v44  ;;  %v1868_v62 = vor.u32 %v2472_v55, %v1867_v54  ;;  %v1795_v0 = vld [vmem:[#allocation6 + $0x120] sm:$0xf]  ;;  %v2454_v1 = vld [vmem:[#allocation6 + $0x124] sm:$0xf0]  ;;  %v1732_v5 = vor.u32 %v2438_v63, %v1731_v61  ;;  %v1659_v7 = vld [vmem:[#allocation6 + $0x10] sm:$0xf] }
  0x26   :  { %909 = vmatpush.bf16.msra.mxu1 %v1748_v45  ;;  %v1859_v2 = vld [vmem:[#allocation6 + $0x1a0] sm:$0xf]  ;;  %v2470_v3 = vld [vmem:[#allocation6 + $0x1a4] sm:$0xf0]  ;;  %v1796_v6 = vor.u32 %v2454_v1, %v1795_v0  ;;  %v2420_v8 = vld [vmem:[#allocation6 + $0x14] sm:$0xf0] }
  0x27   :  { %922 = vmatpush.bf16.msra.mxu2 %v1812_v46  ;;  %v1723_v9 = vld [vmem:[#allocation6 + $0x90] sm:$0xf]  ;;  %v1860_v10 = vor.u32 %v2470_v3, %v1859_v2  ;;  %v2436_v11 = vld [vmem:[#allocation6 + $0x94] sm:$0xf0]  ;;  %v1660_v16 = vor.u32 %v2420_v8, %v1659_v7  ;;  %v1651_v17 = vld [vmem:[#allocation6] sm:$0xf] }
  0x28   :  { %935 = vmatpush.bf16.msra.mxu3 %v1876_v50  ;;  %v1787_v12 = vld [vmem:[#allocation6 + $0x110] sm:$0xf]  ;;  %v2452_v13 = vld [vmem:[#allocation6 + $0x114] sm:$0xf0]  ;;  %v2418_v18 = vld [vmem:[#allocation6 + $0x4] sm:$0xf0]  ;;  %v1724_v19 = vor.u32 %v2436_v11, %v1723_v9 }
  0x29   :  { %897 = vmatpush.bf16.msra.mxu0 %v1676_v56  ;;  %v1851_v14 = vld [vmem:[#allocation6 + $0x190] sm:$0xf]  ;;  %v2468_v15 = vld [vmem:[#allocation6 + $0x194] sm:$0xf0]  ;;  %v1788_v20 = vor.u32 %v2452_v13, %v1787_v12  ;;  %v1715_v21 = vld [vmem:[#allocation6 + $0x80] sm:$0xf]  ;;  %v1652_v31 = vor.u32 %v2418_v18, %v1651_v17 }
  0x2a   :  { %910 = vmatpush.bf16.msra.mxu1 %v1740_v57  ;;  %v2434_v22 = vld [vmem:[#allocation6 + $0x84] sm:$0xf0]  ;;  %v1779_v23 = vld [vmem:[#allocation6 + $0x100] sm:$0xf]  ;;  %v1852_v24 = vor.u32 %v2468_v15, %v1851_v14  ;;  %v1963_v28 = vld [vmem:[#allocation6 + $0x270] sm:$0xf] }
  0x2b   :  { %923 = vmatpush.bf16.msra.mxu2 %v1804_v58  ;;  %v2450_v25 = vld [vmem:[#allocation6 + $0x104] sm:$0xf0]  ;;  %v1843_v26 = vld [vmem:[#allocation6 + $0x180] sm:$0xf]  ;;  %v2496_v29 = vld [vmem:[#allocation6 + $0x274] sm:$0xf0]  ;;  %v1716_v35 = vor.u32 %v2434_v22, %v1715_v21 }
  0x2c   :  { %936 = vmatpush.bf16.msra.mxu3 %v1868_v62  ;;  %v2466_v27 = vld [vmem:[#allocation6 + $0x184] sm:$0xf0]  ;;  %v2027_v30 = vld [vmem:[#allocation6 + $0x2f0] sm:$0xf]  ;;  %v2512_v32 = vld [vmem:[#allocation6 + $0x2f4] sm:$0xf0]  ;;  %v1780_v36 = vor.u32 %v2450_v25, %v1779_v23  ;;  %v1964_v40 = vor.u32 %v2496_v29, %v1963_v28 }
  0x2d   :  { %898 = vmatpush.bf16.msra.mxu0 %v1668_v4  ;;  %v2091_v33 = vld [vmem:[#allocation6 + $0x370] sm:$0xf]  ;;  %v2528_v34 = vld [vmem:[#allocation6 + $0x374] sm:$0xf0]  ;;  %v1844_v39 = vor.u32 %v2466_v27, %v1843_v26  ;;  %v2028_v41 = vor.u32 %v2512_v32, %v2027_v30  ;;  %v1955_v43 = vld [vmem:[#allocation6 + $0x260] sm:$0xf] }
  0x2e   :  { %911 = vmatpush.bf16.msra.mxu1 %v1732_v5  ;;  %v2155_v37 = vld [vmem:[#allocation6 + $0x3f0] sm:$0xf]  ;;  %v2544_v38 = vld [vmem:[#allocation6 + $0x3f4] sm:$0xf0]  ;;  %v2092_v42 = vor.u32 %v2528_v34, %v2091_v33  ;;  %v2494_v44 = vld [vmem:[#allocation6 + $0x264] sm:$0xf0] }
  0x2f   :  { %924 = vmatpush.bf16.msra.mxu2 %v1796_v6  ;;  %v2019_v45 = vld [vmem:[#allocation6 + $0x2e0] sm:$0xf]  ;;  %v2156_v46 = vor.u32 %v2544_v38, %v2155_v37  ;;  %v2510_v47 = vld [vmem:[#allocation6 + $0x2e4] sm:$0xf0]  ;;  %v111_v52 = vld [vmem:[#allocation3 + $0x10] sm:$0xff]  ;;  %v1956_v53 = vor.u32 %v2494_v44, %v1955_v43  ;;  %s2776_s26 = smov [#allocation12]  }
  0x30   :  { %937 = vmatpush.bf16.msra.mxu3 %v1860_v10  ;;  %v2083_v48 = vld [vmem:[#allocation6 + $0x360] sm:$0xf]  ;;  %v2526_v49 = vld [vmem:[#allocation6 + $0x364] sm:$0xf0]  ;;  %v1947_v54 = vld [vmem:[#allocation6 + $0x250] sm:$0xf]  ;;  %v2832_v57 = vpack.c.bf16 %v111_v52, %v111_v52  ;;  %v2020_v58 = vor.u32 %v2510_v47, %v2019_v45 }
  0x31   :  { %899 = vmatpush.bf16.msra.mxu0 %v1660_v16  ;;  %v2147_v50 = vld [vmem:[#allocation6 + $0x3e0] sm:$0xf]  ;;  %v2542_v51 = vld [vmem:[#allocation6 + $0x3e4] sm:$0xf0]  ;;  %v2492_v55 = vld [vmem:[#allocation6 + $0x254] sm:$0xf0]  ;;  %v2084_v59 = vor.u32 %v2526_v49, %v2083_v48 }
  0x32   :  { %912 = vmatpush.bf16.msra.mxu1 %v1724_v19  ;;  %v2011_v56 = vld [vmem:[#allocation6 + $0x2d0] sm:$0xf]  ;;  %v2508_v60 = vld [vmem:[#allocation6 + $0x2d4] sm:$0xf0]  ;;  %v2148_v63 = vor.u32 %v2542_v51, %v2147_v50  ;;  %v109_v0 = vld [vmem:[#allocation3] sm:$0xff]  ;;  %v1948_v8 = vor.u32 %v2492_v55, %v1947_v54  ;;  %s1635_s27 = sshll.u32 %s2776_s26, 4  ;;  %s1636_s27 = int_to_ptr.vmem [resolvable:$true] %s1635_s27 }
  0x33   :  { %925 = vmatpush.bf16.msra.mxu2 %v1788_v20  ;;  %v2075_v61 = vld [vmem:[#allocation6 + $0x350] sm:$0xf]  ;;  %v2524_v62 = vld [vmem:[#allocation6 + $0x354] sm:$0xf0]  ;;  %v110_v2 = vld [vmem:[#allocation3 + $0x8] sm:$0xff]  ;;  %v2835_v5 = vpack.c.bf16 %v109_v0, %v109_v0  ;;  %v2012_v9 = vor.u32 %v2508_v60, %v2011_v56  ;;  %s1637_s30 = sshll.u32 %s2884_s7, 4  ;;  %s1638_s30 = int_to_ptr.hbm [resolvable:$true] %s1637_s30 }
  0x34   :  { %938 = vmatpush.bf16.msra.mxu3 %v1852_v24  ;;  %v112_v1 = vld [vmem:[#allocation3 + $0x18] sm:$0xff]  ;;  %v2139_v3 = vld [vmem:[#allocation6 + $0x3d0] sm:$0xf]  ;;  %v2839_v7 = vpack.c.bf16 %v110_v2, %v110_v2  ;;  %v2076_v10 = vor.u32 %v2524_v62, %v2075_v61  ;;  %v1939_v11 = vld [vmem:[#allocation6 + $0x240] sm:$0xf] }
  0x35   :  { %900 = vmatpush.bf16.msra.mxu0 %v1652_v31  ;;  %v2540_v4 = vld [vmem:[#allocation6 + $0x3d4] sm:$0xf0]  ;;  %v2837_v6 = vpack.c.bf16 %v112_v1, %v112_v1  ;;  %v2490_v12 = vld [vmem:[#allocation6 + $0x244] sm:$0xf0]  ;;  %v2003_v13 = vld [vmem:[#allocation6 + $0x2c0] sm:$0xf] }
  0x36   :  { %913 = vmatpush.bf16.msra.mxu1 %v1716_v35  ;;  %v2140_v14 = vor.u32 %v2540_v4, %v2139_v3  ;;  %v2506_v15 = vld [vmem:[#allocation6 + $0x2c4] sm:$0xf0]  ;;  %v2067_v16 = vld [vmem:[#allocation6 + $0x340] sm:$0xf]  ;;  %v1940_v20 = vor.u32 %v2490_v12, %v1939_v11  ;;  %v1931_v23 = vld [vmem:[#allocation6 + $0x230] sm:$0xf] }
  0x37   :  { %926 = vmatpush.bf16.msra.mxu2 %v1780_v36  ;;  %v2522_v17 = vld [vmem:[#allocation6 + $0x344] sm:$0xf0]  ;;  %v2131_v18 = vld [vmem:[#allocation6 + $0x3c0] sm:$0xf]  ;;  %v2004_v21 = vor.u32 %v2506_v15, %v2003_v13  ;;  %v2488_v24 = vld [vmem:[#allocation6 + $0x234] sm:$0xf0] }
  0x38   :  { %939 = vmatpush.bf16.msra.mxu3 %v1844_v39  ;;  %901 = vmatmul.bf16.vlgmr.msra.gmra.mxu0 %v2835_v5  ;;  %v2538_v19 = vld [vmem:[#allocation6 + $0x3c4] sm:$0xf0]  ;;  %v2068_v22 = vor.u32 %v2522_v17, %v2067_v16  ;;  %v1995_v25 = vld [vmem:[#allocation6 + $0x2b0] sm:$0xf]  ;;  %v2504_v27 = vld [vmem:[#allocation6 + $0x2b4] sm:$0xf0]  ;;  %v1932_v32 = vor.u32 %v2488_v24, %v1931_v23 }
  0x39   :  { %945 = vmatpush.bf16.msrb.mxu0 %v1964_v40  ;;  %914 = vmatmul.bf16.vlgmr.msra.gmra.mxu1 %v2839_v7  ;;  %v2132_v26 = vor.u32 %v2538_v19, %v2131_v18  ;;  %v2059_v28 = vld [vmem:[#allocation6 + $0x330] sm:$0xf]  ;;  %v2520_v29 = vld [vmem:[#allocation6 + $0x334] sm:$0xf0]  ;;  %v1996_v33 = vor.u32 %v2504_v27, %v1995_v25  ;;  %v1923_v35 = vld [vmem:[#allocation6 + $0x220] sm:$0xf] }
  0x3a   :  { %958 = vmatpush.bf16.msrb.mxu1 %v2028_v41  ;;  %927 = vmatmul.bf16.vlgmr.msra.gmra.mxu2 %v2832_v57  ;;  %v2123_v30 = vld [vmem:[#allocation6 + $0x3b0] sm:$0xf]  ;;  %v2536_v31 = vld [vmem:[#allocation6 + $0x3b4] sm:$0xf0]  ;;  %v2060_v34 = vor.u32 %v2520_v29, %v2059_v28  ;;  %v2486_v36 = vld [vmem:[#allocation6 + $0x224] sm:$0xf0] }
  0x3b   :  { %971 = vmatpush.bf16.msrb.mxu2 %v2092_v42  ;;  %940 = vmatmul.bf16.vlgmr.msra.gmra.mxu3 %v2837_v6  ;;  %v1987_v37 = vld [vmem:[#allocation6 + $0x2a0] sm:$0xf]  ;;  %v2124_v38 = vor.u32 %v2536_v31, %v2123_v30  ;;  %v2502_v39 = vld [vmem:[#allocation6 + $0x2a4] sm:$0xf0]  ;;  %v1924_v44 = vor.u32 %v2486_v36, %v1923_v35  ;;  %v1915_v47 = vld [vmem:[#allocation6 + $0x210] sm:$0xf] }
  0x3c   :  { %984 = vmatpush.bf16.msrb.mxu3 %v2156_v46  ;;  %v2051_v40 = vld [vmem:[#allocation6 + $0x320] sm:$0xf]  ;;  %v2518_v41 = vld [vmem:[#allocation6 + $0x324] sm:$0xf0]  ;;  %v1988_v45 = vor.u32 %v2502_v39, %v1987_v37  ;;  %v2484_v48 = vld [vmem:[#allocation6 + $0x214] sm:$0xf0] }
  0x3d   :  { %946 = vmatpush.bf16.msrb.mxu0 %v1956_v53  ;;  %v2115_v42 = vld [vmem:[#allocation6 + $0x3a0] sm:$0xf]  ;;  %v2534_v43 = vld [vmem:[#allocation6 + $0x3a4] sm:$0xf0]  ;;  %v2052_v46 = vor.u32 %v2518_v41, %v2051_v40  ;;  %v1979_v49 = vld [vmem:[#allocation6 + $0x290] sm:$0xf]  ;;  %v1916_v56 = vor.u32 %v2484_v48, %v1915_v47 }
  0x3e   :  { %959 = vmatpush.bf16.msrb.mxu1 %v2020_v58  ;;  %v2116_v50 = vor.u32 %v2534_v43, %v2115_v42  ;;  %v2500_v51 = vld [vmem:[#allocation6 + $0x294] sm:$0xf0]  ;;  %v2043_v52 = vld [vmem:[#allocation6 + $0x310] sm:$0xf]  ;;  %v1907_v58 = vld [vmem:[#allocation6 + $0x200] sm:$0xf] }
  0x3f   :  { %972 = vmatpush.bf16.msrb.mxu2 %v2084_v59  ;;  %v2516_v53 = vld [vmem:[#allocation6 + $0x314] sm:$0xf0]  ;;  %v2107_v54 = vld [vmem:[#allocation6 + $0x390] sm:$0xf]  ;;  %v2482_v59 = vld [vmem:[#allocation6 + $0x204] sm:$0xf0]  ;;  %v1980_v60 = vor.u32 %v2500_v51, %v1979_v49 }
  0x40   :  { %985 = vmatpush.bf16.msrb.mxu3 %v2148_v63  ;;  %v2532_v55 = vld [vmem:[#allocation6 + $0x394] sm:$0xf0]  ;;  %v2044_v61 = vor.u32 %v2516_v53, %v2043_v52  ;;  %v1971_v62 = vld [vmem:[#allocation6 + $0x280] sm:$0xf]  ;;  %v2498_v63 = vld [vmem:[#allocation6 + $0x284] sm:$0xf0]  ;;  %v1908_v11 = vor.u32 %v2482_v59, %v1907_v58 }
  0x41   :  { %947 = vmatpush.bf16.msrb.mxu0 %v1948_v8  ;;  %v2035_v0 = vld [vmem:[#allocation6 + $0x300] sm:$0xf]  ;;  %v2108_v1 = vor.u32 %v2532_v55, %v2107_v54  ;;  %v2514_v2 = vld [vmem:[#allocation6 + $0x304] sm:$0xf0]  ;;  %v2431_v8 = vld [vmem:[#allocation6 + $0x74] sm:$0xf]  ;;  %v1972_v15 = vor.u32 %v2498_v63, %v1971_v62 }
  0x42   :  { %960 = vmatpush.bf16.msrb.mxu1 %v2012_v9  ;;  %v2099_v3 = vld [vmem:[#allocation6 + $0x380] sm:$0xf]  ;;  %v2530_v4 = vld [vmem:[#allocation6 + $0x384] sm:$0xf0]  ;;  %v1709_v9 = vld [vmem:[#allocation6 + $0x78] sm:$0xf0]  ;;  %v2036_v16 = vor.u32 %v2514_v2, %v2035_v0 }
  0x43   :  { %973 = vmatpush.bf16.msrb.mxu2 %v2076_v10  ;;  %v2447_v10 = vld [vmem:[#allocation6 + $0xf4] sm:$0xf]  ;;  %v1773_v12 = vld [vmem:[#allocation6 + $0xf8] sm:$0xf0]  ;;  %v2429_v24 = vld [vmem:[#allocation6 + $0x64] sm:$0xf] }
  0x44   :  { %986 = vmatpush.bf16.msrb.mxu3 %v2140_v14  ;;  %v2463_v13 = vld [vmem:[#allocation6 + $0x174] sm:$0xf]  ;;  %v1837_v14 = vld [vmem:[#allocation6 + $0x178] sm:$0xf0]  ;;  %v1776_v25 = vor.u32 %v2447_v10, %v1773_v12  ;;  %v1701_v27 = vld [vmem:[#allocation6 + $0x68] sm:$0xf0] }
  0x45   :  { %948 = vmatpush.bf16.msrb.mxu0 %v1940_v20  ;;  %v2479_v17 = vld [vmem:[#allocation6 + $0x1f4] sm:$0xf]  ;;  %v1901_v18 = vld [vmem:[#allocation6 + $0x1f8] sm:$0xf0]  ;;  %v2100_v20 = vor.u32 %v2530_v4, %v2099_v3  ;;  %v2445_v28 = vld [vmem:[#allocation6 + $0xe4] sm:$0xf]  ;;  %v1704_v39 = vor.u32 %v2429_v24, %v1701_v27 }
  0x46   :  { %961 = vmatpush.bf16.msrb.mxu1 %v2004_v21  ;;  %v115_v19 = vld [vmem:[#allocation3 + $0x30] sm:$0xff]  ;;  %v1712_v21 = vor.u32 %v2431_v8, %v1709_v9  ;;  %v116_v23 = vld [vmem:[#allocation3 + $0x38] sm:$0xff]  ;;  %v114_v29 = vld [vmem:[#allocation3 + $0x28] sm:$0xff]  ;;  %v1904_v30 = vor.u32 %v2479_v17, %v1901_v18 }
  0x47   :  { %974 = vmatpush.bf16.msrb.mxu2 %v2068_v22  ;;  %v113_v22 = vld [vmem:[#allocation3 + $0x20] sm:$0xff]  ;;  %v2844_v31 = vpack.c.bf16 %v115_v19, %v115_v19  ;;  %v2848_v36 = vpack.c.bf16 %v116_v23, %v116_v23  ;;  %v2850_v40 = vpack.c.bf16 %v114_v29, %v114_v29  ;;  %v2427_v43 = vld [vmem:[#allocation6 + $0x54] sm:$0xf]  ;;  %v1757_v47 = vld [vmem:[#allocation6 + $0xd8] sm:$0xf0] }
  0x48   :  { %987 = vmatpush.bf16.msrb.mxu3 %v2132_v26  ;;  %v1840_v26 = vor.u32 %v2463_v13, %v1837_v14  ;;  %v2846_v35 = vpack.c.bf16 %v113_v22, %v113_v22  ;;  %v2477_v37 = vld [vmem:[#allocation6 + $0x1e4] sm:$0xf]  ;;  %v2459_v48 = vld [vmem:[#allocation6 + $0x154] sm:$0xf]  ;;  %v1821_v49 = vld [vmem:[#allocation6 + $0x158] sm:$0xf0] }
  0x49   :  { %949 = vmatpush.bf16.msrb.mxu0 %v1932_v32  ;;  %v1765_v32 = vld [vmem:[#allocation6 + $0xe8] sm:$0xf0]  ;;  %v1885_v51 = vld [vmem:[#allocation6 + $0x1d8] sm:$0xf0]  ;;  %v1824_v54 = vor.u32 %v2459_v48, %v1821_v49  ;;  %v2425_v55 = vld [vmem:[#allocation6 + $0x44] sm:$0xf] }
  0x4a   :  { %962 = vmatpush.bf16.msrb.mxu1 %v1996_v33  ;;  %v2461_v33 = vld [vmem:[#allocation6 + $0x164] sm:$0xf]  ;;  %v1768_v41 = vor.u32 %v2445_v28, %v1765_v32  ;;  %v1813_v62 = vld [vmem:[#allocation6 + $0x148] sm:$0xf0]  ;;  %v2423_v4 = vld [vmem:[#allocation6 + $0x34] sm:$0xf] }
  0x4b   :  { %975 = vmatpush.bf16.msrb.mxu2 %v2060_v34  ;;  %v1829_v34 = vld [vmem:[#allocation6 + $0x168] sm:$0xf0]  ;;  %v2441_v58 = vld [vmem:[#allocation6 + $0xc4] sm:$0xf]  ;;  %v1677_v8 = vld [vmem:[#allocation6 + $0x38] sm:$0xf0] }
  0x4c   :  { %988 = vmatpush.bf16.msrb.mxu3 %v2124_v38  ;;  %v1893_v38 = vld [vmem:[#allocation6 + $0x1e8] sm:$0xf0]  ;;  %v1832_v42 = vor.u32 %v2461_v33, %v1829_v34  ;;  %v2473_v63 = vld [vmem:[#allocation6 + $0x1c4] sm:$0xf]  ;;  %v2439_v9 = vld [vmem:[#allocation6 + $0xb4] sm:$0xf] }
  0x4d   :  { %950 = vmatpush.bf16.msrb.mxu0 %v1924_v44  ;;  %v1693_v44 = vld [vmem:[#allocation6 + $0x58] sm:$0xf0]  ;;  %v1877_v0 = vld [vmem:[#allocation6 + $0x1c8] sm:$0xf0]  ;;  %v2455_v12 = vld [vmem:[#allocation6 + $0x134] sm:$0xf] }
  0x4e   :  { %963 = vmatpush.bf16.msrb.mxu1 %v1988_v45  ;;  %v2443_v45 = vld [vmem:[#allocation6 + $0xd4] sm:$0xf]  ;;  %v1696_v52 = vor.u32 %v2427_v43, %v1693_v44  ;;  %v1880_v10 = vor.u32 %v2473_v63, %v1877_v0  ;;  %v1805_v13 = vld [vmem:[#allocation6 + $0x138] sm:$0xf0]  ;;  %v2421_v19 = vld [vmem:[#allocation6 + $0x24] sm:$0xf] }
  0x4f   :  { %976 = vmatpush.bf16.msrb.mxu2 %v2052_v46  ;;  %v1896_v46 = vor.u32 %v2477_v37, %v1893_v38  ;;  %v1760_v53 = vor.u32 %v2443_v45, %v1757_v47  ;;  %v2471_v14 = vld [vmem:[#allocation6 + $0x1b4] sm:$0xf]  ;;  %v1808_v18 = vor.u32 %v2455_v12, %v1805_v13  ;;  %v1733_v23 = vld [vmem:[#allocation6 + $0xa8] sm:$0xf0]  ;;  %v2453_v24 = vld [vmem:[#allocation6 + $0x124] sm:$0xf] }
  0x50   :  { %989 = vmatpush.bf16.msrb.mxu3 %v2116_v50  ;;  %v2475_v50 = vld [vmem:[#allocation6 + $0x1d4] sm:$0xf]  ;;  %v1861_v27 = vld [vmem:[#allocation6 + $0x1a8] sm:$0xf0]  ;;  %v1661_v33 = vld [vmem:[#allocation6 + $0x18] sm:$0xf0] }
  0x51   :  { %951 = vmatpush.bf16.msrb.mxu0 %v1916_v56  ;;  %v1685_v56 = vld [vmem:[#allocation6 + $0x48] sm:$0xf0]  ;;  %v1888_v59 = vor.u32 %v2475_v50, %v1885_v51  ;;  %v2419_v32 = vld [vmem:[#allocation6 + $0x14] sm:$0xf]  ;;  %v1725_v38 = vld [vmem:[#allocation6 + $0x98] sm:$0xf0] }
  0x52   :  { %964 = vmatpush.bf16.msrb.mxu1 %v1980_v60  ;;  %v1749_v60 = vld [vmem:[#allocation6 + $0xc8] sm:$0xf0]  ;;  %v2435_v34 = vld [vmem:[#allocation6 + $0x94] sm:$0xf]  ;;  %v1853_v43 = vld [vmem:[#allocation6 + $0x198] sm:$0xf0]  ;;  %v1664_v44 = vor.u32 %v2419_v32, %v1661_v33 }
  0x53   :  { %977 = vmatpush.bf16.msrb.mxu2 %v2044_v61  ;;  %v2457_v61 = vld [vmem:[#allocation6 + $0x144] sm:$0xf]  ;;  %v1752_v2 = vor.u32 %v2441_v58, %v1749_v60  ;;  %v1728_v47 = vor.u32 %v2435_v34, %v1725_v38  ;;  %v1717_v50 = vld [vmem:[#allocation6 + $0x88] sm:$0xf0]  ;;  %v1965_v58 = vld [vmem:[#allocation6 + $0x278] sm:$0xf0] }
  0x54   :  { %990 = vmatpush.bf16.msrb.mxu3 %v2108_v1  ;;  %v1688_v1 = vor.u32 %v2425_v55, %v1685_v56  ;;  %v1816_v3 = vor.u32 %v2457_v61, %v1813_v62  ;;  %v2417_v45 = vld [vmem:[#allocation6 + $0x4] sm:$0xf]  ;;  %v1845_v55 = vld [vmem:[#allocation6 + $0x188] sm:$0xf0]  ;;  %v2495_v56 = vld [vmem:[#allocation6 + $0x274] sm:$0xf] }
  0x55   :  { %952 = vmatpush.bf16.msrb.mxu0 %v1908_v11  ;;  %v1741_v11 = vld [vmem:[#allocation6 + $0xb8] sm:$0xf0]  ;;  %v2433_v49 = vld [vmem:[#allocation6 + $0x84] sm:$0xf]  ;;  %v2527_v62 = vld [vmem:[#allocation6 + $0x374] sm:$0xf] }
  0x56   :  { %965 = vmatpush.bf16.msrb.mxu1 %v1972_v15  ;;  %v1869_v15 = vld [vmem:[#allocation6 + $0x1b8] sm:$0xf0]  ;;  %v1744_v17 = vor.u32 %v2439_v9, %v1741_v11  ;;  %v2449_v51 = vld [vmem:[#allocation6 + $0x104] sm:$0xf]  ;;  %v1720_v0 = vor.u32 %v2433_v49, %v1717_v50  ;;  %v1957_v12 = vld [vmem:[#allocation6 + $0x268] sm:$0xf0] }
  0x57   :  { %978 = vmatpush.bf16.msrb.mxu2 %v2036_v16  ;;  %v1680_v16 = vor.u32 %v2423_v4, %v1677_v8  ;;  %v1872_v22 = vor.u32 %v2471_v14, %v1869_v15  ;;  %v2029_v61 = vld [vmem:[#allocation6 + $0x2f8] sm:$0xf0]  ;;  %v1968_v8 = vor.u32 %v2495_v56, %v1965_v58  ;;  %v2493_v11 = vld [vmem:[#allocation6 + $0x264] sm:$0xf]  ;;  %v2021_v15 = vld [vmem:[#allocation6 + $0x2e8] sm:$0xf0] }
  0x58   :  { %991 = vmatpush.bf16.msrb.mxu3 %v2100_v20  ;;  %953 = vmatmul.bf16.vlgmr.msrb.gmra.mxu0 %v2846_v35  ;;  %v1669_v20 = vld [vmem:[#allocation6 + $0x28] sm:$0xf0]  ;;  %v2093_v63 = vld [vmem:[#allocation6 + $0x378] sm:$0xf0]  ;;  %v2509_v13 = vld [vmem:[#allocation6 + $0x2e4] sm:$0xf] }
  0x59   :  { %997 = vmatpush.bf16.msra.mxu0 %v1712_v21  ;;  %966 = vmatmul.bf16.vlgmr.msrb.gmra.mxu1 %v2850_v40  ;;  %v2437_v21 = vld [vmem:[#allocation6 + $0xa4] sm:$0xf]  ;;  %v1672_v28 = vor.u32 %v2421_v19, %v1669_v20  ;;  %v2149_v19 = vld [vmem:[#allocation6 + $0x3e8] sm:$0xf0]  ;;  %v1960_v20 = vor.u32 %v2493_v11, %v1957_v12  ;;  %v2141_v32 = vld [vmem:[#allocation6 + $0x3d8] sm:$0xf0] }
  0x5a   :  { %1010 = vmatpush.bf16.msra.mxu1 %v1776_v25  ;;  %979 = vmatmul.bf16.vlgmr.msrb.gmra.mxu2 %v2844_v31  ;;  %v1797_v25 = vld [vmem:[#allocation6 + $0x128] sm:$0xf0]  ;;  %v1736_v29 = vor.u32 %v2437_v21, %v1733_v23  ;;  %v2024_v21 = vor.u32 %v2509_v13, %v2021_v15  ;;  %v2491_v23 = vld [vmem:[#allocation6 + $0x254] sm:$0xf]  ;;  %v2489_v38 = vld [vmem:[#allocation6 + $0x244] sm:$0xf] }
  0x5b   :  { %1023 = vmatpush.bf16.msra.mxu2 %v1840_v26  ;;  %992 = vmatmul.bf16.vlgmr.msrb.gmra.mxu3 %v2848_v36  ;;  %v2469_v26 = vld [vmem:[#allocation6 + $0x1a4] sm:$0xf]  ;;  %v2503_v49 = vld [vmem:[#allocation6 + $0x2b4] sm:$0xf]  ;;  %v1917_v12 = vld [vmem:[#allocation6 + $0x218] sm:$0xf0] }
  0x5c   :  { %1036 = vmatpush.bf16.msra.mxu3 %v1904_v30  ;;  %v1800_v30 = vor.u32 %v2453_v24, %v1797_v25  ;;  %v1864_v37 = vor.u32 %v2469_v26, %v1861_v27  ;;  %v1949_v24 = vld [vmem:[#allocation6 + $0x258] sm:$0xf0]  ;;  %v2507_v25 = vld [vmem:[#allocation6 + $0x2d4] sm:$0xf] }
  0x5d   :  { %998 = vmatpush.bf16.msra.mxu0 %v1704_v39  ;;  %v2451_v39 = vld [vmem:[#allocation6 + $0x114] sm:$0xf]  ;;  %v2013_v27 = vld [vmem:[#allocation6 + $0x2d8] sm:$0xf0]  ;;  %v1952_v33 = vor.u32 %v2491_v23, %v1949_v24  ;;  %v2481_v23 = vld [vmem:[#allocation6 + $0x204] sm:$0xf] }
  0x5e   :  { %1011 = vmatpush.bf16.msra.mxu1 %v1768_v41  ;;  %v1789_v41 = vld [vmem:[#allocation6 + $0x118] sm:$0xf0]  ;;  %v2016_v34 = vor.u32 %v2507_v25, %v2013_v27  ;;  %v2483_v11 = vld [vmem:[#allocation6 + $0x214] sm:$0xf]  ;;  %v1909_v24 = vld [vmem:[#allocation6 + $0x208] sm:$0xf0] }
  0x5f   :  { %1024 = vmatpush.bf16.msra.mxu2 %v1832_v42  ;;  %v2467_v42 = vld [vmem:[#allocation6 + $0x194] sm:$0xf]  ;;  %v1792_v48 = vor.u32 %v2451_v39, %v1789_v41  ;;  %v1941_v39 = vld [vmem:[#allocation6 + $0x248] sm:$0xf0]  ;;  %v1981_v15 = vld [vmem:[#allocation6 + $0x298] sm:$0xf0] }
  0x60   :  { %1037 = vmatpush.bf16.msra.mxu3 %v1896_v46  ;;  %v1653_v46 = vld [vmem:[#allocation6 + $0x8] sm:$0xf0]  ;;  %v2499_v13 = vld [vmem:[#allocation6 + $0x294] sm:$0xf]  ;;  %v2497_v25 = vld [vmem:[#allocation6 + $0x284] sm:$0xf] }
  0x61   :  { %999 = vmatpush.bf16.msra.mxu0 %v1696_v52  ;;  %v1856_v52 = vor.u32 %v2467_v42, %v1853_v43  ;;  %v1656_v60 = vor.u32 %v2417_v45, %v1653_v46  ;;  %v2005_v42 = vld [vmem:[#allocation6 + $0x2c8] sm:$0xf0]  ;;  %v2521_v43 = vld [vmem:[#allocation6 + $0x344] sm:$0xf] }
  0x62   :  { %1012 = vmatpush.bf16.msra.mxu1 %v1760_v53  ;;  %v1781_v53 = vld [vmem:[#allocation6 + $0x108] sm:$0xf0]  ;;  %v2537_v45 = vld [vmem:[#allocation6 + $0x3c4] sm:$0xf] }
  0x63   :  { %1025 = vmatpush.bf16.msra.mxu2 %v1824_v54  ;;  %v2465_v54 = vld [vmem:[#allocation6 + $0x184] sm:$0xf]  ;;  %v1973_v27 = vld [vmem:[#allocation6 + $0x288] sm:$0xf0] }
  0x64   :  { %1038 = vmatpush.bf16.msra.mxu3 %v1888_v59  ;;  %v2511_v59 = vld [vmem:[#allocation6 + $0x2f4] sm:$0xf]  ;;  %v1848_v4 = vor.u32 %v2465_v54, %v1845_v55  ;;  %v2125_v55 = vld [vmem:[#allocation6 + $0x3b8] sm:$0xf0] }
  0x65   :  { %1000 = vmatpush.bf16.msra.mxu0 %v1688_v1  ;;  %v1784_v1 = vor.u32 %v2449_v51, %v1781_v53  ;;  %v2032_v9 = vor.u32 %v2511_v59, %v2029_v61  ;;  %v1997_v51 = vld [vmem:[#allocation6 + $0x2b8] sm:$0xf0]  ;;  %v2535_v54 = vld [vmem:[#allocation6 + $0x3b4] sm:$0xf]  ;;  %v1925_v61 = vld [vmem:[#allocation6 + $0x228] sm:$0xf0] }
  0x66   :  { %1013 = vmatpush.bf16.msra.mxu1 %v1752_v2  ;;  %v2543_v2 = vld [vmem:[#allocation6 + $0x3f4] sm:$0xf]  ;;  %v2061_v53 = vld [vmem:[#allocation6 + $0x338] sm:$0xf0]  ;;  %v2000_v58 = vor.u32 %v2503_v49, %v1997_v51  ;;  %v2554_v51 = vld [vmem:[#allocation9 + $0x44] sm:$0xf0] }
  0x67   :  { %1026 = vmatpush.bf16.msra.mxu2 %v1816_v3  ;;  %v2157_v3 = vld [vmem:[#allocation6 + $0x3f8] sm:$0xf0] }
  0x68   :  { %1039 = vmatpush.bf16.msra.mxu3 %v1880_v10  ;;  %v2096_v10 = vor.u32 %v2527_v62, %v2093_v63  ;;  %v2160_v14 = vor.u32 %v2543_v2, %v2157_v3  ;;  %v2501_v62 = vld [vmem:[#allocation6 + $0x2a4] sm:$0xf]  ;;  %v2128_v63 = vor.u32 %v2535_v54, %v2125_v55  ;;  %v2053_v2 = vld [vmem:[#allocation6 + $0x328] sm:$0xf0] }
  0x69   :  { %1001 = vmatpush.bf16.msra.mxu0 %v1680_v16  ;;  %v2525_v16 = vld [vmem:[#allocation6 + $0x364] sm:$0xf]  ;;  %v2197_v54 = vld [vmem:[#allocation9 + $0x48] sm:$0xf0] }
  0x6a   :  { %1014 = vmatpush.bf16.msra.mxu1 %v1744_v17  ;;  %v2085_v17 = vld [vmem:[#allocation6 + $0x368] sm:$0xf0]  ;;  %v2533_v3 = vld [vmem:[#allocation6 + $0x3a4] sm:$0xf] }
  0x6b   :  { %1027 = vmatpush.bf16.msra.mxu2 %v1808_v18  ;;  %v2541_v18 = vld [vmem:[#allocation6 + $0x3e4] sm:$0xf] }
  0x6c   :  { %1040 = vmatpush.bf16.msra.mxu3 %v1872_v22  ;;  %v2088_v22 = vor.u32 %v2525_v16, %v2085_v17  ;;  %v2152_v26 = vor.u32 %v2541_v18, %v2149_v19  ;;  %v2515_v16 = vld [vmem:[#allocation6 + $0x314] sm:$0xf]  ;;  %v2045_v17 = vld [vmem:[#allocation6 + $0x318] sm:$0xf0] }
  0x6d   :  { %1002 = vmatpush.bf16.msra.mxu0 %v1672_v28  ;;  %v2523_v28 = vld [vmem:[#allocation6 + $0x354] sm:$0xf]  ;;  %v2109_v19 = vld [vmem:[#allocation6 + $0x398] sm:$0xf0] }
  0x6e   :  { %1015 = vmatpush.bf16.msra.mxu1 %v1736_v29  ;;  %v2077_v29 = vld [vmem:[#allocation6 + $0x358] sm:$0xf0]  ;;  %v2531_v18 = vld [vmem:[#allocation6 + $0x394] sm:$0xf] }
  0x6f   :  { %1028 = vmatpush.bf16.msra.mxu2 %v1800_v30  ;;  %v2539_v30 = vld [vmem:[#allocation6 + $0x3d4] sm:$0xf] }
  0x70   :  { %1041 = vmatpush.bf16.msra.mxu3 %v1864_v37  ;;  %v2080_v37 = vor.u32 %v2523_v28, %v2077_v29  ;;  %v2144_v41 = vor.u32 %v2539_v30, %v2141_v32  ;;  %v2513_v28 = vld [vmem:[#allocation6 + $0x304] sm:$0xf]  ;;  %v2037_v29 = vld [vmem:[#allocation6 + $0x308] sm:$0xf0] }
  0x71   :  { %1003 = vmatpush.bf16.msra.mxu0 %v1664_v44  ;;  %v2069_v44 = vld [vmem:[#allocation6 + $0x348] sm:$0xf0]  ;;  %v2529_v30 = vld [vmem:[#allocation6 + $0x384] sm:$0xf] }
  0x72   :  { %1016 = vmatpush.bf16.msra.mxu1 %v1728_v47  ;;  %v2487_v47 = vld [vmem:[#allocation6 + $0x234] sm:$0xf]  ;;  %v2101_v32 = vld [vmem:[#allocation6 + $0x388] sm:$0xf0] }
  0x73   :  { %1029 = vmatpush.bf16.msra.mxu2 %v1792_v48  ;;  %v1933_v48 = vld [vmem:[#allocation6 + $0x238] sm:$0xf0] }
  0x74   :  { %1042 = vmatpush.bf16.msra.mxu3 %v1856_v52  ;;  %v2519_v52 = vld [vmem:[#allocation6 + $0x334] sm:$0xf]  ;;  %v1936_v56 = vor.u32 %v2487_v47, %v1933_v48  ;;  %v2205_v48 = vld [vmem:[#allocation9 + $0x58] sm:$0xf0] }
  0x75   :  { %1004 = vmatpush.bf16.msra.mxu0 %v1656_v60  ;;  %v2064_v59 = vor.u32 %v2519_v52, %v2061_v53  ;;  %v2485_v60 = vld [vmem:[#allocation6 + $0x224] sm:$0xf]  ;;  %v2555_v47 = vld [vmem:[#allocation9 + $0x54] sm:$0xf] }
  0x76   :  { %1017 = vmatpush.bf16.msra.mxu1 %v1720_v0  ;;  %v1989_v0 = vld [vmem:[#allocation6 + $0x2a8] sm:$0xf0]  ;;  %v2208_v49 = vor.u32 %v2555_v47, %v2205_v48  ;;  %v2553_v52 = vld [vmem:[#allocation9 + $0x44] sm:$0xf]  ;;  %v2275_v47 = vld [vmem:[#allocation9 + $0xe0] sm:$0xf] }
  0x77   :  { %1030 = vmatpush.bf16.msra.mxu2 %v1784_v1  ;;  %v2517_v1 = vld [vmem:[#allocation6 + $0x324] sm:$0xf]  ;;  %v2200_v55 = vor.u32 %v2553_v52, %v2197_v54  ;;  %v2267_v52 = vld [vmem:[#allocation9 + $0xd0] sm:$0xf] }
  0x78   :  { %1043 = vmatpush.bf16.msra.mxu3 %v1848_v4  ;;  %1005 = vmatmul.bf16.vlgmr.msra.gmra.mxu0 %v2835_v5  ;;  %v2133_v5 = vld [vmem:[#allocation6 + $0x3c8] sm:$0xf0]  ;;  %v2573_v48 = vld [vmem:[#allocation9 + $0xe4] sm:$0xf] }
  0x79   :  { %1049 = vmatpush.bf16.msrb.mxu0 %v1968_v8  ;;  %1018 = vmatmul.bf16.vlgmr.msra.gmra.mxu1 %v2839_v7  ;;  %v2072_v7 = vor.u32 %v2521_v43, %v2069_v44  ;;  %v2136_v50 = vor.u32 %v2537_v45, %v2133_v5  ;;  %v2117_v4 = vld [vmem:[#allocation6 + $0x3a8] sm:$0xf0]  ;;  %v1928_v8 = vor.u32 %v2485_v60, %v1925_v61  ;;  %v2221_v43 = vld [vmem:[#allocation9 + $0x78] sm:$0xf0]  ;;  %v2211_v45 = vld [vmem:[#allocation9 + $0x60] sm:$0xf] }
  0x7a   :  { %1062 = vmatpush.bf16.msrb.mxu1 %v2032_v9  ;;  %1031 = vmatmul.bf16.vlgmr.msra.gmra.mxu2 %v2832_v57  ;;  %v2505_v57 = vld [vmem:[#allocation6 + $0x2c4] sm:$0xf]  ;;  %v1992_v9 = vor.u32 %v2501_v62, %v1989_v0  ;;  %v2558_v5 = vld [vmem:[#allocation9 + $0x64] sm:$0xf0]  ;;  %v2189_v61 = vld [vmem:[#allocation9 + $0x38] sm:$0xf0] }
  0x7b   :  { %1075 = vmatpush.bf16.msrb.mxu2 %v2096_v10  ;;  %1044 = vmatmul.bf16.vlgmr.msra.gmra.mxu3 %v2837_v6  ;;  %v1944_v6 = vor.u32 %v2489_v38, %v1941_v39  ;;  %v2008_v46 = vor.u32 %v2505_v57, %v2005_v42  ;;  %v2056_v10 = vor.u32 %v2517_v1, %v2053_v2  ;;  %v2219_v39 = vld [vmem:[#allocation9 + $0x70] sm:$0xf]  ;;  %v2560_v57 = vld [vmem:[#allocation9 + $0x74] sm:$0xf0]  ;;  %v2179_v0 = vld [vmem:[#allocation9 + $0x20] sm:$0xf] }
  0x7c   :  { %1088 = vmatpush.bf16.msrb.mxu3 %v2160_v14  ;;  %v2120_v14 = vor.u32 %v2533_v3, %v2117_v4  ;;  %v2104_v38 = vor.u32 %v2529_v30, %v2101_v32  ;;  %v2220_v42 = vor.u32 %v2560_v57, %v2219_v39  ;;  %v2550_v1 = vld [vmem:[#allocation9 + $0x24] sm:$0xf0]  ;;  %v2549_v2 = vld [vmem:[#allocation9 + $0x24] sm:$0xf] }
  0x7d   :  { %1050 = vmatpush.bf16.msrb.mxu0 %v1960_v20  ;;  %v1920_v20 = vor.u32 %v2483_v11, %v1917_v12  ;;  %v2180_v4 = vor.u32 %v2550_v1, %v2179_v0  ;;  %v2171_v11 = vld [vmem:[#allocation9 + $0x10] sm:$0xf]  ;;  %v2548_v12 = vld [vmem:[#allocation9 + $0x14] sm:$0xf0]  ;;  %v2570_v0 = vld [vmem:[#allocation9 + $0xc4] sm:$0xf0] }
  0x7e   :  { %1063 = vmatpush.bf16.msrb.mxu1 %v2024_v21  ;;  %v1984_v21 = vor.u32 %v2499_v13, %v1981_v15  ;;  %v2172_v13 = vor.u32 %v2548_v12, %v2171_v11  ;;  %v2173_v15 = vld [vmem:[#allocation9 + $0x18] sm:$0xf0]  ;;  %v2569_v1 = vld [vmem:[#allocation9 + $0xc4] sm:$0xf] }
  0x7f   :  { %1076 = vmatpush.bf16.msrb.mxu2 %v2088_v22  ;;  %v2048_v22 = vor.u32 %v2515_v16, %v2045_v17  ;;  %v2253_v12 = vld [vmem:[#allocation9 + $0xb8] sm:$0xf0] }
  0x80   :  { %1089 = vmatpush.bf16.msrb.mxu3 %v2152_v26  ;;  %v2112_v26 = vor.u32 %v2531_v18, %v2109_v19  ;;  %v2163_v19 = vld [vmem:[#allocation9] sm:$0xf] }
  0x81   :  { %1051 = vmatpush.bf16.msrb.mxu0 %v1952_v33  ;;  %v1912_v33 = vor.u32 %v2481_v23, %v1909_v24  ;;  %v2165_v24 = vld [vmem:[#allocation9 + $0x8] sm:$0xf0] }
  0x82   :  { %1064 = vmatpush.bf16.msrb.mxu1 %v2016_v34  ;;  %v1976_v34 = vor.u32 %v2497_v25, %v1973_v27 }
  0x83   :  { %1077 = vmatpush.bf16.msrb.mxu2 %v2080_v37  ;;  %v2040_v37 = vor.u32 %v2513_v28, %v2037_v29 }
  0x84   :  { %1090 = vmatpush.bf16.msrb.mxu3 %v2144_v41  ;;  %v2559_v41 = vld [vmem:[#allocation9 + $0x74] sm:$0xf] }
  0x85   :  { %1052 = vmatpush.bf16.msrb.mxu0 %v1944_v6  ;;  %v2224_v44 = vor.u32 %v2559_v41, %v2221_v43  ;;  %v2557_v6 = vld [vmem:[#allocation9 + $0x64] sm:$0xf]  ;;  %v2283_v43 = vld [vmem:[#allocation9 + $0xf0] sm:$0xf] }
  0x86   :  { %1065 = vmatpush.bf16.msrb.mxu1 %v2008_v46  ;;  %v2212_v46 = vor.u32 %v2558_v5, %v2211_v45  ;;  %v2575_v45 = vld [vmem:[#allocation9 + $0xf4] sm:$0xf] }
  0x87   :  { %1078 = vmatpush.bf16.msrb.mxu2 %v2072_v7  ;;  %v2213_v7 = vld [vmem:[#allocation9 + $0x68] sm:$0xf0] }
  0x88   :  { %1091 = vmatpush.bf16.msrb.mxu3 %v2136_v50  ;;  %v2195_v50 = vld [vmem:[#allocation9 + $0x40] sm:$0xf] }
  0x89   :  { %1053 = vmatpush.bf16.msrb.mxu0 %v1936_v56  ;;  %v2196_v53 = vor.u32 %v2554_v51, %v2195_v50  ;;  %v2187_v56 = vld [vmem:[#allocation9 + $0x30] sm:$0xf]  ;;  %v2277_v51 = vld [vmem:[#allocation9 + $0xe8] sm:$0xf0] }
  0x8a   :  { %1066 = vmatpush.bf16.msrb.mxu1 %v2000_v58  ;;  %v2552_v58 = vld [vmem:[#allocation9 + $0x34] sm:$0xf0]  ;;  %v2280_v54 = vor.u32 %v2573_v48, %v2277_v51 }
  0x8b   :  { %1079 = vmatpush.bf16.msrb.mxu2 %v2064_v59  ;;  %v2551_v59 = vld [vmem:[#allocation9 + $0x34] sm:$0xf]  ;;  %v2188_v60 = vor.u32 %v2552_v58, %v2187_v56  ;;  %v2269_v58 = vld [vmem:[#allocation9 + $0xd8] sm:$0xf0] }
  0x8c   :  { %1092 = vmatpush.bf16.msrb.mxu3 %v2128_v63  ;;  %v2192_v62 = vor.u32 %v2551_v59, %v2189_v61  ;;  %v2571_v56 = vld [vmem:[#allocation9 + $0xd4] sm:$0xf] }
  0x8d   :  { %1054 = vmatpush.bf16.msrb.mxu0 %v1928_v8  ;;  %v2181_v8 = vld [vmem:[#allocation9 + $0x28] sm:$0xf0] }
  0x8e   :  { %1067 = vmatpush.bf16.msrb.mxu1 %v1992_v9 }
  0x8f   :  { %1080 = vmatpush.bf16.msrb.mxu2 %v2056_v10  ;;  %v2184_v10 = vor.u32 %v2549_v2, %v2181_v8  ;;  %v2261_v2 = vld [vmem:[#allocation9 + $0xc8] sm:$0xf0]  ;;  %v2251_v8 = vld [vmem:[#allocation9 + $0xb0] sm:$0xf] }
  0x90   :  { %1093 = vmatpush.bf16.msrb.mxu3 %v2120_v14  ;;  %v2547_v14 = vld [vmem:[#allocation9 + $0x14] sm:$0xf] }
  0x91   :  { %1055 = vmatpush.bf16.msrb.mxu0 %v1920_v20  ;;  %v2176_v16 = vor.u32 %v2547_v14, %v2173_v15  ;;  %v2546_v20 = vld [vmem:[#allocation9 + $0x4] sm:$0xf0] }
  0x92   :  { %1068 = vmatpush.bf16.msrb.mxu1 %v1984_v21  ;;  %v2545_v21 = vld [vmem:[#allocation9 + $0x4] sm:$0xf]  ;;  %v2164_v23 = vor.u32 %v2546_v20, %v2163_v19  ;;  %v2245_v20 = vld [vmem:[#allocation9 + $0xa8] sm:$0xf0] }
  0x93   :  { %1081 = vmatpush.bf16.msrb.mxu2 %v2048_v22 }
  0x94   :  { %1094 = vmatpush.bf16.msrb.mxu3 %v2112_v26  ;;  %v2168_v26 = vor.u32 %v2545_v21, %v2165_v24  ;;  %v2564_v24 = vld [vmem:[#allocation9 + $0x94] sm:$0xf0] }
  0x95   :  { %1056 = vmatpush.bf16.msrb.mxu0 %v1912_v33 }
  0x96   :  { %1069 = vmatpush.bf16.msrb.mxu1 %v1976_v34 }
  0x97   :  { %1082 = vmatpush.bf16.msrb.mxu2 %v2040_v37  ;;  %v2864_v37 = vld [vmem:[#allocation8] sm:$0x3] }
  0x98   :  { %1095 = vmatpush.bf16.msrb.mxu3 %v2104_v38  ;;  %1057 = vmatmul.bf16.vlgmr.msrb.gmra.mxu0 %v2846_v35  ;;  %v2216_v35 = vor.u32 %v2557_v6, %v2213_v7  ;;  %v1112_v57 = vperm.slane %v2864_v37, 0  ;;  %v2285_v6 = vld [vmem:[#allocation9 + $0xf8] sm:$0xf0] }
  0x99   :  { %1070 = vmatmul.bf16.vlgmr.msrb.gmra.mxu1 %v2850_v40  ;;  %1320 = vmatpush.bf16.msra.mxu0 %v2220_v42  ;;  %v2203_v40 = vld [vmem:[#allocation9 + $0x50] sm:$0xf] }
  0x9a   :  { %1083 = vmatmul.bf16.vlgmr.msrb.gmra.mxu2 %v2844_v31  ;;  %v2556_v31 = vld [vmem:[#allocation9 + $0x54] sm:$0xf0] }
  0x9b   :  { %1096 = vmatmul.bf16.vlgmr.msrb.gmra.mxu3 %v2848_v36  ;;  %1346 = vmatpush.bf16.msra.mxu2 %v2224_v44  ;;  %v2204_v36 = vor.u32 %v2556_v31, %v2203_v40  ;;  %v2576_v44 = vld [vmem:[#allocation9 + $0xf4] sm:$0xf0] }
  0x9c   :  { %v2284_v5 = vor.u32 %v2576_v44, %v2283_v43 }
  0x9d   :  { %1321 = vmatpush.bf16.msra.mxu0 %v2212_v46 }
  0x9e   :  { %1333 = vmatpush.bf16.msra.mxu1 %v2284_v5 }
  0x9f   :  { %1347 = vmatpush.bf16.msra.mxu2 %v2216_v35  ;;  %v2288_v35 = vor.u32 %v2575_v45, %v2285_v6 }
  0xa1   :  { %1322 = vmatpush.bf16.msra.mxu0 %v2204_v36  ;;  %1359 = vmatpush.bf16.msra.mxu3 %v2288_v35  ;;  %v2574_v36 = vld [vmem:[#allocation9 + $0xe4] sm:$0xf0] }
  0xa2   :  { %v2276_v50 = vor.u32 %v2574_v36, %v2275_v47  ;;  %v1113_v36 = vperm.slane %v2864_v37, 1  ;;  %v2341_v37 = vld [vmem:[#allocation11 + $0x68] sm:$0xf0] }
  0xa3   :  { %1348 = vmatpush.bf16.msra.mxu2 %v2208_v49 }
  0xa4   :  { %1334 = vmatpush.bf16.msra.mxu1 %v2276_v50 }
  0xa5   :  { %1323 = vmatpush.bf16.msra.mxu0 %v2196_v53  ;;  %1360 = vmatpush.bf16.msra.mxu3 %v2280_v54 }
  0xa7   :  { %1349 = vmatpush.bf16.msra.mxu2 %v2200_v55  ;;  %v2572_v55 = vld [vmem:[#allocation9 + $0xd4] sm:$0xf0] }
  0xa8   :  { %v2268_v61 = vor.u32 %v2572_v55, %v2267_v52 }
  0xa9   :  { %1324 = vmatpush.bf16.msra.mxu0 %v2188_v60 }
  0xaa   :  { %1335 = vmatpush.bf16.msra.mxu1 %v2268_v61  ;;  %v2349_v61 = vld [vmem:[#allocation11 + $0x78] sm:$0xf0] }
  0xab   :  { %1350 = vmatpush.bf16.msra.mxu2 %v2192_v62  ;;  %v2272_v62 = vor.u32 %v2571_v56, %v2269_v58  ;;  %v2347_v56 = vld [vmem:[#allocation11 + $0x70] sm:$0xf]  ;;  %v2592_v58 = vld [vmem:[#allocation11 + $0x74] sm:$0xf0] }
  0xad   :  { %1325 = vmatpush.bf16.msra.mxu0 %v2180_v4  ;;  %1361 = vmatpush.bf16.msra.mxu3 %v2272_v62  ;;  %v2264_v4 = vor.u32 %v2569_v1, %v2261_v2  ;;  %v2339_v62 = vld [vmem:[#allocation11 + $0x60] sm:$0xf]  ;;  %v2589_v1 = vld [vmem:[#allocation11 + $0x64] sm:$0xf]  ;;  %v2411_v2 = vld [vmem:[#allocation11 + $0xf0] sm:$0xf] }
  0xaf   :  { %1351 = vmatpush.bf16.msra.mxu2 %v2184_v10  ;;  %v2567_v10 = vld [vmem:[#allocation9 + $0xb4] sm:$0xf] }
  0xb1   :  { %1326 = vmatpush.bf16.msra.mxu0 %v2172_v13  ;;  %1362 = vmatpush.bf16.msra.mxu3 %v2264_v4  ;;  %v2256_v13 = vor.u32 %v2567_v10, %v2253_v12  ;;  %v2608_v4 = vld [vmem:[#allocation11 + $0xf4] sm:$0xf0]  ;;  %v2344_v10 = vor.u32 %v2589_v1, %v2341_v37  ;;  %v2579_v1 = vld [vmem:[#allocation11 + $0x14] sm:$0xf] }
  0xb3   :  { %1352 = vmatpush.bf16.msra.mxu2 %v2176_v16  ;;  %v2243_v16 = vld [vmem:[#allocation9 + $0xa0] sm:$0xf] }
  0xb5   :  { %v902_v63 = vpop.f32.mrf.mxu0  ;;  %1327 = vmatpush.bf16.msra.mxu0 %v2164_v23  ;;  %1363 = vmatpush.bf16.msra.mxu3 %v2256_v13  ;;  %v2235_v23 = vld [vmem:[#allocation9 + $0x90] sm:$0xf] }
  0xb6   :  { %v915_v3 = vpop.f32.mrf.mxu1  ;;  %v2331_v13 = vld [vmem:[#allocation11 + $0x50] sm:$0xf] }
  0xb7   :  { %1353 = vmatpush.bf16.msra.mxu2 %v2168_v26  ;;  %v916_v28 = vadd.f32 %v915_v3, %v902_v63  ;;  %v2259_v63 = vld [vmem:[#allocation9 + $0xc0] sm:$0xf] }
  0xb8   :  { %v2260_v3 = vor.u32 %v2570_v0, %v2259_v63  ;;  %v2590_v63 = vld [vmem:[#allocation11 + $0x64] sm:$0xf0] }
  0xba   :  { %1336 = vmatpush.bf16.msra.mxu1 %v2260_v3  ;;  %v2340_v3 = vor.u32 %v2590_v63, %v2339_v62  ;;  %v2299_v63 = vld [vmem:[#allocation11 + $0x10] sm:$0xf] }
  0xbd   :  { %v928_v9 = vpop.f32.mrf.mxu2  ;;  %v904_v18 = vpop.f32.mrf.mxu0 }
  0xbe   :  { %v941_v17 = vpop.f32.mrf.mxu3  ;;  %v917_v22 = vpop.f32.mrf.mxu1  ;;  %v929_v29 = vadd.f32 %v928_v9, %v916_v28  ;;  %v2568_v9 = vld [vmem:[#allocation9 + $0xb4] sm:$0xf0]  ;;  %v2565_v18 = vld [vmem:[#allocation9 + $0xa4] sm:$0xf]  ;;  %v2237_v28 = vld [vmem:[#allocation9 + $0x98] sm:$0xf0] }
  0xbf   :  { %v2252_v11 = vor.u32 %v2568_v9, %v2251_v8  ;;  %v2248_v21 = vor.u32 %v2565_v18, %v2245_v20  ;;  %v2607_v8 = vld [vmem:[#allocation11 + $0xf4] sm:$0xf]  ;;  %v2413_v9 = vld [vmem:[#allocation11 + $0xf8] sm:$0xf0]  ;;  %v2606_v18 = vld [vmem:[#allocation11 + $0xe4] sm:$0xf0] }
  0xc0   :  { %v942_v30 = vadd.f32 %v941_v17, %v929_v29  ;;  %v2566_v17 = vld [vmem:[#allocation9 + $0xa4] sm:$0xf0]  ;;  %v2416_v12 = vor.u32 %v2607_v8, %v2413_v9  ;;  %v2605_v20 = vld [vmem:[#allocation11 + $0xe4] sm:$0xf] }
  0xc1   :  { %1337 = vmatpush.bf16.msra.mxu1 %v2252_v11  ;;  %v2244_v19 = vor.u32 %v2566_v17, %v2243_v16  ;;  %1364 = vmatpush.bf16.msra.mxu3 %v2248_v21  ;;  %v2412_v11 = vor.u32 %v2608_v4, %v2411_v2  ;;  %v2333_v16 = vld [vmem:[#allocation11 + $0x58] sm:$0xf0]  ;;  %v2403_v17 = vld [vmem:[#allocation11 + $0xe0] sm:$0xf]  ;;  %v2405_v21 = vld [vmem:[#allocation11 + $0xe8] sm:$0xf0] }
  0xc2   :  { %v2301_v2 = vld [vmem:[#allocation11 + $0x18] sm:$0xf0]  ;;  %v2371_v4 = vld [vmem:[#allocation11 + $0xa0] sm:$0xf]  ;;  %v2598_v8 = vld [vmem:[#allocation11 + $0xa4] sm:$0xf0] }
  0xc3   :  { %v2597_v9 = vld [vmem:[#allocation11 + $0xa4] sm:$0xf] }
  0xc5   :  { %v930_v25 = vpop.f32.mrf.mxu2  ;;  %1338 = vmatpush.bf16.msra.mxu1 %v2244_v19  ;;  %v2404_v19 = vor.u32 %v2606_v18, %v2403_v17  ;;  %v2293_v17 = vld [vmem:[#allocation11 + $0x8] sm:$0xf0] }
  0xc6   :  { %v943_v27 = vpop.f32.mrf.mxu3  ;;  %v2563_v25 = vld [vmem:[#allocation9 + $0x94] sm:$0xf] }
  0xc7   :  { %v2236_v27 = vor.u32 %v2564_v24, %v2235_v23  ;;  %v2240_v29 = vor.u32 %v2563_v25, %v2237_v28  ;;  %v2408_v23 = vor.u32 %v2605_v20, %v2405_v21  ;;  %v2323_v24 = vld [vmem:[#allocation11 + $0x40] sm:$0xf]  ;;  %v2586_v25 = vld [vmem:[#allocation11 + $0x44] sm:$0xf0]  ;;  %v2604_v28 = vld [vmem:[#allocation11 + $0xd4] sm:$0xf0] }
  0xc8   :  { %v2596_v20 = vld [vmem:[#allocation11 + $0x94] sm:$0xf0]  ;;  %v2595_v21 = vld [vmem:[#allocation11 + $0x94] sm:$0xf] }
  0xc9   :  { %1339 = vmatpush.bf16.msra.mxu1 %v2236_v27  ;;  %1365 = vmatpush.bf16.msra.mxu3 %v2240_v29  ;;  %v2395_v27 = vld [vmem:[#allocation11 + $0xd0] sm:$0xf]  ;;  %v2603_v29 = vld [vmem:[#allocation11 + $0xd4] sm:$0xf] }
  0xd5   :  { %v954_v32 = vpop.f32.mrf.mxu0 }
  0xd6   :  { %v955_v33 = vadd.f32 %v954_v32, %v942_v30  ;;  %v967_v34 = vpop.f32.mrf.mxu1 }
  0xd8   :  { %v968_v38 = vadd.f32 %v967_v34, %v955_v33  ;;  %v2227_v33 = vld [vmem:[#allocation9 + $0x80] sm:$0xf]  ;;  %v2562_v34 = vld [vmem:[#allocation9 + $0x84] sm:$0xf0] }
  0xdd   :  { %v980_v39 = vpop.f32.mrf.mxu2  ;;  %v956_v7 = vpop.f32.mrf.mxu0 }
  0xde   :  { %v981_v41 = vadd.f32 %v980_v39, %v968_v38  ;;  %v993_v42 = vpop.f32.mrf.mxu3  ;;  %v969_v40 = vpop.f32.mrf.mxu1  ;;  %v2561_v38 = vld [vmem:[#allocation9 + $0x84] sm:$0xf]  ;;  %v2228_v39 = vor.u32 %v2562_v34, %v2227_v33  ;;  %v2397_v33 = vld [vmem:[#allocation11 + $0xd8] sm:$0xf0]  ;;  %v2396_v34 = vor.u32 %v2604_v28, %v2395_v27 }
  0xdf   :  { %v2593_v27 = vld [vmem:[#allocation11 + $0x84] sm:$0xf] }
  0xe0   :  { %v994_v46 = vadd.f32 %v993_v42, %v981_v41  ;;  %1340 = vmatpush.bf16.msra.mxu1 %v2228_v39  ;;  %v2387_v39 = vld [vmem:[#allocation11 + $0xc0] sm:$0xf] }
  0xe2   :  { %v1116_v31 = vadd.f32 %v1112_v57, %v994_v46  ;;  %v2229_v57 = vld [vmem:[#allocation9 + $0x88] sm:$0xf0] }
  0xe3   :  { %v2232_v41 = vor.u32 %v2561_v38, %v2229_v57  ;;  %v2400_v38 = vor.u32 %v2603_v29, %v2397_v33  ;;  %v2324_v57 = vor.u32 %v2586_v25, %v2323_v24  ;;  %v2355_v25 = vld [vmem:[#allocation11 + $0x80] sm:$0xf]  ;;  %v2357_v29 = vld [vmem:[#allocation11 + $0x88] sm:$0xf0] }
  0xe4   :  { %v1118_v49 = vmax.f32 %v1116_v31, 0.0  ;;  %1587 = vmatpush.bf16.msrb.mxu1 %v2412_v11  ;;  %v2373_v11 = vld [vmem:[#allocation11 + $0xa8] sm:$0xf0] }
  0xe5   :  { %v982_v53 = vpop.f32.mrf.mxu2  ;;  %1366 = vmatpush.bf16.msra.mxu3 %v2232_v41  ;;  %v2602_v41 = vld [vmem:[#allocation11 + $0xc4] sm:$0xf0] }
  0xe6   :  { %v1120_v59 = vpack.c.bf16 %v1118_v49, %v1118_v49  ;;  %v995_v60 = vpop.f32.mrf.mxu3 }
  0xe7   :  { %v2348_v60 = vor.u32 %v2592_v58, %v2347_v56 }
  0xe8   :  { %1328 = vmatmul.bf16.vlgmr.msra.gmra.mxu0 %v1120_v59  ;;  %1354 = vmatmul.bf16.vlgmr.msra.gmra.mxu2 %v1120_v59  ;;  %v2591_v59 = vld [vmem:[#allocation11 + $0x74] sm:$0xf] }
  0xe9   :  { %v2352_v0 = vor.u32 %v2591_v59, %v2349_v61  ;;  %1574 = vmatpush.bf16.msrb.mxu0 %v2348_v60  ;;  %1613 = vmatpush.bf16.msrb.mxu3 %v2416_v12  ;;  %v2376_v12 = vor.u32 %v2597_v9, %v2373_v11 }
  0xea   :  { %1588 = vmatpush.bf16.msrb.mxu1 %v2404_v19  ;;  %v2363_v19 = vld [vmem:[#allocation11 + $0x90] sm:$0xf] }
  0xeb   :  { %1600 = vmatpush.bf16.msrb.mxu2 %v2352_v0  ;;  %v2580_v0 = vld [vmem:[#allocation11 + $0x14] sm:$0xf0] }
  0xec   :  { %v2300_v37 = vor.u32 %v2580_v0, %v2299_v63 }
  0xed   :  { %1575 = vmatpush.bf16.msrb.mxu0 %v2340_v3  ;;  %1614 = vmatpush.bf16.msrb.mxu3 %v2408_v23  ;;  %v2304_v3 = vor.u32 %v2579_v1, %v2301_v2  ;;  %v2365_v23 = vld [vmem:[#allocation11 + $0x98] sm:$0xf0] }
  0xee   :  { %1589 = vmatpush.bf16.msrb.mxu1 %v2396_v34  ;;  %v2368_v24 = vor.u32 %v2595_v21, %v2365_v23 }
  0xef   :  { %1601 = vmatpush.bf16.msrb.mxu2 %v2344_v10  ;;  %v2372_v10 = vor.u32 %v2598_v8, %v2371_v4 }
  0xf1   :  { %1615 = vmatpush.bf16.msrb.mxu3 %v2400_v38 }
  0xf5   :  { %v1006_v14 = vpop.f32.mrf.mxu0 }
  0xf6   :  { %v1019_v15 = vpop.f32.mrf.mxu1 }
  0xf7   :  { %v1020_v44 = vadd.f32 %v1019_v15, %v1006_v14  ;;  %v2588_v14 = vld [vmem:[#allocation11 + $0x54] sm:$0xf0]  ;;  %v2587_v15 = vld [vmem:[#allocation11 + $0x54] sm:$0xf] }
  0xfd   :  { %v1032_v22 = vpop.f32.mrf.mxu2  ;;  %v1008_v30 = vpop.f32.mrf.mxu0 }
  0xfe   :  { %v1045_v26 = vpop.f32.mrf.mxu3  ;;  %v1021_v32 = vpop.f32.mrf.mxu1  ;;  %v1033_v45 = vadd.f32 %v1032_v22, %v1020_v44  ;;  %v2332_v22 = vor.u32 %v2588_v14, %v2331_v13  ;;  %v2585_v30 = vld [vmem:[#allocation11 + $0x44] sm:$0xf]  ;;  %v2291_v13 = vld [vmem:[#allocation11] sm:$0xf]  ;;  %v2578_v14 = vld [vmem:[#allocation11 + $0x4] sm:$0xf0] }
  0xff   :  { %v2325_v32 = vld [vmem:[#allocation11 + $0x48] sm:$0xf0] }
 0x100   :  { %v1046_v5 = vadd.f32 %v1045_v26, %v1033_v45  ;;  %v2336_v26 = vor.u32 %v2587_v15, %v2333_v16  ;;  %1576 = vmatpush.bf16.msrb.mxu0 %v2332_v22  ;;  %v2328_v44 = vor.u32 %v2585_v30, %v2325_v32  ;;  %v2315_v45 = vld [vmem:[#allocation11 + $0x30] sm:$0xf]  ;;  %v2577_v15 = vld [vmem:[#allocation11 + $0x4] sm:$0xf]  ;;  %v2292_v16 = vor.u32 %v2578_v14, %v2291_v13  ;;  %v1154_v32 = vld [vmem:[%s2881_s4] sm:$0x3] }
 0x101   :  { %v2296_v18 = vor.u32 %v2577_v15, %v2293_v17  ;;  %v2364_v22 = vor.u32 %v2596_v20, %v2363_v19  ;;  %v2360_v30 = vor.u32 %v2593_v27, %v2357_v29  ;;  %v1156_v33 = vperm.slane %v1154_v32, 0 }
 0x102   :  { %1602 = vmatpush.bf16.msrb.mxu2 %v2336_v26  ;;  %v2594_v26 = vld [vmem:[#allocation11 + $0x84] sm:$0xf0] }
 0x103   :  { %v2356_v28 = vor.u32 %v2594_v26, %v2355_v25 }
 0x104   :  { %1577 = vmatpush.bf16.msrb.mxu0 %v2324_v57 }
 0x105   :  { %v1034_v42 = vpop.f32.mrf.mxu2 }
 0x106   :  { %v1047_v43 = vpop.f32.mrf.mxu3  ;;  %v2601_v42 = vld [vmem:[#allocation11 + $0xc4] sm:$0xf]  ;;  %1603 = vmatpush.bf16.msrb.mxu2 %v2328_v44 }
 0x107   :  { %v2389_v43 = vld [vmem:[#allocation11 + $0xc8] sm:$0xf0] }
 0x115   :  { %v1058_v6 = vpop.f32.mrf.mxu0 }
 0x116   :  { %v1071_v46 = vpop.f32.mrf.mxu1  ;;  %v1059_v7 = vadd.f32 %v1058_v6, %v1046_v5  ;;  %v2584_v5 = vld [vmem:[#allocation11 + $0x34] sm:$0xf0]  ;;  %v2583_v6 = vld [vmem:[#allocation11 + $0x34] sm:$0xf] }
 0x118   :  { %v1072_v35 = vadd.f32 %v1071_v46, %v1059_v7  ;;  %v2317_v46 = vld [vmem:[#allocation11 + $0x38] sm:$0xf0]  ;;  %v2388_v7 = vor.u32 %v2602_v41, %v2387_v39  ;;  %v1157_v39 = vperm.slane %v1154_v32, 1 }
 0x11a   :  { %1590 = vmatpush.bf16.msrb.mxu1 %v2388_v7 }
 0x11d   :  { %v1084_v40 = vpop.f32.mrf.mxu2  ;;  %v1060_v48 = vpop.f32.mrf.mxu0 }
 0x11e   :  { %v1085_v31 = vadd.f32 %v1084_v40, %v1072_v35  ;;  %v1097_v47 = vpop.f32.mrf.mxu3  ;;  %v1073_v49 = vpop.f32.mrf.mxu1  ;;  %v2392_v35 = vor.u32 %v2601_v42, %v2389_v43  ;;  %v2379_v40 = vld [vmem:[#allocation11 + $0xb0] sm:$0xf]  ;;  %v2381_v48 = vld [vmem:[#allocation11 + $0xb8] sm:$0xf0] }
 0x11f   :  { %v2320_v49 = vor.u32 %v2583_v6, %v2317_v46 }
 0x120   :  { %v1098_v50 = vadd.f32 %v1097_v47, %v1085_v31  ;;  %v2316_v31 = vor.u32 %v2584_v5, %v2315_v45  ;;  %v2600_v47 = vld [vmem:[#allocation11 + $0xb4] sm:$0xf0]  ;;  %1616 = vmatpush.bf16.msrb.mxu3 %v2392_v35  ;;  %v1408_v35 = vld [vmem:[%s2883_s6] sm:$0x3] }
 0x121   :  { %1604 = vmatpush.bf16.msrb.mxu2 %v2320_v49 }
 0x122   :  { %v1117_v51 = vadd.f32 %v1113_v36, %v1098_v50  ;;  %v2599_v36 = vld [vmem:[#allocation11 + $0xb4] sm:$0xf]  ;;  %v2307_v50 = vld [vmem:[#allocation11 + $0x20] sm:$0xf]  ;;  %1578 = vmatpush.bf16.msrb.mxu0 %v2316_v31  ;;  %v1410_v31 = vperm.slane %v1408_v35, 0 }
 0x123   :  { %v2384_v56 = vor.u32 %v2599_v36, %v2381_v48 }
 0x124   :  { %v1119_v52 = vmax.f32 %v1117_v51, 0.0  ;;  %v2582_v51 = vld [vmem:[#allocation11 + $0x24] sm:$0xf0] }
 0x125   :  { %v1086_v53 = vpop.f32.mrf.mxu2  ;;  %v2308_v58 = vor.u32 %v2582_v51, %v2307_v50  ;;  %1617 = vmatpush.bf16.msrb.mxu3 %v2384_v56  ;;  %v1411_v50 = vperm.slane %v1408_v35, 1 }
 0x126   :  { %v1121_v54 = vpack.c.bf16 %v1119_v52, %v1119_v52  ;;  %v1099_v55 = vpop.f32.mrf.mxu3  ;;  %v2581_v52 = vld [vmem:[#allocation11 + $0x24] sm:$0xf]  ;;  %v2309_v53 = vld [vmem:[#allocation11 + $0x28] sm:$0xf0] }
 0x127   :  { %v2380_v55 = vor.u32 %v2600_v47, %v2379_v40  ;;  %v2312_v59 = vor.u32 %v2581_v52, %v2309_v53  ;;  %1579 = vmatpush.bf16.msrb.mxu0 %v2308_v58 }
 0x128   :  { %1341 = vmatmul.bf16.vlgmr.msra.gmra.mxu1 %v1121_v54  ;;  %1367 = vmatmul.bf16.vlgmr.msra.gmra.mxu3 %v1121_v54 }
 0x129   :  { %1591 = vmatpush.bf16.msrb.mxu1 %v2380_v55  ;;  %1605 = vmatpush.bf16.msrb.mxu2 %v2312_v59 }
 0x12a   :  { %1618 = vmatpush.bf16.msrb.mxu3 %v2376_v12 }
 0x12b   :  { %1580 = vmatpush.bf16.msrb.mxu0 %v2300_v37 }
 0x12d   :  { %1606 = vmatpush.bf16.msrb.mxu2 %v2304_v3  ;;  %1592 = vmatpush.bf16.msrb.mxu1 %v2372_v10 }
 0x12e   :  { %1619 = vmatpush.bf16.msrb.mxu3 %v2368_v24 }
 0x12f   :  { %1581 = vmatpush.bf16.msrb.mxu0 %v2292_v16 }
 0x131   :  { %1607 = vmatpush.bf16.msrb.mxu2 %v2296_v18  ;;  %1593 = vmatpush.bf16.msrb.mxu1 %v2364_v22 }
 0x132   :  { %1620 = vmatpush.bf16.msrb.mxu3 %v2360_v30 }
 0x135   :  { %1594 = vmatpush.bf16.msrb.mxu1 %v2356_v28 }
 0x165   :  { %v1329_v54 = vpop.f32.mrf.mxu0 }
 0x166   :  { %v1330_v34 = vadd.f32 %v1329_v54, %v1156_v33 }
 0x16b   :  { %v1355_v60 = vpop.f32.mrf.mxu2 }
 0x16c   :  { %v1356_v42 = vadd.f32 %v1355_v60, %v1157_v39 }
 0x16d   :  { %v1331_v61 = vpop.f32.mrf.mxu0 }
 0x173   :  { %v1357_v62 = vpop.f32.mrf.mxu2 }
 0x1a5   :  { %v1342_v38 = vpop.f32.mrf.mxu1 }
 0x1a6   :  { %v1343_v57 = vadd.f32 %v1342_v38, %v1330_v34 }
 0x1a8   :  { %v1372_v41 = vmax.f32 %v1343_v57, 0.0 }
 0x1aa   :  { %v1374_v43 = vpack.c.bf16 %v1372_v41, %v1372_v41 }
 0x1ab   :  { %v1368_v44 = vpop.f32.mrf.mxu3 }
 0x1ac   :  { %v1369_v45 = vadd.f32 %v1368_v44, %v1356_v42  ;;  %1582 = vmatmul.bf16.vlgmr.msrb.gmra.mxu0 %v1374_v43  ;;  %1608 = vmatmul.bf16.vlgmr.msrb.gmra.mxu2 %v1374_v43 }
 0x1ad   :  { %v1344_v5 = vpop.f32.mrf.mxu1 }
 0x1ae   :  { %v1373_v6 = vmax.f32 %v1369_v45, 0.0 }
 0x1b0   :  { %v1375_v46 = vpack.c.bf16 %v1373_v6, %v1373_v6 }
 0x1b2   :  { %1595 = vmatmul.bf16.vlgmr.msrb.gmra.mxu1 %v1375_v46  ;;  %1621 = vmatmul.bf16.vlgmr.msrb.gmra.mxu3 %v1375_v46 }
 0x1b3   :  { %v1370_v7 = vpop.f32.mrf.mxu3 }
 0x229   :  { %v1583_v40 = vpop.f32.mrf.mxu0 }
 0x22a   :  { %v1584_v47 = vadd.f32 %v1583_v40, %v1410_v31 }
 0x22f   :  { %v1596_v36 = vpop.f32.mrf.mxu1  ;;  %v1609_v48 = vpop.f32.mrf.mxu2 }
 0x230   :  { %v1597_v49 = vadd.f32 %v1596_v36, %v1584_v47  ;;  %v1610_v53 = vadd.f32 %v1609_v48, %v1411_v50 }
 0x231   :  { %v1585_v51 = vpop.f32.mrf.mxu0 }
 0x232   :  { %v1626_v52 = vmax.f32 %v1597_v49, 0.0 }
 0x234   :  { %1628 = vst [vmem:[#allocation12] sm:$0xff] %v1626_v52 }
 0x235   :  { %v1622_v54 = vpop.f32.mrf.mxu3 }
 0x236   :  { %v1623_v55 = vadd.f32 %v1622_v54, %v1610_v53 }
 0x237   :  { %v1598_v56 = vpop.f32.mrf.mxu1  ;;  %v1611_v58 = vpop.f32.mrf.mxu2 }
 0x238   :  { %v1627_v59 = vmax.f32 %v1623_v55, 0.0 }
 0x23a   :  { %1629 = vst [vmem:[#allocation12 + $0x8] sm:$0xff] %v1627_v59 }
 0x23b   :  { %1640 = dma.vmem_to_hbm [thread:$0]  %s1636_s27, 256, %s1638_s30, [#allocation5]  }
 0x23d   :  { %v1624_v60 = vpop.f32.mrf.mxu3 }
 0x23e   :  { %2767 = dma.done.wait [#allocation5], 256  }
 0x23f   :  { %2768 = vsyncadd [#allocation5], 4294967040 }
 0x240   :  { %1645 = vsyncpa [#allocation4], 1 }
 0x241   :  { %1646 = vsyncpa [#allocation7], 1 }
 0x242   :  { %1647 = vsyncpa [#allocation10], 1 }
 0x243   :  { %1648 = vsyncpa [#allocation5], 1 }

</bundles_post_ra>
